<compile_context>
chip_gen: v5e
topology: v5e:2x2
jax: 0.10.0
libtpu: 0.0.40
codegen_flags: <defaults>
</compile_context>

<pallas_src>
import functools

import jax
import jax.numpy as jnp
from jax import lax
from jax.experimental import pallas as pl
from jax.experimental.pallas import tpu as pltpu


def _round_up(x, m):
    return ((x + m - 1) // m) * m


def _sigmoid_tanh(x):
    # sigmoid(x) == 0.5 * tanh(0.5 * x) + 0.5  -> single EUP tanh instead of exp + recip.
    return 0.5 * jnp.tanh(0.5 * x) + 0.5


# ---------------------------------------------------------------------------
# Fused kernel: input projection + LSTM recurrence + FC head (at last time block)
# ---------------------------------------------------------------------------
def _lstm_fused_kernel(x_ref, len_ref, wih_ref, whh_ref, b_ref,
                       w1_ref, b1_ref, w2_ref, b2_ref,
                       o_ref, h_scr, c_scr, *, hidden_size, t_tile):
    H = hidden_size
    t_blk = pl.program_id(1)

    @pl.when(t_blk == 0)
    def _():
        h_scr[...] = jnp.zeros_like(h_scr)
        c_scr[...] = jnp.zeros_like(c_scr)

    lens = len_ref[...]                      # (TB, 1) int32 — tiny, safe to hoist
    t_base = t_blk * t_tile                  # global time index of this block's step 0

    def step(tt, carry):
        h, c = carry
        # Gate pre-activations: x @ W_ih + h @ W_hh + b  (bf16 MXU operands, f32 accum).
        # Weight refs are indexed inside the dot each step (no value pinned across the
        # unrolled loop); the x-projection is independent of h so it overlaps the chain.
        g = (jnp.dot(x_ref[tt], wih_ref[...], preferred_element_type=jnp.float32)
             + jnp.dot(h.astype(jnp.bfloat16), whh_ref[...],
                       preferred_element_type=jnp.float32)
             + b_ref[...])                                            # (TB, 4H) f32
        # PyTorch gate order [i, f, g, o]; H=128 keeps these slices lane-aligned.
        i_g = _sigmoid_tanh(g[:, 0:H])
        f_g = _sigmoid_tanh(g[:, H:2 * H])
        g_g = jnp.tanh(g[:, 2 * H:3 * H])
        o_g = _sigmoid_tanh(g[:, 3 * H:4 * H])
        c_new = f_g * c + i_g * g_g
        h_new = o_g * jnp.tanh(c_new)
        # Packed-sequence semantics: freeze h/c once t >= length (mask is exactly 0/1).
        m = ((t_base + tt) < lens).astype(jnp.float32)                # (TB, 1)
        h = h + m * (h_new - h)
        c = c + m * (c_new - c)
        return h, c

    h, c = lax.fori_loop(0, t_tile, step, (h_scr[...], c_scr[...]), unroll=True)
    h_scr[...] = h
    c_scr[...] = c

    # FC head on hidden[-1] at the final time block only.  NOTE: this relies on the grid
    # being (batch outer, time inner) with time marked "arbitrary" and the output block
    # index constant across t — do not reorder the grid axes.
    @pl.when(t_blk == pl.num_programs(1) - 1)
    def _():
        z1 = jnp.dot(h, w1_ref[...], preferred_element_type=jnp.float32) + b1_ref[...]
        z1 = jnp.maximum(z1, 0.0)
        z2 = jnp.dot(z1, w2_ref[...], preferred_element_type=jnp.float32) + b2_ref[...]
        o_ref[...] = _sigmoid_tanh(z2)


# ---------------------------------------------------------------------------
# Wrapper
# ---------------------------------------------------------------------------
def rnn_forward(tokens, lengths, params, *, batch_tile=None, time_tile=16):
    """Forward pass matching RNN.forward(text, lengths) -> (B, 1) sigmoid output."""
    B, T = tokens.shape
    E = params["embedding"].shape[1]
    H = params["w_hh"].shape[0]
    F = params["fc1_w"].shape[1]

    # ---- tiling / padding decisions ----
    E_pad = _round_up(E, 128)
    if batch_tile is None:
        if B >= 16:
            # >= 2 batch tiles so the "parallel" axis can shard across v7x's 2 TensorCores;
            # cap at 64 rows to keep the per-step (TB, 4H) f32 gate tensor at ~32 vregs.
            TB = min(64, _round_up(-(-B // 2), 8))
        else:
            TB = _round_up(B, 8)
    else:
        TB = batch_tile
    B_pad = _round_up(B, TB)
    TT = min(time_tile, T)
    T_pad = _round_up(T, TT)

    # ---- embedding gather (glue, plain JAX): pad/cast the table once, gather time-major ----
    emb_tab = params["embedding"]
    if E_pad != E:
        emb_tab = jnp.pad(emb_tab, ((0, 0), (0, E_pad - E)))
    emb_tab = emb_tab.astype(jnp.bfloat16)
    tok = jnp.pad(tokens.astype(jnp.int32),
                  ((0, B_pad - B), (0, T_pad - T)))       # pad id 0 == <pad> (zero row)
    x = emb_tab[tok.T]                                    # (T_pad, B_pad, E_pad) bf16

    # ---- per-sequence lengths (padded rows get length 0 -> state frozen at zero) ----
    lens = jnp.pad(lengths.astype(jnp.int32), (0, B_pad - B)).reshape(B_pad, 1)

    # ---- weights (matmul operands in bf16; biases / FC head in f32) ----
    w_ih = params["w_ih"]
    if E_pad != E:
        w_ih = jnp.pad(w_ih, ((0, E_pad - E), (0, 0)))
    w_ih = w_ih.astype(jnp.bfloat16)                      # (E_pad, 4H)
    w_hh = params["w_hh"].astype(jnp.bfloat16)            # (H, 4H)
    b_gate = params["b"].reshape(1, -1).astype(jnp.float32)   # (1, 4H) = b_ih + b_hh
    fc1_w = params["fc1_w"].astype(jnp.float32)           # (H, F)
    fc1_b = params["fc1_b"].reshape(1, -1).astype(jnp.float32)
    fc2_w = params["fc2_w"].astype(jnp.float32)           # (F, 1)
    fc2_b = params["fc2_b"].reshape(1, -1).astype(jnp.float32)

    kernel = functools.partial(_lstm_fused_kernel, hidden_size=H, t_tile=TT)
    out = pl.pallas_call(
        kernel,
        out_shape=jax.ShapeDtypeStruct((B_pad, 1), jnp.float32),
        grid=(B_pad // TB, T_pad // TT),
        in_specs=[
            pl.BlockSpec((TT, TB, E_pad), lambda b, t: (t, b, 0)),  # x blocks (bf16, streamed)
            pl.BlockSpec((TB, 1), lambda b, t: (b, 0)),             # lengths (int32)
            pl.BlockSpec((E_pad, 4 * H), lambda b, t: (0, 0)),      # W_ih (bf16, resident)
            pl.BlockSpec((H, 4 * H), lambda b, t: (0, 0)),          # W_hh (bf16, resident)
            pl.BlockSpec((1, 4 * H), lambda b, t: (0, 0)),          # gate bias
            pl.BlockSpec((H, F), lambda b, t: (0, 0)),              # fc1_w
            pl.BlockSpec((1, F), lambda b, t: (0, 0)),              # fc1_b
            pl.BlockSpec((F, 1), lambda b, t: (0, 0)),              # fc2_w
            pl.BlockSpec((1, 1), lambda b, t: (0, 0)),              # fc2_b
        ],
        out_specs=pl.BlockSpec((TB, 1), lambda b, t: (b, 0)),
        scratch_shapes=[
            pltpu.VMEM((TB, H), jnp.float32),   # h (persists across time grid)
            pltpu.VMEM((TB, H), jnp.float32),   # c
        ],
        compiler_params=pltpu.CompilerParams(
            dimension_semantics=("parallel", "arbitrary"),
            vmem_limit_bytes=32 * 1024 * 1024),
    )(x, lens, w_ih, w_hh, b_gate, fc1_w, fc1_b, fc2_w, fc2_b)

    return out[:B]


def init_params(key, vocab_size, embed_dim, rnn_hidden_size, fc_hidden_size):
    ks = jax.random.split(key, 9)
    H, E, F = rnn_hidden_size, embed_dim, fc_hidden_size

    # nn.Embedding(vocab_size, embed_dim, padding_idx=0): N(0,1) init, row 0 zeroed.
    embedding = jax.random.normal(ks[0], (vocab_size, E), jnp.float32)
    embedding = embedding.at[0].set(0.0)

    # nn.LSTM uniform(-1/sqrt(H), 1/sqrt(H)); weights stored transposed to (in, out).
    s = 1.0 / jnp.sqrt(H)
    w_ih = jax.random.uniform(ks[1], (E, 4 * H), jnp.float32, -s, s)
    w_hh = jax.random.uniform(ks[2], (H, 4 * H), jnp.float32, -s, s)
    b_ih = jax.random.uniform(ks[3], (4 * H,), jnp.float32, -s, s)
    b_hh = jax.random.uniform(ks[4], (4 * H,), jnp.float32, -s, s)

    s1 = 1.0 / jnp.sqrt(H)
    fc1_w = jax.random.uniform(ks[5], (H, F), jnp.float32, -s1, s1)
    fc1_b = jax.random.uniform(ks[6], (F,), jnp.float32, -s1, s1)
    s2 = 1.0 / jnp.sqrt(F)
    fc2_w = jax.random.uniform(ks[7], (F, 1), jnp.float32, -s2, s2)
    fc2_b = jax.random.uniform(ks[8], (1,), jnp.float32, -s2, s2)

    return {
        "embedding": embedding,
        "w_ih": w_ih,
        "w_hh": w_hh,
        "b": b_ih + b_hh,
        "fc1_w": fc1_w,
        "fc1_b": fc1_b,
        "fc2_w": fc2_w,
        "fc2_b": fc2_b,
    }


if __name__ == "__main__":
    # Small synthetic shapes consistent with the module's forward.
    vocab_size = 50
    embed_dim = 100
    rnn_hidden_size = 128
    fc_hidden_size = 64
    B, T = 2, 8

    key = jax.random.PRNGKey(0)
    k_tok, k_par = jax.random.split(key)

    params = init_params(k_par, vocab_size, embed_dim, rnn_hidden_size, fc_hidden_size)

    lengths = jnp.array([8, 5], dtype=jnp.int32)                 # per-sequence valid lengths
    tokens = jax.random.randint(k_tok, (B, T), 2, vocab_size, dtype=jnp.int32)
    # zero (<pad>) out positions past each sequence's length, like real padded batches
    t_idx = jnp.arange(T)[None, :]
    tokens = jnp.where(t_idx < lengths[:, None], tokens, 0)

    out = rnn_forward(tokens, lengths, params)
    jax.block_until_ready(out)
    assert out.shape == (B, 1)
    assert bool(jnp.all((out >= 0.0) & (out <= 1.0)))
    print("KERNEL_OK")
</pallas_src>

<mosaic_0001>
module attributes {stable_mosaic.version = 11 : i64} {
  func.func @_lstm_fused_kernel(%arg0: i32, %arg1: i32, %arg2: memref<8x8x128xbf16, #tpu.memory_space<vmem>>, %arg3: memref<8x1xi32, #tpu.memory_space<vmem>>, %arg4: memref<128x512xbf16, #tpu.memory_space<vmem>>, %arg5: memref<128x512xbf16, #tpu.memory_space<vmem>>, %arg6: memref<1x512xf32, #tpu.memory_space<vmem>>, %arg7: memref<128x64xf32, #tpu.memory_space<vmem>>, %arg8: memref<1x64xf32, #tpu.memory_space<vmem>>, %arg9: memref<64x1xf32, #tpu.memory_space<vmem>>, %arg10: memref<1x1xf32, #tpu.memory_space<vmem>>, %arg11: memref<8x1xf32, #tpu.memory_space<vmem>>, %arg12: memref<8x128xf32, #tpu.memory_space<vmem>>, %arg13: memref<8x128xf32, #tpu.memory_space<vmem>>) attributes {dimension_semantics = [#tpu.dimension_semantics<parallel>, #tpu.dimension_semantics<arbitrary>], iteration_bounds = array<i64: 1, 1>, scalar_prefetch = 0 : i64, scratch_operands = 2 : i64, tpu.core_type = #tpu.core_type<tc>, window_params = [{transform_indices = @transform_0, window_bounds = array<i64: 8, 8, 128>}, {transform_indices = @transform_1, window_bounds = array<i64: 8, 1>}, {pipeline_mode = #tpu.pipeline_mode<synchronous>, transform_indices = @transform_2, window_bounds = array<i64: 128, 512>}, {pipeline_mode = #tpu.pipeline_mode<synchronous>, transform_indices = @transform_3, window_bounds = array<i64: 128, 512>}, {pipeline_mode = #tpu.pipeline_mode<synchronous>, transform_indices = @transform_4, window_bounds = array<i64: 1, 512>}, {pipeline_mode = #tpu.pipeline_mode<synchronous>, transform_indices = @transform_5, window_bounds = array<i64: 128, 64>}, {pipeline_mode = #tpu.pipeline_mode<synchronous>, transform_indices = @transform_6, window_bounds = array<i64: 1, 64>}, {pipeline_mode = #tpu.pipeline_mode<synchronous>, transform_indices = @transform_7, window_bounds = array<i64: 64, 1>}, {pipeline_mode = #tpu.pipeline_mode<synchronous>, transform_indices = @transform_8, window_bounds = array<i64: 1, 1>}, {transform_indices = @transform_9, window_bounds = array<i64: 8, 1>}]} {
    %c0_i32 = arith.constant 0 : i32
    %0 = arith.cmpi eq, %arg1, %c0_i32 : i32
    %1 = arith.extui %0 : i1 to i32
    %c0_i32_0 = arith.constant 0 : i32
    %2 = arith.cmpi ne, %1, %c0_i32_0 : i32
    scf.if %2 {
      %cst_165 = arith.constant 0.000000e+00 : f32
      %460 = vector.broadcast %cst_165 : f32 to vector<8x128xf32>
      %c0_166 = arith.constant 0 : index
      %c0_167 = arith.constant 0 : index
      %461 = vector.load %arg12[%c0_166, %c0_167] : memref<8x128xf32, #tpu.memory_space<vmem>>, vector<8x128xf32>
      tpu.vector_store %arg12[%c0_166, %c0_167], %460 {strides = array<i32>} : memref<8x128xf32, #tpu.memory_space<vmem>>, vector<8x128xf32>,
      %cst_168 = arith.constant 0.000000e+00 : f32
      %462 = vector.broadcast %cst_168 : f32 to vector<8x128xf32>
      %c0_169 = arith.constant 0 : index
      %c0_170 = arith.constant 0 : index
      %463 = vector.load %arg13[%c0_169, %c0_170] : memref<8x128xf32, #tpu.memory_space<vmem>>, vector<8x128xf32>
      tpu.vector_store %arg13[%c0_169, %c0_170], %462 {strides = array<i32>} : memref<8x128xf32, #tpu.memory_space<vmem>>, vector<8x128xf32>,
    } else {
    }
    %c0 = arith.constant 0 : index
    %c0_1 = arith.constant 0 : index
    %3 = vector.load %arg3[%c0, %c0_1] : memref<8x1xi32, #tpu.memory_space<vmem>>, vector<8x1xi32>
    %c8_i32 = arith.constant 8 : i32
    %4 = arith.muli %arg1, %c8_i32 : i32
    %c0_2 = arith.constant 0 : index
    %c0_3 = arith.constant 0 : index
    %5 = vector.load %arg12[%c0_2, %c0_3] : memref<8x128xf32, #tpu.memory_space<vmem>>, vector<8x128xf32>
    %c0_4 = arith.constant 0 : index
    %c0_5 = arith.constant 0 : index
    %6 = vector.load %arg13[%c0_4, %c0_5] : memref<8x128xf32, #tpu.memory_space<vmem>>, vector<8x128xf32>
    %c0_i32_6 = arith.constant 0 : i32
    %7 = arith.index_cast %c0_i32_6 : i32 to index
    %c0_7 = arith.constant 0 : index
    %c0_8 = arith.constant 0 : index
    %8 = vector.load %arg2[%7, %c0_7, %c0_8] : memref<8x8x128xbf16, #tpu.memory_space<vmem>>, vector<1x8x128xbf16>
    %9 = vector.shape_cast %8 : vector<1x8x128xbf16> to vector<8x128xbf16>
    %c0_9 = arith.constant 0 : index
    %c0_10 = arith.constant 0 : index
    %10 = vector.load %arg4[%c0_9, %c0_10] : memref<128x512xbf16, #tpu.memory_space<vmem>>, vector<128x512xbf16>
    %cst = arith.constant dense<0.000000e+00> : vector<8x512xf32>
    %11 = tpu.matmul %9, %10, %cst {dimension_numbers = #tpu.dot_dimension_numbers<[1], [0], [0], [1], [0, 0, 1, 1], [], []>} : vector<8x128xbf16>, vector<128x512xbf16>, vector<8x512xf32> -> vector<8x512xf32>
    %12 = arith.truncf %5 : vector<8x128xf32> to vector<8x128xbf16>
    %c0_11 = arith.constant 0 : index
    %c0_12 = arith.constant 0 : index
    %13 = vector.load %arg5[%c0_11, %c0_12] : memref<128x512xbf16, #tpu.memory_space<vmem>>, vector<128x512xbf16>
    %cst_13 = arith.constant dense<0.000000e+00> : vector<8x512xf32>
    %14 = tpu.matmul %12, %13, %cst_13 {dimension_numbers = #tpu.dot_dimension_numbers<[1], [0], [0], [1], [0, 0, 1, 1], [], []>} : vector<8x128xbf16>, vector<128x512xbf16>, vector<8x512xf32> -> vector<8x512xf32>
    %15 = arith.addf %11, %14 : vector<8x512xf32>
    %c0_14 = arith.constant 0 : index
    %c0_15 = arith.constant 0 : index
    %16 = vector.load %arg6[%c0_14, %c0_15] : memref<1x512xf32, #tpu.memory_space<vmem>>, vector<1x512xf32>
    %17 = vector.broadcast %16 : vector<1x512xf32> to vector<8x512xf32>
    %18 = arith.addf %15, %17 : vector<8x512xf32>
    %19 = vector.extract_strided_slice %18 {offsets = [0, 0], sizes = [8, 128], strides = [1, 1]} : vector<8x512xf32> to vector<8x128xf32>
    %cst_16 = arith.constant 5.000000e-01 : f32
    %20 = vector.broadcast %cst_16 : f32 to vector<8x128xf32>
    %21 = arith.mulf %20, %19 : vector<8x128xf32>
    %22 = math.tanh %21 : vector<8x128xf32>
    %cst_17 = arith.constant 5.000000e-01 : f32
    %23 = vector.broadcast %cst_17 : f32 to vector<8x128xf32>
    %24 = arith.mulf %23, %22 : vector<8x128xf32>
    %cst_18 = arith.constant 5.000000e-01 : f32
    %25 = vector.broadcast %cst_18 : f32 to vector<8x128xf32>
    %26 = arith.addf %24, %25 : vector<8x128xf32>
    %27 = vector.extract_strided_slice %18 {offsets = [0, 128], sizes = [8, 128], strides = [1, 1]} : vector<8x512xf32> to vector<8x128xf32>
    %cst_19 = arith.constant 5.000000e-01 : f32
    %28 = vector.broadcast %cst_19 : f32 to vector<8x128xf32>
    %29 = arith.mulf %28, %27 : vector<8x128xf32>
    %30 = math.tanh %29 : vector<8x128xf32>
    %cst_20 = arith.constant 5.000000e-01 : f32
    %31 = vector.broadcast %cst_20 : f32 to vector<8x128xf32>
    %32 = arith.mulf %31, %30 : vector<8x128xf32>
    %cst_21 = arith.constant 5.000000e-01 : f32
    %33 = vector.broadcast %cst_21 : f32 to vector<8x128xf32>
    %34 = arith.addf %32, %33 : vector<8x128xf32>
    %35 = vector.extract_strided_slice %18 {offsets = [0, 256], sizes = [8, 128], strides = [1, 1]} : vector<8x512xf32> to vector<8x128xf32>
    %36 = math.tanh %35 : vector<8x128xf32>
    %37 = vector.extract_strided_slice %18 {offsets = [0, 384], sizes = [8, 128], strides = [1, 1]} : vector<8x512xf32> to vector<8x128xf32>
    %cst_22 = arith.constant 5.000000e-01 : f32
    %38 = vector.broadcast %cst_22 : f32 to vector<8x128xf32>
    %39 = arith.mulf %38, %37 : vector<8x128xf32>
    %40 = math.tanh %39 : vector<8x128xf32>
    %cst_23 = arith.constant 5.000000e-01 : f32
    %41 = vector.broadcast %cst_23 : f32 to vector<8x128xf32>
    %42 = arith.mulf %41, %40 : vector<8x128xf32>
    %cst_24 = arith.constant 5.000000e-01 : f32
    %43 = vector.broadcast %cst_24 : f32 to vector<8x128xf32>
    %44 = arith.addf %42, %43 : vector<8x128xf32>
    %45 = arith.mulf %34, %6 : vector<8x128xf32>
    %46 = arith.mulf %26, %36 : vector<8x128xf32>
    %47 = arith.addf %45, %46 : vector<8x128xf32>
    %48 = math.tanh %47 : vector<8x128xf32>
    %49 = arith.mulf %44, %48 : vector<8x128xf32>
    %50 = arith.addi %4, %c0_i32_6 : i32
    %51 = vector.broadcast %50 : i32 to vector<8x1xi32>
    %52 = arith.cmpi slt, %51, %3 : vector<8x1xi32>
    %53 = arith.extui %52 : vector<8x1xi1> to vector<8x1xi32>
    %54 = arith.sitofp %53 : vector<8x1xi32> to vector<8x1xf32>
    %55 = arith.subf %49, %5 : vector<8x128xf32>
    %56 = vector.broadcast %54 : vector<8x1xf32> to vector<8x128xf32>
    %57 = arith.mulf %56, %55 : vector<8x128xf32>
    %58 = arith.addf %5, %57 : vector<8x128xf32>
    %59 = arith.subf %47, %6 : vector<8x128xf32>
    %60 = vector.broadcast %54 : vector<8x1xf32> to vector<8x128xf32>
    %61 = arith.mulf %60, %59 : vector<8x128xf32>
    %62 = arith.addf %6, %61 : vector<8x128xf32>
    %c1_i32 = arith.constant 1 : i32
    %63 = arith.index_cast %c1_i32 : i32 to index
    %c0_25 = arith.constant 0 : index
    %c0_26 = arith.constant 0 : index
    %64 = vector.load %arg2[%63, %c0_25, %c0_26] : memref<8x8x128xbf16, #tpu.memory_space<vmem>>, vector<1x8x128xbf16>
    %65 = vector.shape_cast %64 : vector<1x8x128xbf16> to vector<8x128xbf16>
    %c0_27 = arith.constant 0 : index
    %c0_28 = arith.constant 0 : index
    %66 = vector.load %arg4[%c0_27, %c0_28] : memref<128x512xbf16, #tpu.memory_space<vmem>>, vector<128x512xbf16>
    %cst_29 = arith.constant dense<0.000000e+00> : vector<8x512xf32>
    %67 = tpu.matmul %65, %66, %cst_29 {dimension_numbers = #tpu.dot_dimension_numbers<[1], [0], [0], [1], [0, 0, 1, 1], [], []>} : vector<8x128xbf16>, vector<128x512xbf16>, vector<8x512xf32> -> vector<8x512xf32>
    %68 = arith.truncf %58 : vector<8x128xf32> to vector<8x128xbf16>
    %c0_30 = arith.constant 0 : index
    %c0_31 = arith.constant 0 : index
    %69 = vector.load %arg5[%c0_30, %c0_31] : memref<128x512xbf16, #tpu.memory_space<vmem>>, vector<128x512xbf16>
    %cst_32 = arith.constant dense<0.000000e+00> : vector<8x512xf32>
    %70 = tpu.matmul %68, %69, %cst_32 {dimension_numbers = #tpu.dot_dimension_numbers<[1], [0], [0], [1], [0, 0, 1, 1], [], []>} : vector<8x128xbf16>, vector<128x512xbf16>, vector<8x512xf32> -> vector<8x512xf32>
    %71 = arith.addf %67, %70 : vector<8x512xf32>
    %c0_33 = arith.constant 0 : index
    %c0_34 = arith.constant 0 : index
    %72 = vector.load %arg6[%c0_33, %c0_34] : memref<1x512xf32, #tpu.memory_space<vmem>>, vector<1x512xf32>
    %73 = vector.broadcast %72 : vector<1x512xf32> to vector<8x512xf32>
    %74 = arith.addf %71, %73 : vector<8x512xf32>
    %75 = vector.extract_strided_slice %74 {offsets = [0, 0], sizes = [8, 128], strides = [1, 1]} : vector<8x512xf32> to vector<8x128xf32>
    %cst_35 = arith.constant 5.000000e-01 : f32
    %76 = vector.broadcast %cst_35 : f32 to vector<8x128xf32>
    %77 = arith.mulf %76, %75 : vector<8x128xf32>
    %78 = math.tanh %77 : vector<8x128xf32>
    %cst_36 = arith.constant 5.000000e-01 : f32
    %79 = vector.broadcast %cst_36 : f32 to vector<8x128xf32>
    %80 = arith.mulf %79, %78 : vector<8x128xf32>
    %cst_37 = arith.constant 5.000000e-01 : f32
    %81 = vector.broadcast %cst_37 : f32 to vector<8x128xf32>
    %82 = arith.addf %80, %81 : vector<8x128xf32>
    %83 = vector.extract_strided_slice %74 {offsets = [0, 128], sizes = [8, 128], strides = [1, 1]} : vector<8x512xf32> to vector<8x128xf32>
    %cst_38 = arith.constant 5.000000e-01 : f32
    %84 = vector.broadcast %cst_38 : f32 to vector<8x128xf32>
    %85 = arith.mulf %84, %83 : vector<8x128xf32>
    %86 = math.tanh %85 : vector<8x128xf32>
    %cst_39 = arith.constant 5.000000e-01 : f32
    %87 = vector.broadcast %cst_39 : f32 to vector<8x128xf32>
    %88 = arith.mulf %87, %86 : vector<8x128xf32>
    %cst_40 = arith.constant 5.000000e-01 : f32
    %89 = vector.broadcast %cst_40 : f32 to vector<8x128xf32>
    %90 = arith.addf %88, %89 : vector<8x128xf32>
    %91 = vector.extract_strided_slice %74 {offsets = [0, 256], sizes = [8, 128], strides = [1, 1]} : vector<8x512xf32> to vector<8x128xf32>
    %92 = math.tanh %91 : vector<8x128xf32>
    %93 = vector.extract_strided_slice %74 {offsets = [0, 384], sizes = [8, 128], strides = [1, 1]} : vector<8x512xf32> to vector<8x128xf32>
    %cst_41 = arith.constant 5.000000e-01 : f32
    %94 = vector.broadcast %cst_41 : f32 to vector<8x128xf32>
    %95 = arith.mulf %94, %93 : vector<8x128xf32>
    %96 = math.tanh %95 : vector<8x128xf32>
    %cst_42 = arith.constant 5.000000e-01 : f32
    %97 = vector.broadcast %cst_42 : f32 to vector<8x128xf32>
    %98 = arith.mulf %97, %96 : vector<8x128xf32>
    %cst_43 = arith.constant 5.000000e-01 : f32
    %99 = vector.broadcast %cst_43 : f32 to vector<8x128xf32>
    %100 = arith.addf %98, %99 : vector<8x128xf32>
    %101 = arith.mulf %90, %62 : vector<8x128xf32>
    %102 = arith.mulf %82, %92 : vector<8x128xf32>
    %103 = arith.addf %101, %102 : vector<8x128xf32>
    %104 = math.tanh %103 : vector<8x128xf32>
    %105 = arith.mulf %100, %104 : vector<8x128xf32>
    %106 = arith.addi %4, %c1_i32 : i32
    %107 = vector.broadcast %106 : i32 to vector<8x1xi32>
    %108 = arith.cmpi slt, %107, %3 : vector<8x1xi32>
    %109 = arith.extui %108 : vector<8x1xi1> to vector<8x1xi32>
    %110 = arith.sitofp %109 : vector<8x1xi32> to vector<8x1xf32>
    %111 = arith.subf %105, %58 : vector<8x128xf32>
    %112 = vector.broadcast %110 : vector<8x1xf32> to vector<8x128xf32>
    %113 = arith.mulf %112, %111 : vector<8x128xf32>
    %114 = arith.addf %58, %113 : vector<8x128xf32>
    %115 = arith.subf %103, %62 : vector<8x128xf32>
    %116 = vector.broadcast %110 : vector<8x1xf32> to vector<8x128xf32>
    %117 = arith.mulf %116, %115 : vector<8x128xf32>
    %118 = arith.addf %62, %117 : vector<8x128xf32>
    %c2_i32 = arith.constant 2 : i32
    %119 = arith.index_cast %c2_i32 : i32 to index
    %c0_44 = arith.constant 0 : index
    %c0_45 = arith.constant 0 : index
    %120 = vector.load %arg2[%119, %c0_44, %c0_45] : memref<8x8x128xbf16, #tpu.memory_space<vmem>>, vector<1x8x128xbf16>
    %121 = vector.shape_cast %120 : vector<1x8x128xbf16> to vector<8x128xbf16>
    %c0_46 = arith.constant 0 : index
    %c0_47 = arith.constant 0 : index
    %122 = vector.load %arg4[%c0_46, %c0_47] : memref<128x512xbf16, #tpu.memory_space<vmem>>, vector<128x512xbf16>
    %cst_48 = arith.constant dense<0.000000e+00> : vector<8x512xf32>
    %123 = tpu.matmul %121, %122, %cst_48 {dimension_numbers = #tpu.dot_dimension_numbers<[1], [0], [0], [1], [0, 0, 1, 1], [], []>} : vector<8x128xbf16>, vector<128x512xbf16>, vector<8x512xf32> -> vector<8x512xf32>
    %124 = arith.truncf %114 : vector<8x128xf32> to vector<8x128xbf16>
    %c0_49 = arith.constant 0 : index
    %c0_50 = arith.constant 0 : index
    %125 = vector.load %arg5[%c0_49, %c0_50] : memref<128x512xbf16, #tpu.memory_space<vmem>>, vector<128x512xbf16>
    %cst_51 = arith.constant dense<0.000000e+00> : vector<8x512xf32>
    %126 = tpu.matmul %124, %125, %cst_51 {dimension_numbers = #tpu.dot_dimension_numbers<[1], [0], [0], [1], [0, 0, 1, 1], [], []>} : vector<8x128xbf16>, vector<128x512xbf16>, vector<8x512xf32> -> vector<8x512xf32>
    %127 = arith.addf %123, %126 : vector<8x512xf32>
    %c0_52 = arith.constant 0 : index
    %c0_53 = arith.constant 0 : index
    %128 = vector.load %arg6[%c0_52, %c0_53] : memref<1x512xf32, #tpu.memory_space<vmem>>, vector<1x512xf32>
    %129 = vector.broadcast %128 : vector<1x512xf32> to vector<8x512xf32>
    %130 = arith.addf %127, %129 : vector<8x512xf32>
    %131 = vector.extract_strided_slice %130 {offsets = [0, 0], sizes = [8, 128], strides = [1, 1]} : vector<8x512xf32> to vector<8x128xf32>
    %cst_54 = arith.constant 5.000000e-01 : f32
    %132 = vector.broadcast %cst_54 : f32 to vector<8x128xf32>
    %133 = arith.mulf %132, %131 : vector<8x128xf32>
    %134 = math.tanh %133 : vector<8x128xf32>
    %cst_55 = arith.constant 5.000000e-01 : f32
    %135 = vector.broadcast %cst_55 : f32 to vector<8x128xf32>
    %136 = arith.mulf %135, %134 : vector<8x128xf32>
    %cst_56 = arith.constant 5.000000e-01 : f32
    %137 = vector.broadcast %cst_56 : f32 to vector<8x128xf32>
    %138 = arith.addf %136, %137 : vector<8x128xf32>
    %139 = vector.extract_strided_slice %130 {offsets = [0, 128], sizes = [8, 128], strides = [1, 1]} : vector<8x512xf32> to vector<8x128xf32>
    %cst_57 = arith.constant 5.000000e-01 : f32
    %140 = vector.broadcast %cst_57 : f32 to vector<8x128xf32>
    %141 = arith.mulf %140, %139 : vector<8x128xf32>
    %142 = math.tanh %141 : vector<8x128xf32>
    %cst_58 = arith.constant 5.000000e-01 : f32
    %143 = vector.broadcast %cst_58 : f32 to vector<8x128xf32>
    %144 = arith.mulf %143, %142 : vector<8x128xf32>
    %cst_59 = arith.constant 5.000000e-01 : f32
    %145 = vector.broadcast %cst_59 : f32 to vector<8x128xf32>
    %146 = arith.addf %144, %145 : vector<8x128xf32>
    %147 = vector.extract_strided_slice %130 {offsets = [0, 256], sizes = [8, 128], strides = [1, 1]} : vector<8x512xf32> to vector<8x128xf32>
    %148 = math.tanh %147 : vector<8x128xf32>
    %149 = vector.extract_strided_slice %130 {offsets = [0, 384], sizes = [8, 128], strides = [1, 1]} : vector<8x512xf32> to vector<8x128xf32>
    %cst_60 = arith.constant 5.000000e-01 : f32
    %150 = vector.broadcast %cst_60 : f32 to vector<8x128xf32>
    %151 = arith.mulf %150, %149 : vector<8x128xf32>
    %152 = math.tanh %151 : vector<8x128xf32>
    %cst_61 = arith.constant 5.000000e-01 : f32
    %153 = vector.broadcast %cst_61 : f32 to vector<8x128xf32>
    %154 = arith.mulf %153, %152 : vector<8x128xf32>
    %cst_62 = arith.constant 5.000000e-01 : f32
    %155 = vector.broadcast %cst_62 : f32 to vector<8x128xf32>
    %156 = arith.addf %154, %155 : vector<8x128xf32>
    %157 = arith.mulf %146, %118 : vector<8x128xf32>
    %158 = arith.mulf %138, %148 : vector<8x128xf32>
    %159 = arith.addf %157, %158 : vector<8x128xf32>
    %160 = math.tanh %159 : vector<8x128xf32>
    %161 = arith.mulf %156, %160 : vector<8x128xf32>
    %162 = arith.addi %4, %c2_i32 : i32
    %163 = vector.broadcast %162 : i32 to vector<8x1xi32>
    %164 = arith.cmpi slt, %163, %3 : vector<8x1xi32>
    %165 = arith.extui %164 : vector<8x1xi1> to vector<8x1xi32>
    %166 = arith.sitofp %165 : vector<8x1xi32> to vector<8x1xf32>
    %167 = arith.subf %161, %114 : vector<8x128xf32>
    %168 = vector.broadcast %166 : vector<8x1xf32> to vector<8x128xf32>
    %169 = arith.mulf %168, %167 : vector<8x128xf32>
    %170 = arith.addf %114, %169 : vector<8x128xf32>
    %171 = arith.subf %159, %118 : vector<8x128xf32>
    %172 = vector.broadcast %166 : vector<8x1xf32> to vector<8x128xf32>
    %173 = arith.mulf %172, %171 : vector<8x128xf32>
    %174 = arith.addf %118, %173 : vector<8x128xf32>
    %c3_i32 = arith.constant 3 : i32
    %175 = arith.index_cast %c3_i32 : i32 to index
    %c0_63 = arith.constant 0 : index
    %c0_64 = arith.constant 0 : index
    %176 = vector.load %arg2[%175, %c0_63, %c0_64] : memref<8x8x128xbf16, #tpu.memory_space<vmem>>, vector<1x8x128xbf16>
    %177 = vector.shape_cast %176 : vector<1x8x128xbf16> to vector<8x128xbf16>
    %c0_65 = arith.constant 0 : index
    %c0_66 = arith.constant 0 : index
    %178 = vector.load %arg4[%c0_65, %c0_66] : memref<128x512xbf16, #tpu.memory_space<vmem>>, vector<128x512xbf16>
    %cst_67 = arith.constant dense<0.000000e+00> : vector<8x512xf32>
    %179 = tpu.matmul %177, %178, %cst_67 {dimension_numbers = #tpu.dot_dimension_numbers<[1], [0], [0], [1], [0, 0, 1, 1], [], []>} : vector<8x128xbf16>, vector<128x512xbf16>, vector<8x512xf32> -> vector<8x512xf32>
    %180 = arith.truncf %170 : vector<8x128xf32> to vector<8x128xbf16>
    %c0_68 = arith.constant 0 : index
    %c0_69 = arith.constant 0 : index
    %181 = vector.load %arg5[%c0_68, %c0_69] : memref<128x512xbf16, #tpu.memory_space<vmem>>, vector<128x512xbf16>
    %cst_70 = arith.constant dense<0.000000e+00> : vector<8x512xf32>
    %182 = tpu.matmul %180, %181, %cst_70 {dimension_numbers = #tpu.dot_dimension_numbers<[1], [0], [0], [1], [0, 0, 1, 1], [], []>} : vector<8x128xbf16>, vector<128x512xbf16>, vector<8x512xf32> -> vector<8x512xf32>
    %183 = arith.addf %179, %182 : vector<8x512xf32>
    %c0_71 = arith.constant 0 : index
    %c0_72 = arith.constant 0 : index
    %184 = vector.load %arg6[%c0_71, %c0_72] : memref<1x512xf32, #tpu.memory_space<vmem>>, vector<1x512xf32>
    %185 = vector.broadcast %184 : vector<1x512xf32> to vector<8x512xf32>
    %186 = arith.addf %183, %185 : vector<8x512xf32>
    %187 = vector.extract_strided_slice %186 {offsets = [0, 0], sizes = [8, 128], strides = [1, 1]} : vector<8x512xf32> to vector<8x128xf32>
    %cst_73 = arith.constant 5.000000e-01 : f32
    %188 = vector.broadcast %cst_73 : f32 to vector<8x128xf32>
    %189 = arith.mulf %188, %187 : vector<8x128xf32>
    %190 = math.tanh %189 : vector<8x128xf32>
    %cst_74 = arith.constant 5.000000e-01 : f32
    %191 = vector.broadcast %cst_74 : f32 to vector<8x128xf32>
    %192 = arith.mulf %191, %190 : vector<8x128xf32>
    %cst_75 = arith.constant 5.000000e-01 : f32
    %193 = vector.broadcast %cst_75 : f32 to vector<8x128xf32>
    %194 = arith.addf %192, %193 : vector<8x128xf32>
    %195 = vector.extract_strided_slice %186 {offsets = [0, 128], sizes = [8, 128], strides = [1, 1]} : vector<8x512xf32> to vector<8x128xf32>
    %cst_76 = arith.constant 5.000000e-01 : f32
    %196 = vector.broadcast %cst_76 : f32 to vector<8x128xf32>
    %197 = arith.mulf %196, %195 : vector<8x128xf32>
    %198 = math.tanh %197 : vector<8x128xf32>
    %cst_77 = arith.constant 5.000000e-01 : f32
    %199 = vector.broadcast %cst_77 : f32 to vector<8x128xf32>
    %200 = arith.mulf %199, %198 : vector<8x128xf32>
    %cst_78 = arith.constant 5.000000e-01 : f32
    %201 = vector.broadcast %cst_78 : f32 to vector<8x128xf32>
    %202 = arith.addf %200, %201 : vector<8x128xf32>
    %203 = vector.extract_strided_slice %186 {offsets = [0, 256], sizes = [8, 128], strides = [1, 1]} : vector<8x512xf32> to vector<8x128xf32>
    %204 = math.tanh %203 : vector<8x128xf32>
    %205 = vector.extract_strided_slice %186 {offsets = [0, 384], sizes = [8, 128], strides = [1, 1]} : vector<8x512xf32> to vector<8x128xf32>
    %cst_79 = arith.constant 5.000000e-01 : f32
    %206 = vector.broadcast %cst_79 : f32 to vector<8x128xf32>
    %207 = arith.mulf %206, %205 : vector<8x128xf32>
    %208 = math.tanh %207 : vector<8x128xf32>
    %cst_80 = arith.constant 5.000000e-01 : f32
    %209 = vector.broadcast %cst_80 : f32 to vector<8x128xf32>
    %210 = arith.mulf %209, %208 : vector<8x128xf32>
    %cst_81 = arith.constant 5.000000e-01 : f32
    %211 = vector.broadcast %cst_81 : f32 to vector<8x128xf32>
    %212 = arith.addf %210, %211 : vector<8x128xf32>
    %213 = arith.mulf %202, %174 : vector<8x128xf32>
    %214 = arith.mulf %194, %204 : vector<8x128xf32>
    %215 = arith.addf %213, %214 : vector<8x128xf32>
    %216 = math.tanh %215 : vector<8x128xf32>
    %217 = arith.mulf %212, %216 : vector<8x128xf32>
    %218 = arith.addi %4, %c3_i32 : i32
    %219 = vector.broadcast %218 : i32 to vector<8x1xi32>
    %220 = arith.cmpi slt, %219, %3 : vector<8x1xi32>
    %221 = arith.extui %220 : vector<8x1xi1> to vector<8x1xi32>
    %222 = arith.sitofp %221 : vector<8x1xi32> to vector<8x1xf32>
    %223 = arith.subf %217, %170 : vector<8x128xf32>
    %224 = vector.broadcast %222 : vector<8x1xf32> to vector<8x128xf32>
    %225 = arith.mulf %224, %223 : vector<8x128xf32>
    %226 = arith.addf %170, %225 : vector<8x128xf32>
    %227 = arith.subf %215, %174 : vector<8x128xf32>
    %228 = vector.broadcast %222 : vector<8x1xf32> to vector<8x128xf32>
    %229 = arith.mulf %228, %227 : vector<8x128xf32>
    %230 = arith.addf %174, %229 : vector<8x128xf32>
    %c4_i32 = arith.constant 4 : i32
    %231 = arith.index_cast %c4_i32 : i32 to index
    %c0_82 = arith.constant 0 : index
    %c0_83 = arith.constant 0 : index
    %232 = vector.load %arg2[%231, %c0_82, %c0_83] : memref<8x8x128xbf16, #tpu.memory_space<vmem>>, vector<1x8x128xbf16>
    %233 = vector.shape_cast %232 : vector<1x8x128xbf16> to vector<8x128xbf16>
    %c0_84 = arith.constant 0 : index
    %c0_85 = arith.constant 0 : index
    %234 = vector.load %arg4[%c0_84, %c0_85] : memref<128x512xbf16, #tpu.memory_space<vmem>>, vector<128x512xbf16>
    %cst_86 = arith.constant dense<0.000000e+00> : vector<8x512xf32>
    %235 = tpu.matmul %233, %234, %cst_86 {dimension_numbers = #tpu.dot_dimension_numbers<[1], [0], [0], [1], [0, 0, 1, 1], [], []>} : vector<8x128xbf16>, vector<128x512xbf16>, vector<8x512xf32> -> vector<8x512xf32>
    %236 = arith.truncf %226 : vector<8x128xf32> to vector<8x128xbf16>
    %c0_87 = arith.constant 0 : index
    %c0_88 = arith.constant 0 : index
    %237 = vector.load %arg5[%c0_87, %c0_88] : memref<128x512xbf16, #tpu.memory_space<vmem>>, vector<128x512xbf16>
    %cst_89 = arith.constant dense<0.000000e+00> : vector<8x512xf32>
    %238 = tpu.matmul %236, %237, %cst_89 {dimension_numbers = #tpu.dot_dimension_numbers<[1], [0], [0], [1], [0, 0, 1, 1], [], []>} : vector<8x128xbf16>, vector<128x512xbf16>, vector<8x512xf32> -> vector<8x512xf32>
    %239 = arith.addf %235, %238 : vector<8x512xf32>
    %c0_90 = arith.constant 0 : index
    %c0_91 = arith.constant 0 : index
    %240 = vector.load %arg6[%c0_90, %c0_91] : memref<1x512xf32, #tpu.memory_space<vmem>>, vector<1x512xf32>
    %241 = vector.broadcast %240 : vector<1x512xf32> to vector<8x512xf32>
    %242 = arith.addf %239, %241 : vector<8x512xf32>
    %243 = vector.extract_strided_slice %242 {offsets = [0, 0], sizes = [8, 128], strides = [1, 1]} : vector<8x512xf32> to vector<8x128xf32>
    %cst_92 = arith.constant 5.000000e-01 : f32
    %244 = vector.broadcast %cst_92 : f32 to vector<8x128xf32>
    %245 = arith.mulf %244, %243 : vector<8x128xf32>
    %246 = math.tanh %245 : vector<8x128xf32>
    %cst_93 = arith.constant 5.000000e-01 : f32
    %247 = vector.broadcast %cst_93 : f32 to vector<8x128xf32>
    %248 = arith.mulf %247, %246 : vector<8x128xf32>
    %cst_94 = arith.constant 5.000000e-01 : f32
    %249 = vector.broadcast %cst_94 : f32 to vector<8x128xf32>
    %250 = arith.addf %248, %249 : vector<8x128xf32>
    %251 = vector.extract_strided_slice %242 {offsets = [0, 128], sizes = [8, 128], strides = [1, 1]} : vector<8x512xf32> to vector<8x128xf32>
    %cst_95 = arith.constant 5.000000e-01 : f32
    %252 = vector.broadcast %cst_95 : f32 to vector<8x128xf32>
    %253 = arith.mulf %252, %251 : vector<8x128xf32>
    %254 = math.tanh %253 : vector<8x128xf32>
    %cst_96 = arith.constant 5.000000e-01 : f32
    %255 = vector.broadcast %cst_96 : f32 to vector<8x128xf32>
    %256 = arith.mulf %255, %254 : vector<8x128xf32>
    %cst_97 = arith.constant 5.000000e-01 : f32
    %257 = vector.broadcast %cst_97 : f32 to vector<8x128xf32>
    %258 = arith.addf %256, %257 : vector<8x128xf32>
    %259 = vector.extract_strided_slice %242 {offsets = [0, 256], sizes = [8, 128], strides = [1, 1]} : vector<8x512xf32> to vector<8x128xf32>
    %260 = math.tanh %259 : vector<8x128xf32>
    %261 = vector.extract_strided_slice %242 {offsets = [0, 384], sizes = [8, 128], strides = [1, 1]} : vector<8x512xf32> to vector<8x128xf32>
    %cst_98 = arith.constant 5.000000e-01 : f32
    %262 = vector.broadcast %cst_98 : f32 to vector<8x128xf32>
    %263 = arith.mulf %262, %261 : vector<8x128xf32>
    %264 = math.tanh %263 : vector<8x128xf32>
    %cst_99 = arith.constant 5.000000e-01 : f32
    %265 = vector.broadcast %cst_99 : f32 to vector<8x128xf32>
    %266 = arith.mulf %265, %264 : vector<8x128xf32>
    %cst_100 = arith.constant 5.000000e-01 : f32
    %267 = vector.broadcast %cst_100 : f32 to vector<8x128xf32>
    %268 = arith.addf %266, %267 : vector<8x128xf32>
    %269 = arith.mulf %258, %230 : vector<8x128xf32>
    %270 = arith.mulf %250, %260 : vector<8x128xf32>
    %271 = arith.addf %269, %270 : vector<8x128xf32>
    %272 = math.tanh %271 : vector<8x128xf32>
    %273 = arith.mulf %268, %272 : vector<8x128xf32>
    %274 = arith.addi %4, %c4_i32 : i32
    %275 = vector.broadcast %274 : i32 to vector<8x1xi32>
    %276 = arith.cmpi slt, %275, %3 : vector<8x1xi32>
    %277 = arith.extui %276 : vector<8x1xi1> to vector<8x1xi32>
    %278 = arith.sitofp %277 : vector<8x1xi32> to vector<8x1xf32>
    %279 = arith.subf %273, %226 : vector<8x128xf32>
    %280 = vector.broadcast %278 : vector<8x1xf32> to vector<8x128xf32>
    %281 = arith.mulf %280, %279 : vector<8x128xf32>
    %282 = arith.addf %226, %281 : vector<8x128xf32>
    %283 = arith.subf %271, %230 : vector<8x128xf32>
    %284 = vector.broadcast %278 : vector<8x1xf32> to vector<8x128xf32>
    %285 = arith.mulf %284, %283 : vector<8x128xf32>
    %286 = arith.addf %230, %285 : vector<8x128xf32>
    %c5_i32 = arith.constant 5 : i32
    %287 = arith.index_cast %c5_i32 : i32 to index
    %c0_101 = arith.constant 0 : index
    %c0_102 = arith.constant 0 : index
    %288 = vector.load %arg2[%287, %c0_101, %c0_102] : memref<8x8x128xbf16, #tpu.memory_space<vmem>>, vector<1x8x128xbf16>
    %289 = vector.shape_cast %288 : vector<1x8x128xbf16> to vector<8x128xbf16>
    %c0_103 = arith.constant 0 : index
    %c0_104 = arith.constant 0 : index
    %290 = vector.load %arg4[%c0_103, %c0_104] : memref<128x512xbf16, #tpu.memory_space<vmem>>, vector<128x512xbf16>
    %cst_105 = arith.constant dense<0.000000e+00> : vector<8x512xf32>
    %291 = tpu.matmul %289, %290, %cst_105 {dimension_numbers = #tpu.dot_dimension_numbers<[1], [0], [0], [1], [0, 0, 1, 1], [], []>} : vector<8x128xbf16>, vector<128x512xbf16>, vector<8x512xf32> -> vector<8x512xf32>
    %292 = arith.truncf %282 : vector<8x128xf32> to vector<8x128xbf16>
    %c0_106 = arith.constant 0 : index
    %c0_107 = arith.constant 0 : index
    %293 = vector.load %arg5[%c0_106, %c0_107] : memref<128x512xbf16, #tpu.memory_space<vmem>>, vector<128x512xbf16>
    %cst_108 = arith.constant dense<0.000000e+00> : vector<8x512xf32>
    %294 = tpu.matmul %292, %293, %cst_108 {dimension_numbers = #tpu.dot_dimension_numbers<[1], [0], [0], [1], [0, 0, 1, 1], [], []>} : vector<8x128xbf16>, vector<128x512xbf16>, vector<8x512xf32> -> vector<8x512xf32>
    %295 = arith.addf %291, %294 : vector<8x512xf32>
    %c0_109 = arith.constant 0 : index
    %c0_110 = arith.constant 0 : index
    %296 = vector.load %arg6[%c0_109, %c0_110] : memref<1x512xf32, #tpu.memory_space<vmem>>, vector<1x512xf32>
    %297 = vector.broadcast %296 : vector<1x512xf32> to vector<8x512xf32>
    %298 = arith.addf %295, %297 : vector<8x512xf32>
    %299 = vector.extract_strided_slice %298 {offsets = [0, 0], sizes = [8, 128], strides = [1, 1]} : vector<8x512xf32> to vector<8x128xf32>
    %cst_111 = arith.constant 5.000000e-01 : f32
    %300 = vector.broadcast %cst_111 : f32 to vector<8x128xf32>
    %301 = arith.mulf %300, %299 : vector<8x128xf32>
    %302 = math.tanh %301 : vector<8x128xf32>
    %cst_112 = arith.constant 5.000000e-01 : f32
    %303 = vector.broadcast %cst_112 : f32 to vector<8x128xf32>
    %304 = arith.mulf %303, %302 : vector<8x128xf32>
    %cst_113 = arith.constant 5.000000e-01 : f32
    %305 = vector.broadcast %cst_113 : f32 to vector<8x128xf32>
    %306 = arith.addf %304, %305 : vector<8x128xf32>
    %307 = vector.extract_strided_slice %298 {offsets = [0, 128], sizes = [8, 128], strides = [1, 1]} : vector<8x512xf32> to vector<8x128xf32>
    %cst_114 = arith.constant 5.000000e-01 : f32
    %308 = vector.broadcast %cst_114 : f32 to vector<8x128xf32>
    %309 = arith.mulf %308, %307 : vector<8x128xf32>
    %310 = math.tanh %309 : vector<8x128xf32>
    %cst_115 = arith.constant 5.000000e-01 : f32
    %311 = vector.broadcast %cst_115 : f32 to vector<8x128xf32>
    %312 = arith.mulf %311, %310 : vector<8x128xf32>
    %cst_116 = arith.constant 5.000000e-01 : f32
    %313 = vector.broadcast %cst_116 : f32 to vector<8x128xf32>
    %314 = arith.addf %312, %313 : vector<8x128xf32>
    %315 = vector.extract_strided_slice %298 {offsets = [0, 256], sizes = [8, 128], strides = [1, 1]} : vector<8x512xf32> to vector<8x128xf32>
    %316 = math.tanh %315 : vector<8x128xf32>
    %317 = vector.extract_strided_slice %298 {offsets = [0, 384], sizes = [8, 128], strides = [1, 1]} : vector<8x512xf32> to vector<8x128xf32>
    %cst_117 = arith.constant 5.000000e-01 : f32
    %318 = vector.broadcast %cst_117 : f32 to vector<8x128xf32>
    %319 = arith.mulf %318, %317 : vector<8x128xf32>
    %320 = math.tanh %319 : vector<8x128xf32>
    %cst_118 = arith.constant 5.000000e-01 : f32
    %321 = vector.broadcast %cst_118 : f32 to vector<8x128xf32>
    %322 = arith.mulf %321, %320 : vector<8x128xf32>
    %cst_119 = arith.constant 5.000000e-01 : f32
    %323 = vector.broadcast %cst_119 : f32 to vector<8x128xf32>
    %324 = arith.addf %322, %323 : vector<8x128xf32>
    %325 = arith.mulf %314, %286 : vector<8x128xf32>
    %326 = arith.mulf %306, %316 : vector<8x128xf32>
    %327 = arith.addf %325, %326 : vector<8x128xf32>
    %328 = math.tanh %327 : vector<8x128xf32>
    %329 = arith.mulf %324, %328 : vector<8x128xf32>
    %330 = arith.addi %4, %c5_i32 : i32
    %331 = vector.broadcast %330 : i32 to vector<8x1xi32>
    %332 = arith.cmpi slt, %331, %3 : vector<8x1xi32>
    %333 = arith.extui %332 : vector<8x1xi1> to vector<8x1xi32>
    %334 = arith.sitofp %333 : vector<8x1xi32> to vector<8x1xf32>
    %335 = arith.subf %329, %282 : vector<8x128xf32>
    %336 = vector.broadcast %334 : vector<8x1xf32> to vector<8x128xf32>
    %337 = arith.mulf %336, %335 : vector<8x128xf32>
    %338 = arith.addf %282, %337 : vector<8x128xf32>
    %339 = arith.subf %327, %286 : vector<8x128xf32>
    %340 = vector.broadcast %334 : vector<8x1xf32> to vector<8x128xf32>
    %341 = arith.mulf %340, %339 : vector<8x128xf32>
    %342 = arith.addf %286, %341 : vector<8x128xf32>
    %c6_i32 = arith.constant 6 : i32
    %343 = arith.index_cast %c6_i32 : i32 to index
    %c0_120 = arith.constant 0 : index
    %c0_121 = arith.constant 0 : index
    %344 = vector.load %arg2[%343, %c0_120, %c0_121] : memref<8x8x128xbf16, #tpu.memory_space<vmem>>, vector<1x8x128xbf16>
    %345 = vector.shape_cast %344 : vector<1x8x128xbf16> to vector<8x128xbf16>
    %c0_122 = arith.constant 0 : index
    %c0_123 = arith.constant 0 : index
    %346 = vector.load %arg4[%c0_122, %c0_123] : memref<128x512xbf16, #tpu.memory_space<vmem>>, vector<128x512xbf16>
    %cst_124 = arith.constant dense<0.000000e+00> : vector<8x512xf32>
    %347 = tpu.matmul %345, %346, %cst_124 {dimension_numbers = #tpu.dot_dimension_numbers<[1], [0], [0], [1], [0, 0, 1, 1], [], []>} : vector<8x128xbf16>, vector<128x512xbf16>, vector<8x512xf32> -> vector<8x512xf32>
    %348 = arith.truncf %338 : vector<8x128xf32> to vector<8x128xbf16>
    %c0_125 = arith.constant 0 : index
    %c0_126 = arith.constant 0 : index
    %349 = vector.load %arg5[%c0_125, %c0_126] : memref<128x512xbf16, #tpu.memory_space<vmem>>, vector<128x512xbf16>
    %cst_127 = arith.constant dense<0.000000e+00> : vector<8x512xf32>
    %350 = tpu.matmul %348, %349, %cst_127 {dimension_numbers = #tpu.dot_dimension_numbers<[1], [0], [0], [1], [0, 0, 1, 1], [], []>} : vector<8x128xbf16>, vector<128x512xbf16>, vector<8x512xf32> -> vector<8x512xf32>
    %351 = arith.addf %347, %350 : vector<8x512xf32>
    %c0_128 = arith.constant 0 : index
    %c0_129 = arith.constant 0 : index
    %352 = vector.load %arg6[%c0_128, %c0_129] : memref<1x512xf32, #tpu.memory_space<vmem>>, vector<1x512xf32>
    %353 = vector.broadcast %352 : vector<1x512xf32> to vector<8x512xf32>
    %354 = arith.addf %351, %353 : vector<8x512xf32>
    %355 = vector.extract_strided_slice %354 {offsets = [0, 0], sizes = [8, 128], strides = [1, 1]} : vector<8x512xf32> to vector<8x128xf32>
    %cst_130 = arith.constant 5.000000e-01 : f32
    %356 = vector.broadcast %cst_130 : f32 to vector<8x128xf32>
    %357 = arith.mulf %356, %355 : vector<8x128xf32>
    %358 = math.tanh %357 : vector<8x128xf32>
    %cst_131 = arith.constant 5.000000e-01 : f32
    %359 = vector.broadcast %cst_131 : f32 to vector<8x128xf32>
    %360 = arith.mulf %359, %358 : vector<8x128xf32>
    %cst_132 = arith.constant 5.000000e-01 : f32
    %361 = vector.broadcast %cst_132 : f32 to vector<8x128xf32>
    %362 = arith.addf %360, %361 : vector<8x128xf32>
    %363 = vector.extract_strided_slice %354 {offsets = [0, 128], sizes = [8, 128], strides = [1, 1]} : vector<8x512xf32> to vector<8x128xf32>
    %cst_133 = arith.constant 5.000000e-01 : f32
    %364 = vector.broadcast %cst_133 : f32 to vector<8x128xf32>
    %365 = arith.mulf %364, %363 : vector<8x128xf32>
    %366 = math.tanh %365 : vector<8x128xf32>
    %cst_134 = arith.constant 5.000000e-01 : f32
    %367 = vector.broadcast %cst_134 : f32 to vector<8x128xf32>
    %368 = arith.mulf %367, %366 : vector<8x128xf32>
    %cst_135 = arith.constant 5.000000e-01 : f32
    %369 = vector.broadcast %cst_135 : f32 to vector<8x128xf32>
    %370 = arith.addf %368, %369 : vector<8x128xf32>
    %371 = vector.extract_strided_slice %354 {offsets = [0, 256], sizes = [8, 128], strides = [1, 1]} : vector<8x512xf32> to vector<8x128xf32>
    %372 = math.tanh %371 : vector<8x128xf32>
    %373 = vector.extract_strided_slice %354 {offsets = [0, 384], sizes = [8, 128], strides = [1, 1]} : vector<8x512xf32> to vector<8x128xf32>
    %cst_136 = arith.constant 5.000000e-01 : f32
    %374 = vector.broadcast %cst_136 : f32 to vector<8x128xf32>
    %375 = arith.mulf %374, %373 : vector<8x128xf32>
    %376 = math.tanh %375 : vector<8x128xf32>
    %cst_137 = arith.constant 5.000000e-01 : f32
    %377 = vector.broadcast %cst_137 : f32 to vector<8x128xf32>
    %378 = arith.mulf %377, %376 : vector<8x128xf32>
    %cst_138 = arith.constant 5.000000e-01 : f32
    %379 = vector.broadcast %cst_138 : f32 to vector<8x128xf32>
    %380 = arith.addf %378, %379 : vector<8x128xf32>
    %381 = arith.mulf %370, %342 : vector<8x128xf32>
    %382 = arith.mulf %362, %372 : vector<8x128xf32>
    %383 = arith.addf %381, %382 : vector<8x128xf32>
    %384 = math.tanh %383 : vector<8x128xf32>
    %385 = arith.mulf %380, %384 : vector<8x128xf32>
    %386 = arith.addi %4, %c6_i32 : i32
    %387 = vector.broadcast %386 : i32 to vector<8x1xi32>
    %388 = arith.cmpi slt, %387, %3 : vector<8x1xi32>
    %389 = arith.extui %388 : vector<8x1xi1> to vector<8x1xi32>
    %390 = arith.sitofp %389 : vector<8x1xi32> to vector<8x1xf32>
    %391 = arith.subf %385, %338 : vector<8x128xf32>
    %392 = vector.broadcast %390 : vector<8x1xf32> to vector<8x128xf32>
    %393 = arith.mulf %392, %391 : vector<8x128xf32>
    %394 = arith.addf %338, %393 : vector<8x128xf32>
    %395 = arith.subf %383, %342 : vector<8x128xf32>
    %396 = vector.broadcast %390 : vector<8x1xf32> to vector<8x128xf32>
    %397 = arith.mulf %396, %395 : vector<8x128xf32>
    %398 = arith.addf %342, %397 : vector<8x128xf32>
    %c7_i32 = arith.constant 7 : i32
    %399 = arith.index_cast %c7_i32 : i32 to index
    %c0_139 = arith.constant 0 : index
    %c0_140 = arith.constant 0 : index
    %400 = vector.load %arg2[%399, %c0_139, %c0_140] : memref<8x8x128xbf16, #tpu.memory_space<vmem>>, vector<1x8x128xbf16>
    %401 = vector.shape_cast %400 : vector<1x8x128xbf16> to vector<8x128xbf16>
    %c0_141 = arith.constant 0 : index
    %c0_142 = arith.constant 0 : index
    %402 = vector.load %arg4[%c0_141, %c0_142] : memref<128x512xbf16, #tpu.memory_space<vmem>>, vector<128x512xbf16>
    %cst_143 = arith.constant dense<0.000000e+00> : vector<8x512xf32>
    %403 = tpu.matmul %401, %402, %cst_143 {dimension_numbers = #tpu.dot_dimension_numbers<[1], [0], [0], [1], [0, 0, 1, 1], [], []>} : vector<8x128xbf16>, vector<128x512xbf16>, vector<8x512xf32> -> vector<8x512xf32>
    %404 = arith.truncf %394 : vector<8x128xf32> to vector<8x128xbf16>
    %c0_144 = arith.constant 0 : index
    %c0_145 = arith.constant 0 : index
    %405 = vector.load %arg5[%c0_144, %c0_145] : memref<128x512xbf16, #tpu.memory_space<vmem>>, vector<128x512xbf16>
    %cst_146 = arith.constant dense<0.000000e+00> : vector<8x512xf32>
    %406 = tpu.matmul %404, %405, %cst_146 {dimension_numbers = #tpu.dot_dimension_numbers<[1], [0], [0], [1], [0, 0, 1, 1], [], []>} : vector<8x128xbf16>, vector<128x512xbf16>, vector<8x512xf32> -> vector<8x512xf32>
    %407 = arith.addf %403, %406 : vector<8x512xf32>
    %c0_147 = arith.constant 0 : index
    %c0_148 = arith.constant 0 : index
    %408 = vector.load %arg6[%c0_147, %c0_148] : memref<1x512xf32, #tpu.memory_space<vmem>>, vector<1x512xf32>
    %409 = vector.broadcast %408 : vector<1x512xf32> to vector<8x512xf32>
    %410 = arith.addf %407, %409 : vector<8x512xf32>
    %411 = vector.extract_strided_slice %410 {offsets = [0, 0], sizes = [8, 128], strides = [1, 1]} : vector<8x512xf32> to vector<8x128xf32>
    %cst_149 = arith.constant 5.000000e-01 : f32
    %412 = vector.broadcast %cst_149 : f32 to vector<8x128xf32>
    %413 = arith.mulf %412, %411 : vector<8x128xf32>
    %414 = math.tanh %413 : vector<8x128xf32>
    %cst_150 = arith.constant 5.000000e-01 : f32
    %415 = vector.broadcast %cst_150 : f32 to vector<8x128xf32>
    %416 = arith.mulf %415, %414 : vector<8x128xf32>
    %cst_151 = arith.constant 5.000000e-01 : f32
    %417 = vector.broadcast %cst_151 : f32 to vector<8x128xf32>
    %418 = arith.addf %416, %417 : vector<8x128xf32>
    %419 = vector.extract_strided_slice %410 {offsets = [0, 128], sizes = [8, 128], strides = [1, 1]} : vector<8x512xf32> to vector<8x128xf32>
    %cst_152 = arith.constant 5.000000e-01 : f32
    %420 = vector.broadcast %cst_152 : f32 to vector<8x128xf32>
    %421 = arith.mulf %420, %419 : vector<8x128xf32>
    %422 = math.tanh %421 : vector<8x128xf32>
    %cst_153 = arith.constant 5.000000e-01 : f32
    %423 = vector.broadcast %cst_153 : f32 to vector<8x128xf32>
    %424 = arith.mulf %423, %422 : vector<8x128xf32>
    %cst_154 = arith.constant 5.000000e-01 : f32
    %425 = vector.broadcast %cst_154 : f32 to vector<8x128xf32>
    %426 = arith.addf %424, %425 : vector<8x128xf32>
    %427 = vector.extract_strided_slice %410 {offsets = [0, 256], sizes = [8, 128], strides = [1, 1]} : vector<8x512xf32> to vector<8x128xf32>
    %428 = math.tanh %427 : vector<8x128xf32>
    %429 = vector.extract_strided_slice %410 {offsets = [0, 384], sizes = [8, 128], strides = [1, 1]} : vector<8x512xf32> to vector<8x128xf32>
    %cst_155 = arith.constant 5.000000e-01 : f32
    %430 = vector.broadcast %cst_155 : f32 to vector<8x128xf32>
    %431 = arith.mulf %430, %429 : vector<8x128xf32>
    %432 = math.tanh %431 : vector<8x128xf32>
    %cst_156 = arith.constant 5.000000e-01 : f32
    %433 = vector.broadcast %cst_156 : f32 to vector<8x128xf32>
    %434 = arith.mulf %433, %432 : vector<8x128xf32>
    %cst_157 = arith.constant 5.000000e-01 : f32
    %435 = vector.broadcast %cst_157 : f32 to vector<8x128xf32>
    %436 = arith.addf %434, %435 : vector<8x128xf32>
    %437 = arith.mulf %426, %398 : vector<8x128xf32>
    %438 = arith.mulf %418, %428 : vector<8x128xf32>
    %439 = arith.addf %437, %438 : vector<8x128xf32>
    %440 = math.tanh %439 : vector<8x128xf32>
    %441 = arith.mulf %436, %440 : vector<8x128xf32>
    %442 = arith.addi %4, %c7_i32 : i32
    %443 = vector.broadcast %442 : i32 to vector<8x1xi32>
    %444 = arith.cmpi slt, %443, %3 : vector<8x1xi32>
    %445 = arith.extui %444 : vector<8x1xi1> to vector<8x1xi32>
    %446 = arith.sitofp %445 : vector<8x1xi32> to vector<8x1xf32>
    %447 = arith.subf %441, %394 : vector<8x128xf32>
    %448 = vector.broadcast %446 : vector<8x1xf32> to vector<8x128xf32>
    %449 = arith.mulf %448, %447 : vector<8x128xf32>
    %450 = arith.addf %394, %449 : vector<8x128xf32>
    %451 = arith.subf %439, %398 : vector<8x128xf32>
    %452 = vector.broadcast %446 : vector<8x1xf32> to vector<8x128xf32>
    %453 = arith.mulf %452, %451 : vector<8x128xf32>
    %454 = arith.addf %398, %453 : vector<8x128xf32>
    %c8_i32_158 = arith.constant 8 : i32
    %c0_159 = arith.constant 0 : index
    %c0_160 = arith.constant 0 : index
    %455 = vector.load %arg12[%c0_159, %c0_160] : memref<8x128xf32, #tpu.memory_space<vmem>>, vector<8x128xf32>
    tpu.vector_store %arg12[%c0_159, %c0_160], %450 {strides = array<i32>} : memref<8x128xf32, #tpu.memory_space<vmem>>, vector<8x128xf32>,
    %c0_161 = arith.constant 0 : index
    %c0_162 = arith.constant 0 : index
    %456 = vector.load %arg13[%c0_161, %c0_162] : memref<8x128xf32, #tpu.memory_space<vmem>>, vector<8x128xf32>
    tpu.vector_store %arg13[%c0_161, %c0_162], %454 {strides = array<i32>} : memref<8x128xf32, #tpu.memory_space<vmem>>, vector<8x128xf32>,
    %c0_i32_163 = arith.constant 0 : i32
    %457 = arith.cmpi eq, %arg1, %c0_i32_163 : i32
    %458 = arith.extui %457 : i1 to i32
    %c0_i32_164 = arith.constant 0 : i32
    %459 = arith.cmpi ne, %458, %c0_i32_164 : i32
    scf.if %459 {
      %c0_165 = arith.constant 0 : index
      %c0_166 = arith.constant 0 : index
      %460 = vector.load %arg7[%c0_165, %c0_166] : memref<128x64xf32, #tpu.memory_space<vmem>>, vector<128x64xf32>
      %cst_167 = arith.constant dense<0.000000e+00> : vector<8x64xf32>
      %461 = tpu.matmul %450, %460, %cst_167 {dimension_numbers = #tpu.dot_dimension_numbers<[1], [0], [0], [1], [0, 0, 1, 1], [], []>} : vector<8x128xf32>, vector<128x64xf32>, vector<8x64xf32> -> vector<8x64xf32>
      %c0_168 = arith.constant 0 : index
      %c0_169 = arith.constant 0 : index
      %462 = vector.load %arg8[%c0_168, %c0_169] : memref<1x64xf32, #tpu.memory_space<vmem>>, vector<1x64xf32>
      %463 = vector.broadcast %462 : vector<1x64xf32> to vector<8x64xf32>
      %464 = arith.addf %461, %463 : vector<8x64xf32>
      %cst_170 = arith.constant 0.000000e+00 : f32
      %465 = vector.broadcast %cst_170 : f32 to vector<8x64xf32>
      %466 = arith.maximumf %464, %465 : vector<8x64xf32>
      %c0_171 = arith.constant 0 : index
      %c0_172 = arith.constant 0 : index
      %467 = vector.load %arg9[%c0_171, %c0_172] : memref<64x1xf32, #tpu.memory_space<vmem>>, vector<64x1xf32>
      %cst_173 = arith.constant dense<0.000000e+00> : vector<8x1xf32>
      %468 = tpu.matmul %466, %467, %cst_173 {dimension_numbers = #tpu.dot_dimension_numbers<[1], [0], [0], [1], [0, 0, 1, 1], [], []>} : vector<8x64xf32>, vector<64x1xf32>, vector<8x1xf32> -> vector<8x1xf32>
      %c0_174 = arith.constant 0 : index
      %c0_175 = arith.constant 0 : index
      %469 = vector.load %arg10[%c0_174, %c0_175] : memref<1x1xf32, #tpu.memory_space<vmem>>, vector<1x1xf32>
      %470 = vector.broadcast %469 : vector<1x1xf32> to vector<8x1xf32>
      %471 = arith.addf %468, %470 : vector<8x1xf32>
      %cst_176 = arith.constant 5.000000e-01 : f32
      %472 = vector.broadcast %cst_176 : f32 to vector<8x1xf32>
      %473 = arith.mulf %472, %471 : vector<8x1xf32>
      %474 = math.tanh %473 : vector<8x1xf32>
      %cst_177 = arith.constant 5.000000e-01 : f32
      %475 = vector.broadcast %cst_177 : f32 to vector<8x1xf32>
      %476 = arith.mulf %475, %474 : vector<8x1xf32>
      %cst_178 = arith.constant 5.000000e-01 : f32
      %477 = vector.broadcast %cst_178 : f32 to vector<8x1xf32>
      %478 = arith.addf %476, %477 : vector<8x1xf32>
      %c0_179 = arith.constant 0 : index
      %c0_180 = arith.constant 0 : index
      %479 = vector.load %arg11[%c0_179, %c0_180] : memref<8x1xf32, #tpu.memory_space<vmem>>, vector<8x1xf32>
      tpu.vector_store %arg11[%c0_179, %c0_180], %478 {strides = array<i32>} : memref<8x1xf32, #tpu.memory_space<vmem>>, vector<8x1xf32>,
    } else {
    }
    return
  }
  func.func @transform_0(%arg0: i32, %arg1: i32) -> (i32, i32, i32) {
    %c0_i32 = arith.constant 0 : i32
    %c0_i32_0 = arith.constant 0 : i32
    return %arg1, %arg0, %c0_i32 : i32, i32, i32
  }
  func.func @transform_1(%arg0: i32, %arg1: i32) -> (i32, i32) {
    %c0_i32 = arith.constant 0 : i32
    %c0_i32_0 = arith.constant 0 : i32
    return %arg0, %c0_i32 : i32, i32
  }
  func.func @transform_2(%arg0: i32, %arg1: i32) -> (i32, i32) {
    %c0_i32 = arith.constant 0 : i32
    %c0_i32_0 = arith.constant 0 : i32
    %c0_i32_1 = arith.constant 0 : i32
    return %c0_i32, %c0_i32_0 : i32, i32
  }
  func.func @transform_3(%arg0: i32, %arg1: i32) -> (i32, i32) {
    %c0_i32 = arith.constant 0 : i32
    %c0_i32_0 = arith.constant 0 : i32
    %c0_i32_1 = arith.constant 0 : i32
    return %c0_i32, %c0_i32_0 : i32, i32
  }
  func.func @transform_4(%arg0: i32, %arg1: i32) -> (i32, i32) {
    %c0_i32 = arith.constant 0 : i32
    %c0_i32_0 = arith.constant 0 : i32
    %c0_i32_1 = arith.constant 0 : i32
    return %c0_i32, %c0_i32_0 : i32, i32
  }
  func.func @transform_5(%arg0: i32, %arg1: i32) -> (i32, i32) {
    %c0_i32 = arith.constant 0 : i32
    %c0_i32_0 = arith.constant 0 : i32
    %c0_i32_1 = arith.constant 0 : i32
    return %c0_i32, %c0_i32_0 : i32, i32
  }
  func.func @transform_6(%arg0: i32, %arg1: i32) -> (i32, i32) {
    %c0_i32 = arith.constant 0 : i32
    %c0_i32_0 = arith.constant 0 : i32
    %c0_i32_1 = arith.constant 0 : i32
    return %c0_i32, %c0_i32_0 : i32, i32
  }
  func.func @transform_7(%arg0: i32, %arg1: i32) -> (i32, i32) {
    %c0_i32 = arith.constant 0 : i32
    %c0_i32_0 = arith.constant 0 : i32
    %c0_i32_1 = arith.constant 0 : i32
    return %c0_i32, %c0_i32_0 : i32, i32
  }
  func.func @transform_8(%arg0: i32, %arg1: i32) -> (i32, i32) {
    %c0_i32 = arith.constant 0 : i32
    %c0_i32_0 = arith.constant 0 : i32
    %c0_i32_1 = arith.constant 0 : i32
    return %c0_i32, %c0_i32_0 : i32, i32
  }
  func.func @transform_9(%arg0: i32, %arg1: i32) -> (i32, i32) {
    %c0_i32 = arith.constant 0 : i32
    %c0_i32_0 = arith.constant 0 : i32
    return %arg0, %c0_i32 : i32, i32
  }
}

</mosaic_0001>

<bundles_post_ra>
// kernel: tpu_custom_call.1
= control target key start
LH: loop header
LB: loop body
LE: loop exit
PB: predicated region body
PF: predicated region fallthrough
CT: control target
= control target key end

     0   :  { %s3161_s0 = inlined_call_operand.vmem [shape: bf16[8,8,128], index: 0, kind: input, shape index: {}]   ;;  %s3162_s1 = inlined_call_operand.vmem [shape: s32[8,1], index: 1, kind: input, shape index: {}]   ;;  %s3163_s2 = inlined_call_operand.hbm [shape: bf16[128,512], index: 2, kind: input, shape index: {}]   ;;  %s3164_s3 = inlined_call_operand.hbm [shape: bf16[128,512], index: 3, kind: input, shape index: {}]   ;;  %s3165_s4 = inlined_call_operand.vmem [shape: f32[1,512], index: 4, kind: input, shape index: {}]   ;;  %s3166_s5 = inlined_call_operand.vmem [shape: f32[128,64], index: 5, kind: input, shape index: {}]   ;;  %s3167_s6 = inlined_call_operand.vmem [shape: f32[1,64], index: 6, kind: input, shape index: {}]   ;;  %s3168_s7 = inlined_call_operand.vmem [shape: f32[64,1], index: 7, kind: input, shape index: {}]   ;;  %s3169_s8 = inlined_call_operand.<no memory space> [shape: f32[1,1], index: 8, kind: input, shape index: {}]   ;;  %s3170_s9 = inlined_call_operand.vmem [shape: f32[8,1], index: 9, kind: output, shape index: {}]  }
   0x1   :  { %v14_v0 = vstv %s3169_s8 }
   0x2   :  { %15 = vst [vmem:[#allocation4] sm:$0x1] %v14_v0 }
   0x3   :  { %16 = vsyncpa [#allocation6], 0  ;;  %s26_s13 = sshll.u32 %s3163_s2, 4  ;;  %s27_s13 = int_to_ptr.hbm [resolvable:$true] %s26_s13 }
   0x4   :  { %17 = vsyncpa [#allocation8], 0  ;;  %s2213_s14 = smov [#allocation5]   ;;  %s39_s18 = sshll.u32 %s3164_s3, 4  ;;  %s40_s18 = int_to_ptr.hbm [resolvable:$true] %s39_s18 }
   0x5   :  { %s28_s15 = sshll.u32 %s2213_s14, 4  ;;  %s2214_s19 = smov 256   ;;  %s29_s15 = int_to_ptr.vmem [resolvable:$true] %s28_s15 }
   0x6   :  { %s2215_s20 = smov 16   ;;  %s2216_s8 = smov [#allocation7]  }
   0x7   :  { %34 = dma.hbm_to_vmem [thread:$0]  %s27_s13, 4096, %s29_s15, [#allocation6], %s2214_s19, %s2214_s19, %s2215_s20  }
   0x8   :  { %s41_s21 = sshll.u32 %s2216_s8, 4  ;;  %s42_s21 = int_to_ptr.vmem [resolvable:$true] %s41_s21 }
   0x9   :  { %47 = dma.hbm_to_vmem [thread:$0]  %s40_s18, 4096, %s42_s21, [#allocation8], %s2214_s19, %s2214_s19, %s2215_s20  }
   0xa   :  { %2209 = dma.done.wait [#allocation6], 4096  }
   0xb   :  { %2210 = vsyncadd [#allocation6], 4294963200 }
   0xc   :  { %2211 = dma.done.wait [#allocation8], 4096  }
   0xd   :  { %2212 = vsyncadd [#allocation8], 4294963200  ;;  %v1836_v1 = vld [vmem:[#allocation7 + $0xe0] sm:$0xf]  ;;  %v2064_v2 = vld [vmem:[#allocation7 + $0xec] sm:$0xf0] }
   0xe   :  { %v2062_v3 = vld [vmem:[#allocation7 + $0xe4] sm:$0xf]  ;;  %v2279_v4 = vor.u32 %v2064_v2, %v1836_v1  ;;  %v1838_v5 = vld [vmem:[#allocation7 + $0xf0] sm:$0xf0]  ;;  %v1844_v6 = vld [vmem:[#allocation7 + $0xe8] sm:$0xf] }
   0xf   :  { %v2065_v7 = vld [vmem:[#allocation7 + $0xf4] sm:$0xf0]  ;;  %v2281_v8 = vor.u32 %v2062_v3, %v1838_v5  ;;  %v2063_v10 = vld [vmem:[#allocation7 + $0xec] sm:$0xf]  ;;  %v1846_v11 = vld [vmem:[#allocation7 + $0xf8] sm:$0xf0] }
  0x10   :  { %v2283_v9 = vor.u32 %v2065_v7, %v1844_v6  ;;  %v1820_v12 = vld [vmem:[#allocation7 + $0xc0] sm:$0xf]  ;;  %302 = vmatpush.bf16.msra.mxu0 %v2279_v4  ;;  %v2286_v13 = vor.u32 %v2063_v10, %v1846_v11  ;;  %v2060_v14 = vld [vmem:[#allocation7 + $0xcc] sm:$0xf0]  ;;  %v2058_v15 = vld [vmem:[#allocation7 + $0xc4] sm:$0xf] }
  0x11   :  { %v1822_v16 = vld [vmem:[#allocation7 + $0xd0] sm:$0xf0]  ;;  %315 = vmatpush.bf16.msra.mxu1 %v2281_v8  ;;  %v2290_v17 = vor.u32 %v2060_v14, %v1820_v12  ;;  %v1828_v19 = vld [vmem:[#allocation7 + $0xc8] sm:$0xf]  ;;  %v2061_v20 = vld [vmem:[#allocation7 + $0xd4] sm:$0xf0] }
  0x12   :  { %328 = vmatpush.bf16.msra.mxu2 %v2283_v9  ;;  %v2292_v18 = vor.u32 %v2058_v15, %v1822_v16  ;;  %v2059_v21 = vld [vmem:[#allocation7 + $0xcc] sm:$0xf]  ;;  %341 = vmatpush.bf16.msra.mxu3 %v2286_v13  ;;  %v2295_v22 = vor.u32 %v2061_v20, %v1828_v19  ;;  %v1830_v23 = vld [vmem:[#allocation7 + $0xd8] sm:$0xf0]  ;;  %v1804_v24 = vld [vmem:[#allocation7 + $0xa0] sm:$0xf] }
  0x13   :  { %v2056_v25 = vld [vmem:[#allocation7 + $0xac] sm:$0xf0]  ;;  %v2297_v26 = vor.u32 %v2059_v21, %v1830_v23  ;;  %v2054_v27 = vld [vmem:[#allocation7 + $0xa4] sm:$0xf]  ;;  %v1806_v28 = vld [vmem:[#allocation7 + $0xb0] sm:$0xf0] }
  0x14   :  { %v1812_v29 = vld [vmem:[#allocation7 + $0xa8] sm:$0xf]  ;;  %303 = vmatpush.bf16.msra.mxu0 %v2290_v17  ;;  %v2300_v30 = vor.u32 %v2056_v25, %v1804_v24  ;;  %v2057_v31 = vld [vmem:[#allocation7 + $0xb4] sm:$0xf0]  ;;  %v2055_v32 = vld [vmem:[#allocation7 + $0xac] sm:$0xf]  ;;  %v2304_v34 = vor.u32 %v2054_v27, %v1806_v28 }
  0x15   :  { %v1814_v33 = vld [vmem:[#allocation7 + $0xb8] sm:$0xf0]  ;;  %316 = vmatpush.bf16.msra.mxu1 %v2292_v18  ;;  %v2306_v35 = vor.u32 %v2057_v31, %v1812_v29  ;;  %v1788_v36 = vld [vmem:[#allocation7 + $0x80] sm:$0xf]  ;;  %v2052_v37 = vld [vmem:[#allocation7 + $0x8c] sm:$0xf0] }
  0x16   :  { %329 = vmatpush.bf16.msra.mxu2 %v2295_v22  ;;  %v2050_v38 = vld [vmem:[#allocation7 + $0x84] sm:$0xf]  ;;  %342 = vmatpush.bf16.msra.mxu3 %v2297_v26  ;;  %v2309_v39 = vor.u32 %v2055_v32, %v1814_v33  ;;  %v1790_v40 = vld [vmem:[#allocation7 + $0x90] sm:$0xf0]  ;;  %v1796_v41 = vld [vmem:[#allocation7 + $0x88] sm:$0xf]  ;;  %v2312_v45 = vor.u32 %v2052_v37, %v1788_v36 }
  0x17   :  { %v2053_v42 = vld [vmem:[#allocation7 + $0x94] sm:$0xf0]  ;;  %v2051_v43 = vld [vmem:[#allocation7 + $0x8c] sm:$0xf]  ;;  %v1798_v44 = vld [vmem:[#allocation7 + $0x98] sm:$0xf0]  ;;  %v2316_v46 = vor.u32 %v2050_v38, %v1790_v40 }
  0x18   :  { %304 = vmatpush.bf16.msra.mxu0 %v2300_v30  ;;  %v2318_v47 = vor.u32 %v2053_v42, %v1796_v41  ;;  %v1772_v48 = vld [vmem:[#allocation7 + $0x60] sm:$0xf]  ;;  %v2048_v49 = vld [vmem:[#allocation7 + $0x6c] sm:$0xf0]  ;;  %v2046_v50 = vld [vmem:[#allocation7 + $0x64] sm:$0xf]  ;;  %v2321_v51 = vor.u32 %v2051_v43, %v1798_v44 }
  0x19   :  { %317 = vmatpush.bf16.msra.mxu1 %v2304_v34  ;;  %v1774_v52 = vld [vmem:[#allocation7 + $0x70] sm:$0xf0]  ;;  %v1780_v53 = vld [vmem:[#allocation7 + $0x68] sm:$0xf]  ;;  %v2049_v54 = vld [vmem:[#allocation7 + $0x74] sm:$0xf0]  ;;  %v2324_v57 = vor.u32 %v2048_v49, %v1772_v48 }
  0x1a   :  { %330 = vmatpush.bf16.msra.mxu2 %v2306_v35  ;;  %343 = vmatpush.bf16.msra.mxu3 %v2309_v39  ;;  %v2047_v55 = vld [vmem:[#allocation7 + $0x6c] sm:$0xf]  ;;  %v1782_v56 = vld [vmem:[#allocation7 + $0x78] sm:$0xf0]  ;;  %v2328_v58 = vor.u32 %v2046_v50, %v1774_v52  ;;  %v2330_v59 = vor.u32 %v2049_v54, %v1780_v53  ;;  %v1756_v60 = vld [vmem:[#allocation7 + $0x40] sm:$0xf] }
  0x1b   :  { %v2044_v61 = vld [vmem:[#allocation7 + $0x4c] sm:$0xf0]  ;;  %v2042_v62 = vld [vmem:[#allocation7 + $0x44] sm:$0xf]  ;;  %v2333_v63 = vor.u32 %v2047_v55, %v1782_v56  ;;  %v1758_v0 = vld [vmem:[#allocation7 + $0x50] sm:$0xf0] }
  0x1c   :  { %305 = vmatpush.bf16.msra.mxu0 %v2312_v45  ;;  %v1764_v1 = vld [vmem:[#allocation7 + $0x48] sm:$0xf]  ;;  %v2045_v2 = vld [vmem:[#allocation7 + $0x54] sm:$0xf0]  ;;  %v2043_v3 = vld [vmem:[#allocation7 + $0x4c] sm:$0xf]  ;;  %v2336_v6 = vor.u32 %v2044_v61, %v1756_v60  ;;  %v2340_v7 = vor.u32 %v2042_v62, %v1758_v0 }
  0x1d   :  { %318 = vmatpush.bf16.msra.mxu1 %v2316_v46  ;;  %v1766_v5 = vld [vmem:[#allocation7 + $0x58] sm:$0xf0]  ;;  %v2342_v10 = vor.u32 %v2045_v2, %v1764_v1  ;;  %v1740_v11 = vld [vmem:[#allocation7 + $0x20] sm:$0xf]  ;;  %v2040_v12 = vld [vmem:[#allocation7 + $0x2c] sm:$0xf0] }
  0x1e   :  { %331 = vmatpush.bf16.msra.mxu2 %v2318_v47  ;;  %344 = vmatpush.bf16.msra.mxu3 %v2321_v51  ;;  %v2038_v14 = vld [vmem:[#allocation7 + $0x24] sm:$0xf]  ;;  %v2345_v15 = vor.u32 %v2043_v3, %v1766_v5  ;;  %v1742_v16 = vld [vmem:[#allocation7 + $0x30] sm:$0xf0]  ;;  %v1748_v19 = vld [vmem:[#allocation7 + $0x28] sm:$0xf]  ;;  %v2348_v24 = vor.u32 %v2040_v12, %v1740_v11 }
  0x1f   :  { %v2041_v20 = vld [vmem:[#allocation7 + $0x34] sm:$0xf0]  ;;  %v2039_v21 = vld [vmem:[#allocation7 + $0x2c] sm:$0xf]  ;;  %v1750_v23 = vld [vmem:[#allocation7 + $0x38] sm:$0xf0]  ;;  %v2352_v28 = vor.u32 %v2038_v14, %v1742_v16 }
  0x20   :  { %306 = vmatpush.bf16.msra.mxu0 %v2324_v57  ;;  %v1724_v25 = vld [vmem:[#allocation7] sm:$0xf]  ;;  %v2036_v27 = vld [vmem:[#allocation7 + $0xc] sm:$0xf0]  ;;  %v2354_v29 = vor.u32 %v2041_v20, %v1748_v19  ;;  %v2034_v31 = vld [vmem:[#allocation7 + $0x4] sm:$0xf]  ;;  %v2357_v36 = vor.u32 %v2039_v21, %v1750_v23 }
  0x21   :  { %319 = vmatpush.bf16.msra.mxu1 %v2328_v58  ;;  %v1726_v32 = vld [vmem:[#allocation7 + $0x10] sm:$0xf0]  ;;  %v1732_v33 = vld [vmem:[#allocation7 + $0x8] sm:$0xf]  ;;  %v2037_v37 = vld [vmem:[#allocation7 + $0x14] sm:$0xf0]  ;;  %v2360_v44 = vor.u32 %v2036_v27, %v1724_v25 }
  0x22   :  { %332 = vmatpush.bf16.msra.mxu2 %v2330_v59  ;;  %345 = vmatpush.bf16.msra.mxu3 %v2333_v63  ;;  %v2035_v38 = vld [vmem:[#allocation7 + $0xc] sm:$0xf]  ;;  %v1734_v40 = vld [vmem:[#allocation7 + $0x18] sm:$0xf0]  ;;  %v1964_v41 = vld [vmem:[#allocation5 + $0xe0] sm:$0xf]  ;;  %v2364_v52 = vor.u32 %v2034_v31, %v1726_v32  ;;  %v2366_v53 = vor.u32 %v2037_v37, %v1732_v33 }
  0x23   :  { %v2032_v42 = vld [vmem:[#allocation5 + $0xec] sm:$0xf0]  ;;  %v2030_v43 = vld [vmem:[#allocation5 + $0xe4] sm:$0xf]  ;;  %v1966_v48 = vld [vmem:[#allocation5 + $0xf0] sm:$0xf0]  ;;  %v2369_v56 = vor.u32 %v2035_v38, %v1734_v40 }
  0x24   :  { %307 = vmatpush.bf16.msra.mxu0 %v2336_v6  ;;  %v1972_v49 = vld [vmem:[#allocation5 + $0xe8] sm:$0xf]  ;;  %v2033_v50 = vld [vmem:[#allocation5 + $0xf4] sm:$0xf0]  ;;  %v2031_v54 = vld [vmem:[#allocation5 + $0xec] sm:$0xf]  ;;  %v2371_v60 = vor.u32 %v2032_v42, %v1964_v41  ;;  %v2373_v61 = vor.u32 %v2030_v43, %v1966_v48 }
  0x25   :  { %320 = vmatpush.bf16.msra.mxu1 %v2340_v7  ;;  %v1974_v55 = vld [vmem:[#allocation5 + $0xf8] sm:$0xf0]  ;;  %v2375_v62 = vor.u32 %v2033_v50, %v1972_v49  ;;  %v1948_v0 = vld [vmem:[#allocation5 + $0xc0] sm:$0xf]  ;;  %v2028_v1 = vld [vmem:[#allocation5 + $0xcc] sm:$0xf0] }
  0x26   :  { %333 = vmatpush.bf16.msra.mxu2 %v2342_v10  ;;  %346 = vmatpush.bf16.msra.mxu3 %v2345_v15  ;;  %v2026_v2 = vld [vmem:[#allocation5 + $0xc4] sm:$0xf]  ;;  %v2378_v3 = vor.u32 %v2031_v54, %v1974_v55  ;;  %v1950_v5 = vld [vmem:[#allocation5 + $0xd0] sm:$0xf0]  ;;  %v1956_v11 = vld [vmem:[#allocation5 + $0xc8] sm:$0xf]  ;;  %v2384_v19 = vor.u32 %v2028_v1, %v1948_v0 }
  0x27   :  { %v2029_v12 = vld [vmem:[#allocation5 + $0xd4] sm:$0xf0]  ;;  %v2027_v14 = vld [vmem:[#allocation5 + $0xcc] sm:$0xf]  ;;  %v1958_v16 = vld [vmem:[#allocation5 + $0xd8] sm:$0xf0]  ;;  %v2388_v20 = vor.u32 %v2026_v2, %v1950_v5 }
  0x28   :  { %308 = vmatpush.bf16.msra.mxu0 %v2348_v24  ;;  %v2390_v21 = vor.u32 %v2029_v12, %v1956_v11  ;;  %v1932_v23 = vld [vmem:[#allocation5 + $0xa0] sm:$0xf]  ;;  %v2024_v25 = vld [vmem:[#allocation5 + $0xac] sm:$0xf0]  ;;  %v2022_v27 = vld [vmem:[#allocation5 + $0xa4] sm:$0xf]  ;;  %v2393_v31 = vor.u32 %v2027_v14, %v1958_v16 }
  0x29   :  { %321 = vmatpush.bf16.msra.mxu1 %v2352_v28  ;;  %v2217_v32 = vmov 0.0|0.0   ;;  %v1934_v33 = vld [vmem:[#allocation5 + $0xb0] sm:$0xf0]  ;;  %v1940_v37 = vld [vmem:[#allocation5 + $0xa8] sm:$0xf]  ;;  %v2396_v42 = vor.u32 %v2024_v25, %v1932_v23  ;;  %vm1686_vm8 = vcmask 523264  }
  0x2a   :  { %334 = vmatpush.bf16.msra.mxu2 %v2354_v29  ;;  %347 = vmatpush.bf16.msra.mxu3 %v2357_v36  ;;  %3235 = vst [vmem:[#allocation11_spill] sm:$0xff] %v2390_v21  ;;  %v2025_v38 = vld [vmem:[#allocation5 + $0xb4] sm:$0xf0]  ;;  %v2023_v40 = vld [vmem:[#allocation5 + $0xac] sm:$0xf]  ;;  %v2400_v43 = vor.u32 %v2022_v27, %v1934_v33  ;;  %vm1714_vm9 = vcmask 7168  }
  0x2b   :  { %3236 = vst [vmem:[#allocation12_spill] sm:$0xff] %v2393_v31  ;;  %v1942_v41 = vld [vmem:[#allocation5 + $0xb8] sm:$0xf0]  ;;  %v2402_v48 = vor.u32 %v2025_v38, %v1940_v37  ;;  %v1916_v49 = vld [vmem:[#allocation5 + $0x80] sm:$0xf] }
  0x2c   :  { %309 = vmatpush.bf16.msra.mxu0 %v2360_v44  ;;  %3237 = vst [vmem:[#allocation13_spill] sm:$0xff] %v2396_v42  ;;  %v2020_v50 = vld [vmem:[#allocation5 + $0x8c] sm:$0xf0]  ;;  %v2018_v54 = vld [vmem:[#allocation5 + $0x84] sm:$0xf]  ;;  %v2405_v55 = vor.u32 %v2023_v40, %v1942_v41 }
  0x2d   :  { %322 = vmatpush.bf16.msra.mxu1 %v2364_v52  ;;  %3238 = vst [vmem:[#allocation14_spill] sm:$0xff] %v2400_v43  ;;  %v1918_v0 = vld [vmem:[#allocation5 + $0x90] sm:$0xf0]  ;;  %v1924_v1 = vld [vmem:[#allocation5 + $0x88] sm:$0xf]  ;;  %v2408_v12 = vor.u32 %v2020_v50, %v1916_v49  ;;  %v2422_v41 = vld [vmem:[%s3162_s1] sm:$0xff] }
  0x2e   :  { %335 = vmatpush.bf16.msra.mxu2 %v2366_v53  ;;  %348 = vmatpush.bf16.msra.mxu3 %v2369_v56  ;;  %3239 = vst [vmem:[#allocation15_spill] sm:$0xff] %v2402_v48  ;;  %v2021_v2 = vld [vmem:[#allocation5 + $0x94] sm:$0xf0]  ;;  %v2019_v5 = vld [vmem:[#allocation5 + $0x8c] sm:$0xf]  ;;  %v2412_v25 = vor.u32 %v2018_v54, %v1918_v0  ;;  %v2218_v50 = vmov 0  }
  0x2f   :  { %310 = vmatmul.bf16.vlgmr.msra.gmra.mxu0 %v2217_v32  ;;  %3240 = vst [vmem:[#allocation16_spill] sm:$0xff] %v2405_v55  ;;  %v1926_v11 = vld [vmem:[#allocation5 + $0x98] sm:$0xf0]  ;;  %v1900_v14 = vld [vmem:[#allocation5 + $0x60] sm:$0xf]  ;;  %v2414_v27 = vor.u32 %v2021_v2, %v1924_v1  ;;  %2073 = vset.pattern.permute.xlu0 %v2218_v50  ;;  %vm1978_vm0 = vcmp.gt.s32.totalorder %v2422_v41, 0 }
  0x30   :  { %514 = vmatpush.bf16.msrb.mxu0 %v2371_v60  ;;  %323 = vmatmul.bf16.vlgmr.msra.gmra.mxu1 %v2217_v32  ;;  %3241 = vst [vmem:[#allocation17_spill] sm:$0xff] %v2408_v12  ;;  %v2016_v16 = vld [vmem:[#allocation5 + $0x6c] sm:$0xf0]  ;;  %v2014_v23 = vld [vmem:[#allocation5 + $0x64] sm:$0xf]  ;;  %v2417_v38 = vor.u32 %v2019_v5, %v1926_v11  ;;  %v3179_v0 = vmov 0.0  }
  0x31   :  { %527 = vmatpush.bf16.msrb.mxu1 %v2373_v61  ;;  %336 = vmatmul.bf16.vlgmr.msra.gmra.mxu2 %v2217_v32  ;;  %3242 = vst [vmem:[#allocation18_spill] sm:$0xff] %v2412_v25  ;;  %v1908_v33 = vld [vmem:[#allocation5 + $0x68] sm:$0xf]  ;;  %v2017_v37 = vld [vmem:[#allocation5 + $0x74] sm:$0xf0]  ;;  %v2426_v54 = vor.u32 %v2016_v16, %v1900_v14  ;;  %v1979_v1 = vsel %vm1978_vm0, 1.0, %v3179_v0 }
  0x32   :  { %540 = vmatpush.bf16.msrb.mxu2 %v2375_v62  ;;  %553 = vmatpush.bf16.msrb.mxu3 %v2378_v3  ;;  %3243 = vst [vmem:[#allocation19_spill] sm:$0xff] %v2414_v27  ;;  %v2015_v40 = vld [vmem:[#allocation5 + $0x6c] sm:$0xf]  ;;  %v1910_v49 = vld [vmem:[#allocation5 + $0x78] sm:$0xf0]  ;;  %v2433_v5 = vor.u32 %v2017_v37, %v1908_v33  ;;  %vm1981_vm1 = vcmp.gt.s32.totalorder %v2422_v41, 1 }
  0x33   :  { %349 = vmatmul.bf16.vlgmr.msra.gmra.mxu3 %v2217_v32  ;;  %v1902_v32 = vld [vmem:[#allocation5 + $0x70] sm:$0xf0]  ;;  %3244 = vst [vmem:[#allocation20_spill] sm:$0xff] %v2417_v38  ;;  %2074 = vset.pattern.permute.xlu1 %v2218_v50  ;;  %v1884_v11 = vld [vmem:[#allocation5 + $0x40] sm:$0xf]  ;;  %vm1996_vm2 = vcmp.gt.s32.totalorder %v2422_v41, 6 }
  0x34   :  { %515 = vmatpush.bf16.msrb.mxu0 %v2384_v19  ;;  %3245 = vst [vmem:[#allocation21_spill] sm:$0xff] %v2422_v41  ;;  %2075 = vset.pattern.permute.xlu2 %v2218_v50  ;;  %v2431_v2 = vor.u32 %v2014_v23, %v1902_v32  ;;  %v1886_v14 = vld [vmem:[#allocation5 + $0x50] sm:$0xf0]  ;;  %v1892_v16 = vld [vmem:[#allocation5 + $0x48] sm:$0xf] }
  0x35   :  { %528 = vmatpush.bf16.msrb.mxu1 %v2388_v20  ;;  %3246 = vst [vmem:[#allocation22_spill] sm:$0xff] %v2426_v54  ;;  %605 = vperm.xlu0 %2073, %v1979_v1   ;;  %v2011_v50 = vld [vmem:[#allocation5 + $0x4c] sm:$0xf]  ;;  %v1894_v0 = vld [vmem:[#allocation5 + $0x58] sm:$0xf0] }
  0x36   :  { %541 = vmatpush.bf16.msrb.mxu2 %v2390_v21  ;;  %554 = vmatpush.bf16.msrb.mxu3 %v2393_v31  ;;  %3247 = vst [vmem:[#allocation23_spill] sm:$0xff] %v2431_v2  ;;  %v1868_v33 = vld [vmem:[#allocation5 + $0x20] sm:$0xf]  ;;  %v2008_v37 = vld [vmem:[#allocation5 + $0x2c] sm:$0xf0] }
  0x37   :  { %3248 = vst [vmem:[#allocation24_spill] sm:$0xff] %v2433_v5  ;;  %v1870_v1 = vld [vmem:[#allocation5 + $0x30] sm:$0xf0] }
  0x38   :  { %516 = vmatpush.bf16.msrb.mxu0 %v2396_v42  ;;  %v2013_v42 = vld [vmem:[#allocation5 + $0x54] sm:$0xf0] }
  0x39   :  { %529 = vmatpush.bf16.msrb.mxu1 %v2400_v43  ;;  %v2446_v32 = vor.u32 %v2013_v42, %v1892_v16  ;;  %v2004_v16 = vld [vmem:[#allocation5 + $0xc] sm:$0xf0]  ;;  %v1860_v43 = vld [vmem:[#allocation5 + $0x8] sm:$0xf] }
  0x3a   :  { %542 = vmatpush.bf16.msrb.mxu2 %v2402_v48  ;;  %555 = vmatpush.bf16.msrb.mxu3 %v2405_v55  ;;  %v2012_v55 = vld [vmem:[#allocation5 + $0x4c] sm:$0xf0]  ;;  %v2010_v48 = vld [vmem:[#allocation5 + $0x44] sm:$0xf] }
  0x3b   :  { %v2444_v23 = vor.u32 %v2010_v48, %v1886_v14  ;;  %3252 = vst [vmem:[#allocation28_spill] sm:$0xff] %v2446_v32  ;;  %v2453_v48 = vor.u32 %v2008_v37, %v1868_v33  ;;  %v2003_v33 = vld [vmem:[#allocation5 + $0xc] sm:$0xf]  ;;  %v1862_v37 = vld [vmem:[#allocation5 + $0x18] sm:$0xf0] }
  0x3c   :  { %517 = vmatpush.bf16.msrb.mxu0 %v2408_v12  ;;  %v2436_v12 = vor.u32 %v2015_v40, %v1910_v49  ;;  %v2006_v40 = vld [vmem:[#allocation5 + $0x24] sm:$0xf]  ;;  %v2449_v49 = vor.u32 %v2011_v50, %v1894_v0  ;;  %v1852_v0 = vld [vmem:[#allocation5] sm:$0xf] }
  0x3d   :  { %530 = vmatpush.bf16.msrb.mxu1 %v2412_v25  ;;  %3251 = vst [vmem:[#allocation27_spill] sm:$0xff] %v2444_v23  ;;  %v3254_v25 = vmov 0.0   ;;  %v2457_v42 = vor.u32 %v2006_v40, %v1870_v1  ;;  %v2002_v50 = vld [vmem:[#allocation5 + $0x4] sm:$0xf]  ;;  %v76_v1 = vld [vmem:[%s3161_s0] sm:$0xf] }
  0x3e   :  { %543 = vmatpush.bf16.msrb.mxu2 %v2414_v27  ;;  %556 = vmatpush.bf16.msrb.mxu3 %v2417_v38  ;;  %3249 = vst [vmem:[#allocation25_spill] sm:$0xff] %v2436_v12  ;;  %v2439_v27 = vor.u32 %v2012_v55, %v1884_v11  ;;  %v1876_v55 = vld [vmem:[#allocation5 + $0x28] sm:$0xf]  ;;  %v2009_v11 = vld [vmem:[#allocation5 + $0x34] sm:$0xf0] }
  0x3f   :  { %3253 = vst [vmem:[#allocation29_spill] sm:$0xff] %v2449_v49  ;;  %v1878_v38 = vld [vmem:[#allocation5 + $0x38] sm:$0xf0]  ;;  %v2459_v14 = vor.u32 %v2009_v11, %v1876_v55  ;;  %v3266_v55 = vld [vmem:[#allocation16_spill] sm:$0xff] }
  0x40   :  { %518 = vmatpush.bf16.msrb.mxu0 %v2426_v54  ;;  %3250 = vst [vmem:[#allocation26_spill] sm:$0xff] %v2439_v27  ;;  %v2007_v54 = vld [vmem:[#allocation5 + $0x2c] sm:$0xf]  ;;  %v3267_v11 = vld [vmem:[#allocation18_spill] sm:$0xff] }
  0x41   :  { %531 = vmatpush.bf16.msrb.mxu1 %v2431_v2  ;;  %v1982_v2 = vsel %vm1981_vm1, 1.0, %v3254_v25  ;;  %3255 = vst [vmem:[#allocation30_spill] sm:$0xff] %v2453_v48 }
  0x42   :  { %544 = vmatpush.bf16.msrb.mxu2 %v2433_v5  ;;  %557 = vmatpush.bf16.msrb.mxu3 %v2436_v12  ;;  %3256 = vst [vmem:[#allocation31_spill] sm:$0xff] %v2457_v42  ;;  %v2462_v12 = vor.u32 %v2007_v54, %v1878_v38  ;;  %v1854_v5 = vld [vmem:[#allocation5 + $0x10] sm:$0xf0]  ;;  %v2475_v54 = vor.u32 %v2003_v33, %v1862_v37  ;;  %v3271_v33 = vld [vmem:[#allocation23_spill] sm:$0xff]  ;;  %v3272_v37 = vld [vmem:[#allocation22_spill] sm:$0xff] }
  0x43   :  { %3257 = vst [vmem:[#allocation32_spill] sm:$0xff] %v2459_v14  ;;  %750 = vperm.xlu0 %2073, %v1982_v2   ;;  %v2470_v40 = vor.u32 %v2002_v50, %v1854_v5  ;;  %v1997_v2 = vsel %vm1996_vm2, 1.0, %v3254_v25  ;;  %v3265_v5 = vld [vmem:[#allocation15_spill] sm:$0xff]  ;;  %v3270_v50 = vld [vmem:[#allocation20_spill] sm:$0xff] }
  0x44   :  { %519 = vmatpush.bf16.msrb.mxu0 %v2439_v27  ;;  %3258 = vst [vmem:[#allocation33_spill] sm:$0xff] %v2462_v12  ;;  %v2005_v27 = vld [vmem:[#allocation5 + $0x14] sm:$0xf0]  ;;  %v3276_v41 = vld [vmem:[#allocation28_spill] sm:$0xff] }
  0x45   :  { %532 = vmatpush.bf16.msrb.mxu1 %v2444_v23  ;;  %3260 = vst [vmem:[#allocation35_spill] sm:$0xff] %v2470_v40  ;;  %v2472_v38 = vor.u32 %v2005_v27, %v1860_v43  ;;  %v3263_v43 = vld [vmem:[#allocation14_spill] sm:$0xff]  ;;  %v3264_v27 = vld [vmem:[#allocation13_spill] sm:$0xff] }
  0x46   :  { %545 = vmatpush.bf16.msrb.mxu2 %v2446_v32  ;;  %558 = vmatpush.bf16.msrb.mxu3 %v2449_v49  ;;  %v2465_v32 = vor.u32 %v2004_v16, %v1852_v0  ;;  %3262 = vst [vmem:[#allocation37_spill] sm:$0xff] %v2475_v54  ;;  %v3268_v0 = vld [vmem:[#allocation17_spill] sm:$0xff]  ;;  %v3269_v16 = vld [vmem:[#allocation19_spill] sm:$0xff] }
  0x47   :  { %3261 = vst [vmem:[#allocation36_spill] sm:$0xff] %v2472_v38  ;;  %v3275_v25 = vld [vmem:[#allocation26_spill] sm:$0xff] }
  0x48   :  { %520 = vmatpush.bf16.msrb.mxu0 %v2453_v48  ;;  %3259 = vst [vmem:[#allocation34_spill] sm:$0xff] %v2465_v32 }
  0x49   :  { %533 = vmatpush.bf16.msrb.mxu1 %v2457_v42 }
  0x4a   :  { %546 = vmatpush.bf16.msrb.mxu2 %v2459_v14  ;;  %559 = vmatpush.bf16.msrb.mxu3 %v2462_v12 }
  0x4b   :  { %1475 = vperm.xlu0 %2073, %v1997_v2   ;;  %v3273_v2 = vld [vmem:[#allocation24_spill] sm:$0xff] }
  0x4c   :  { %521 = vmatpush.bf16.msrb.mxu0 %v2465_v32 }
  0x4d   :  { %534 = vmatpush.bf16.msrb.mxu1 %v2470_v40 }
  0x4e   :  { %547 = vmatpush.bf16.msrb.mxu2 %v2472_v38  ;;  %560 = vmatpush.bf16.msrb.mxu3 %v2475_v54 }
  0x4f   :  { %522 = vmatmul.bf16.vlgmr.msrb.gmra.mxu0 %v76_v1 }
  0x50   :  { %535 = vmatmul.bf16.vlgmr.msrb.gmra.mxu1 %v76_v1  ;;  %616 = vmatpush.bf16.msra.mxu0 %v2279_v4 }
  0x51   :  { %629 = vmatpush.bf16.msra.mxu1 %v2281_v8  ;;  %548 = vmatmul.bf16.vlgmr.msrb.gmra.mxu2 %v76_v1 }
  0x52   :  { %561 = vmatmul.bf16.vlgmr.msrb.gmra.mxu3 %v76_v1  ;;  %642 = vmatpush.bf16.msra.mxu2 %v2283_v9  ;;  %v3274_v1 = vld [vmem:[#allocation25_spill] sm:$0xff] }
  0x53   :  { %655 = vmatpush.bf16.msra.mxu3 %v2286_v13 }
  0x54   :  { %617 = vmatpush.bf16.msra.mxu0 %v2290_v17 }
  0x55   :  { %630 = vmatpush.bf16.msra.mxu1 %v2292_v18 }
  0x56   :  { %643 = vmatpush.bf16.msra.mxu2 %v2295_v22 }
  0x57   :  { %656 = vmatpush.bf16.msra.mxu3 %v2297_v26 }
  0x58   :  { %618 = vmatpush.bf16.msra.mxu0 %v2300_v30 }
  0x59   :  { %631 = vmatpush.bf16.msra.mxu1 %v2304_v34 }
  0x5a   :  { %644 = vmatpush.bf16.msra.mxu2 %v2306_v35 }
  0x5b   :  { %657 = vmatpush.bf16.msra.mxu3 %v2309_v39 }
  0x5c   :  { %619 = vmatpush.bf16.msra.mxu0 %v2312_v45 }
  0x5d   :  { %632 = vmatpush.bf16.msra.mxu1 %v2316_v46 }
  0x5e   :  { %645 = vmatpush.bf16.msra.mxu2 %v2318_v47 }
  0x5f   :  { %658 = vmatpush.bf16.msra.mxu3 %v2321_v51 }
  0x60   :  { %620 = vmatpush.bf16.msra.mxu0 %v2324_v57 }
  0x61   :  { %633 = vmatpush.bf16.msra.mxu1 %v2328_v58 }
  0x62   :  { %646 = vmatpush.bf16.msra.mxu2 %v2330_v59 }
  0x63   :  { %659 = vmatpush.bf16.msra.mxu3 %v2333_v63 }
  0x64   :  { %621 = vmatpush.bf16.msra.mxu0 %v2336_v6 }
  0x65   :  { %634 = vmatpush.bf16.msra.mxu1 %v2340_v7 }
  0x66   :  { %647 = vmatpush.bf16.msra.mxu2 %v2342_v10 }
  0x67   :  { %660 = vmatpush.bf16.msra.mxu3 %v2345_v15 }
  0x68   :  { %622 = vmatpush.bf16.msra.mxu0 %v2348_v24 }
  0x69   :  { %635 = vmatpush.bf16.msra.mxu1 %v2352_v28 }
  0x6a   :  { %648 = vmatpush.bf16.msra.mxu2 %v2354_v29 }
  0x6b   :  { %661 = vmatpush.bf16.msra.mxu3 %v2357_v36 }
  0x6c   :  { %623 = vmatpush.bf16.msra.mxu0 %v2360_v44 }
  0x6d   :  { %636 = vmatpush.bf16.msra.mxu1 %v2364_v52 }
  0x6e   :  { %649 = vmatpush.bf16.msra.mxu2 %v2366_v53 }
  0x6f   :  { %662 = vmatpush.bf16.msra.mxu3 %v2369_v56 }
  0x70   :  { %668 = vmatpush.bf16.msrb.mxu0 %v2371_v60 }
  0x71   :  { %681 = vmatpush.bf16.msrb.mxu1 %v2373_v61 }
  0x72   :  { %694 = vmatpush.bf16.msrb.mxu2 %v2375_v62 }
  0x73   :  { %707 = vmatpush.bf16.msrb.mxu3 %v2378_v3 }
  0x74   :  { %669 = vmatpush.bf16.msrb.mxu0 %v2384_v19 }
  0x75   :  { %682 = vmatpush.bf16.msrb.mxu1 %v2388_v20 }
  0x76   :  { %695 = vmatpush.bf16.msrb.mxu2 %v2390_v21 }
  0x77   :  { %708 = vmatpush.bf16.msrb.mxu3 %v2393_v31 }
  0x78   :  { %670 = vmatpush.bf16.msrb.mxu0 %v3264_v27 }
  0x79   :  { %683 = vmatpush.bf16.msrb.mxu1 %v3263_v43 }
  0x7a   :  { %696 = vmatpush.bf16.msrb.mxu2 %v3265_v5 }
  0x7b   :  { %709 = vmatpush.bf16.msrb.mxu3 %v3266_v55 }
  0x7c   :  { %671 = vmatpush.bf16.msrb.mxu0 %v3268_v0 }
  0x7d   :  { %684 = vmatpush.bf16.msrb.mxu1 %v3267_v11 }
  0x7e   :  { %697 = vmatpush.bf16.msrb.mxu2 %v3269_v16 }
  0x7f   :  { %710 = vmatpush.bf16.msrb.mxu3 %v3270_v50 }
  0x80   :  { %672 = vmatpush.bf16.msrb.mxu0 %v3272_v37 }
  0x81   :  { %685 = vmatpush.bf16.msrb.mxu1 %v3271_v33 }
  0x82   :  { %698 = vmatpush.bf16.msrb.mxu2 %v3273_v2 }
  0x83   :  { %711 = vmatpush.bf16.msrb.mxu3 %v3274_v1 }
  0x84   :  { %673 = vmatpush.bf16.msrb.mxu0 %v3275_v25 }
  0x85   :  { %686 = vmatpush.bf16.msrb.mxu1 %v2444_v23 }
  0x86   :  { %699 = vmatpush.bf16.msrb.mxu2 %v3276_v41 }
  0x87   :  { %712 = vmatpush.bf16.msrb.mxu3 %v2449_v49 }
  0x88   :  { %674 = vmatpush.bf16.msrb.mxu0 %v2453_v48 }
  0x89   :  { %687 = vmatpush.bf16.msrb.mxu1 %v2457_v42 }
  0x8a   :  { %700 = vmatpush.bf16.msrb.mxu2 %v2459_v14 }
  0x8b   :  { %713 = vmatpush.bf16.msrb.mxu3 %v2462_v12  ;;  %v566_v12 = vld [vmem:[%s3165_s4] sm:$0xf] }
  0x8c   :  { %675 = vmatpush.bf16.msrb.mxu0 %v2465_v32  ;;  %v2552_v14 = vperm.slane %v566_v12, 0  ;;  %v2554_v32 = vperm.slane %v566_v12, 1  ;;  %v2560_v16 = vperm.slane %v566_v12, 3 }
  0x8d   :  { %688 = vmatpush.bf16.msrb.mxu1 %v2470_v40 }
  0x8e   :  { %701 = vmatpush.bf16.msrb.mxu2 %v2472_v38  ;;  %3277 = vst [vmem:[#allocation38_spill] sm:$0xff] %v2554_v32 }
  0x8f   :  { %714 = vmatpush.bf16.msrb.mxu3 %v2475_v54  ;;  %3278 = vst [vmem:[#allocation39_spill] sm:$0xff] %v2560_v16 }
  0xac   :  { %v311_v23 = vpop.f32.mrf.mxu0 }
  0xad   :  { %v324_v41 = vpop.f32.mrf.mxu1 }
  0xb4   :  { %v337_v25 = vpop.f32.mrf.mxu2  ;;  %v313_v49 = vpop.f32.mrf.mxu0 }
  0xb5   :  { %v326_v42 = vpop.f32.mrf.mxu1 }
  0xb6   :  { %v350_v1 = vpop.f32.mrf.mxu3 }
  0xbc   :  { %v339_v2 = vpop.f32.mrf.mxu2 }
  0xbd   :  { %v2558_v2 = vperm.slane %v566_v12, 2 }
  0xbe   :  { %v352_v48 = vpop.f32.mrf.mxu3 }
  0xcc   :  { %v523_v40 = vpop.f32.mrf.mxu0 }
  0xcd   :  { %v524_v38 = vadd.f32 %v523_v40, %v311_v23  ;;  %v536_v33 = vpop.f32.mrf.mxu1 }
  0xce   :  { %v537_v54 = vadd.f32 %v536_v33, %v324_v41 }
  0xcf   :  { %v576_v37 = vadd.f32 %v2552_v14, %v524_v38 }
  0xd0   :  { %v577_v49 = vadd.f32 %v2554_v32, %v537_v54 }
  0xd1   :  { %v580_v50 = vmul.f32 0.5, %v576_v37 }
  0xd2   :  { %v584_v42 = vmul.f32 0.5, %v577_v49 }
  0xd3   :  { %2078 = vtanh.f32 %v580_v50 }
  0xd4   :  { %v549_v48 = vpop.f32.mrf.mxu2  ;;  %2080 = vtanh.f32 %v584_v42  ;;  %v525_v55 = vpop.f32.mrf.mxu0 }
  0xd5   :  { %v550_v11 = vadd.f32 %v549_v48, %v337_v25  ;;  %v562_v0 = vpop.f32.mrf.mxu3  ;;  %v538_v23 = vpop.f32.mrf.mxu1 }
  0xd6   :  { %v563_v5 = vadd.f32 %v562_v0, %v350_v1  ;;  %v606_v23 = vpop.permute.xlu0 %605 }
  0xd7   :  { %v578_v41 = vadd.f32 %v2558_v2, %v550_v11 }
  0xd8   :  { %v579_v40 = vadd.f32 %v2560_v16, %v563_v5 }
  0xd9   :  { %2082 = vtanh.f32 %v578_v41  ;;  %v2079_v38 = vpop.eup %2078 }
  0xda   :  { %v589_v54 = vmul.f32 0.5, %v579_v40  ;;  %v2081_v33 = vpop.eup %2080  ;;  %v582_v37 = vmul.f32 0.5, %v2079_v38 }
  0xdb   :  { %v586_v49 = vmul.f32 0.5, %v2081_v33  ;;  %v3280_v33 = vld [vmem:[#allocation16_spill] sm:$0xff] }
  0xdc   :  { %2084 = vtanh.f32 %v589_v54  ;;  %v551_v50 = vpop.f32.mrf.mxu2  ;;  %v583_v12 = vadd.f32 0.5, %v582_v37  ;;  %v3281_v37 = vld [vmem:[#allocation17_spill] sm:$0xff] }
  0xdd   :  { %v564_v32 = vpop.f32.mrf.mxu3  ;;  %v587_v42 = vadd.f32 0.5, %v586_v49  ;;  %v3282_v49 = vld [vmem:[#allocation18_spill] sm:$0xff]  ;;  %v3283_v50 = vld [vmem:[#allocation19_spill] sm:$0xff] }
  0xde   :  { %v1980_v32 = vld [vmem:[%s3161_s0 + $0x4] sm:$0xf] }
  0xdf   :  { %v2083_v25 = vpop.eup %2082  ;;  %v593_v48 = vmul.f32 0.0, %v587_v42  ;;  %v3285_v42 = vld [vmem:[#allocation22_spill] sm:$0xff] }
  0xe0   :  { %v594_v55 = vmul.f32 %v2083_v25, %v583_v12  ;;  %v3284_v12 = vld [vmem:[#allocation20_spill] sm:$0xff]  ;;  %v3286_v25 = vld [vmem:[#allocation23_spill] sm:$0xff] }
  0xe2   :  { %v2085_v0 = vpop.eup %2084  ;;  %v595_v1 = vadd.f32 %v594_v55, %v593_v48  ;;  %v3287_v48 = vld [vmem:[#allocation24_spill] sm:$0xff]  ;;  %v3288_v55 = vld [vmem:[#allocation25_spill] sm:$0xff] }
  0xe3   :  { %v591_v5 = vmul.f32 0.5, %v2085_v0  ;;  %v3289_v0 = vld [vmem:[#allocation26_spill] sm:$0xff] }
  0xe4   :  { %2086 = vtanh.f32 %v595_v1  ;;  %v2564_v11 = vmul.f32 %v606_v23, %v595_v1  ;;  %v3290_v1 = vld [vmem:[#allocation27_spill] sm:$0xff] }
  0xe5   :  { %v592_v41 = vadd.f32 0.5, %v591_v5  ;;  %v3292_v5 = vld [vmem:[#allocation29_spill] sm:$0xff] }
  0xea   :  { %v2087_v40 = vpop.eup %2086 }
  0xeb   :  { %v597_v16 = vmul.f32 %v2087_v40, %v592_v41  ;;  %v3293_v41 = vld [vmem:[#allocation30_spill] sm:$0xff]  ;;  %v3294_v40 = vld [vmem:[#allocation31_spill] sm:$0xff] }
  0xed   :  { %v2566_v38 = vmul.f32 %v606_v23, %v597_v16  ;;  %v3279_v16 = vld [vmem:[#allocation15_spill] sm:$0xff]  ;;  %v3291_v23 = vld [vmem:[#allocation28_spill] sm:$0xff] }
  0xef   :  { %v615_v54 = vpack.c.bf16 %v2566_v38, %v2566_v38 }
  0xf1   :  { %624 = vmatmul.bf16.vlgmr.msra.gmra.mxu0 %v615_v54  ;;  %637 = vmatmul.bf16.vlgmr.msra.gmra.mxu1 %v615_v54 }
  0xf2   :  { %650 = vmatmul.bf16.vlgmr.msra.gmra.mxu2 %v615_v54  ;;  %663 = vmatmul.bf16.vlgmr.msra.gmra.mxu3 %v615_v54  ;;  %v3295_v54 = vld [vmem:[#allocation32_spill] sm:$0xff] }
  0xf3   :  { %761 = vmatpush.bf16.msra.mxu0 %v2279_v4  ;;  %774 = vmatpush.bf16.msra.mxu1 %v2281_v8 }
  0xf4   :  { %787 = vmatpush.bf16.msra.mxu2 %v2283_v9  ;;  %800 = vmatpush.bf16.msra.mxu3 %v2286_v13 }
  0xf7   :  { %762 = vmatpush.bf16.msra.mxu0 %v2290_v17  ;;  %775 = vmatpush.bf16.msra.mxu1 %v2292_v18 }
  0xf8   :  { %788 = vmatpush.bf16.msra.mxu2 %v2295_v22  ;;  %801 = vmatpush.bf16.msra.mxu3 %v2297_v26 }
  0xfb   :  { %763 = vmatpush.bf16.msra.mxu0 %v2300_v30  ;;  %776 = vmatpush.bf16.msra.mxu1 %v2304_v34 }
  0xfc   :  { %789 = vmatpush.bf16.msra.mxu2 %v2306_v35  ;;  %802 = vmatpush.bf16.msra.mxu3 %v2309_v39 }
  0xff   :  { %764 = vmatpush.bf16.msra.mxu0 %v2312_v45  ;;  %777 = vmatpush.bf16.msra.mxu1 %v2316_v46 }
 0x100   :  { %790 = vmatpush.bf16.msra.mxu2 %v2318_v47  ;;  %803 = vmatpush.bf16.msra.mxu3 %v2321_v51 }
 0x101   :  { %676 = vmatmul.bf16.vlgmr.msrb.gmra.mxu0 %v1980_v32  ;;  %689 = vmatmul.bf16.vlgmr.msrb.gmra.mxu1 %v1980_v32 }
 0x102   :  { %702 = vmatmul.bf16.vlgmr.msrb.gmra.mxu2 %v1980_v32  ;;  %715 = vmatmul.bf16.vlgmr.msrb.gmra.mxu3 %v1980_v32  ;;  %v3296_v32 = vld [vmem:[#allocation33_spill] sm:$0xff] }
 0x103   :  { %765 = vmatpush.bf16.msra.mxu0 %v2324_v57  ;;  %778 = vmatpush.bf16.msra.mxu1 %v2328_v58 }
 0x104   :  { %791 = vmatpush.bf16.msra.mxu2 %v2330_v59  ;;  %804 = vmatpush.bf16.msra.mxu3 %v2333_v63 }
 0x107   :  { %766 = vmatpush.bf16.msra.mxu0 %v2336_v6  ;;  %779 = vmatpush.bf16.msra.mxu1 %v2340_v7 }
 0x108   :  { %792 = vmatpush.bf16.msra.mxu2 %v2342_v10  ;;  %805 = vmatpush.bf16.msra.mxu3 %v2345_v15 }
 0x10b   :  { %767 = vmatpush.bf16.msra.mxu0 %v2348_v24  ;;  %780 = vmatpush.bf16.msra.mxu1 %v2352_v28 }
 0x10c   :  { %793 = vmatpush.bf16.msra.mxu2 %v2354_v29  ;;  %806 = vmatpush.bf16.msra.mxu3 %v2357_v36 }
 0x10f   :  { %768 = vmatpush.bf16.msra.mxu0 %v2360_v44  ;;  %781 = vmatpush.bf16.msra.mxu1 %v2364_v52 }
 0x110   :  { %794 = vmatpush.bf16.msra.mxu2 %v2366_v53  ;;  %807 = vmatpush.bf16.msra.mxu3 %v2369_v56 }
 0x113   :  { %813 = vmatpush.bf16.msrb.mxu0 %v2371_v60  ;;  %826 = vmatpush.bf16.msrb.mxu1 %v2373_v61 }
 0x114   :  { %839 = vmatpush.bf16.msrb.mxu2 %v2375_v62  ;;  %852 = vmatpush.bf16.msrb.mxu3 %v2378_v3 }
 0x117   :  { %814 = vmatpush.bf16.msrb.mxu0 %v2384_v19  ;;  %827 = vmatpush.bf16.msrb.mxu1 %v2388_v20 }
 0x118   :  { %840 = vmatpush.bf16.msrb.mxu2 %v2390_v21  ;;  %853 = vmatpush.bf16.msrb.mxu3 %v2393_v31 }
 0x11b   :  { %815 = vmatpush.bf16.msrb.mxu0 %v3264_v27  ;;  %828 = vmatpush.bf16.msrb.mxu1 %v3263_v43 }
 0x11c   :  { %841 = vmatpush.bf16.msrb.mxu2 %v3279_v16  ;;  %854 = vmatpush.bf16.msrb.mxu3 %v3280_v33  ;;  %v3301_v33 = vld [vmem:[#allocation38_spill] sm:$0xff] }
 0x11f   :  { %816 = vmatpush.bf16.msrb.mxu0 %v3281_v37  ;;  %829 = vmatpush.bf16.msrb.mxu1 %v3282_v49 }
 0x120   :  { %842 = vmatpush.bf16.msrb.mxu2 %v3283_v50  ;;  %855 = vmatpush.bf16.msrb.mxu3 %v3284_v12 }
 0x123   :  { %817 = vmatpush.bf16.msrb.mxu0 %v3285_v42  ;;  %830 = vmatpush.bf16.msrb.mxu1 %v3286_v25  ;;  %v3297_v25 = vld [vmem:[#allocation34_spill] sm:$0xff] }
 0x124   :  { %843 = vmatpush.bf16.msrb.mxu2 %v3287_v48  ;;  %856 = vmatpush.bf16.msrb.mxu3 %v3288_v55  ;;  %v3298_v48 = vld [vmem:[#allocation35_spill] sm:$0xff]  ;;  %v3299_v55 = vld [vmem:[#allocation36_spill] sm:$0xff] }
 0x127   :  { %818 = vmatpush.bf16.msrb.mxu0 %v3289_v0  ;;  %831 = vmatpush.bf16.msrb.mxu1 %v3290_v1  ;;  %v3300_v0 = vld [vmem:[#allocation37_spill] sm:$0xff] }
 0x128   :  { %844 = vmatpush.bf16.msrb.mxu2 %v3291_v23  ;;  %857 = vmatpush.bf16.msrb.mxu3 %v3292_v5 }
 0x12b   :  { %819 = vmatpush.bf16.msrb.mxu0 %v3293_v41  ;;  %832 = vmatpush.bf16.msrb.mxu1 %v3294_v40 }
 0x12c   :  { %845 = vmatpush.bf16.msrb.mxu2 %v3295_v54  ;;  %858 = vmatpush.bf16.msrb.mxu3 %v3296_v32 }
 0x12f   :  { %820 = vmatpush.bf16.msrb.mxu0 %v3297_v25  ;;  %833 = vmatpush.bf16.msrb.mxu1 %v3298_v48 }
 0x130   :  { %846 = vmatpush.bf16.msrb.mxu2 %v3299_v55  ;;  %859 = vmatpush.bf16.msrb.mxu3 %v3300_v0 }
 0x16e   :  { %v625_v1 = vpop.f32.mrf.mxu0  ;;  %v638_v23 = vpop.f32.mrf.mxu1 }
 0x175   :  { %v651_v42 = vpop.f32.mrf.mxu2  ;;  %v664_v5 = vpop.f32.mrf.mxu3 }
 0x176   :  { %v627_v12 = vpop.f32.mrf.mxu0  ;;  %v640_v41 = vpop.f32.mrf.mxu1 }
 0x17d   :  { %v653_v50 = vpop.f32.mrf.mxu2  ;;  %v666_v40 = vpop.f32.mrf.mxu3 }
 0x17e   :  { %v677_v49 = vpop.f32.mrf.mxu0  ;;  %v690_v54 = vpop.f32.mrf.mxu1  ;;  %v3302_v40 = vld [vmem:[#allocation39_spill] sm:$0xff] }
 0x17f   :  { %v678_v37 = vadd.f32 %v677_v49, %v625_v1  ;;  %v691_v32 = vadd.f32 %v690_v54, %v638_v23 }
 0x181   :  { %v720_v25 = vadd.f32 %v678_v37, %v2552_v14  ;;  %v721_v48 = vadd.f32 %v691_v32, %v3301_v33 }
 0x183   :  { %v724_v16 = vmul.f32 0.5, %v720_v25  ;;  %v728_v55 = vmul.f32 0.5, %v721_v48 }
 0x185   :  { %2088 = vtanh.f32 %v724_v16  ;;  %v703_v0 = vpop.f32.mrf.mxu2  ;;  %v716_v43 = vpop.f32.mrf.mxu3 }
 0x186   :  { %2090 = vtanh.f32 %v728_v55  ;;  %v704_v27 = vadd.f32 %v703_v0, %v651_v42  ;;  %v717_v31 = vadd.f32 %v716_v43, %v664_v5  ;;  %v679_v12 = vpop.f32.mrf.mxu0  ;;  %v692_v41 = vpop.f32.mrf.mxu1 }
 0x187   :  { %v3303_v12 = vld [vmem:[#allocation21_spill] sm:$0xff] }
 0x188   :  { %v722_v50 = vadd.f32 %v704_v27, %v2558_v2  ;;  %v723_v21 = vadd.f32 %v717_v31, %v3302_v40  ;;  %v751_v27 = vpop.permute.xlu0 %750  ;;  %vm1984_vm3 = vcmp.gt.s32.totalorder %v3303_v12, 2  ;;  %vm1987_vm4 = vcmp.gt.s32.totalorder %v3303_v12, 3 }
 0x189   :  { %vm1999_vm5 = vcmp.gt.s32.totalorder %v3303_v12, 7  ;;  %v3312_v12 = vld [vmem:[#allocation18_spill] sm:$0xff] }
 0x18a   :  { %2092 = vtanh.f32 %v722_v50  ;;  %v733_v49 = vmul.f32 0.5, %v723_v21  ;;  %v3304_v50 = vmov 0.0  }
 0x18b   :  { %v2089_v1 = vpop.eup %2088 }
 0x18c   :  { %v2091_v37 = vpop.eup %2090  ;;  %v726_v23 = vmul.f32 0.5, %v2089_v1  ;;  %2094 = vtanh.f32 %v733_v49  ;;  %v1985_v49 = vsel %vm1984_vm3, 1.0, %v3304_v50 }
 0x18d   :  { %v730_v54 = vmul.f32 0.5, %v2091_v37  ;;  %v705_v25 = vpop.f32.mrf.mxu2  ;;  %v718_v16 = vpop.f32.mrf.mxu3  ;;  %895 = vperm.xlu1 %2074, %v1985_v49   ;;  %v3314_v49 = vld [vmem:[#allocation20_spill] sm:$0xff] }
 0x18e   :  { %v727_v48 = vadd.f32 0.5, %v726_v23  ;;  %v1988_v16 = vsel %vm1987_vm4, 1.0, %v3304_v50 }
 0x18f   :  { %v731_v32 = vadd.f32 0.5, %v730_v54 }
 0x190   :  { %v2093_v55 = vpop.eup %2092 }
 0x191   :  { %v737_v43 = vmul.f32 %v731_v32, %v2564_v11  ;;  %v738_v42 = vmul.f32 %v2093_v55, %v727_v48  ;;  %v2000_v55 = vsel %vm1999_vm5, 1.0, %v3304_v50  ;;  %v3324_v50 = vld [vmem:[#allocation31_spill] sm:$0xff] }
 0x192   :  { %v2095_v0 = vpop.eup %2094 }
 0x193   :  { %v739_v5 = vadd.f32 %v738_v42, %v737_v43  ;;  %v735_v21 = vmul.f32 0.5, %v2095_v0  ;;  %v3305_v43 = vld [vmem:[#allocation11_spill] sm:$0xff]  ;;  %v3306_v42 = vld [vmem:[#allocation12_spill] sm:$0xff]  ;;  %v3307_v0 = vld [vmem:[#allocation13_spill] sm:$0xff] }
 0x195   :  { %2096 = vtanh.f32 %v739_v5  ;;  %v755_v31 = vsub.f32 %v739_v5, %v2564_v11  ;;  %v736_v37 = vadd.f32 0.5, %v735_v21  ;;  %1040 = vperm.xlu1 %2074, %v1988_v16   ;;  %v3308_v5 = vld [vmem:[#allocation14_spill] sm:$0xff]  ;;  %v3311_v21 = vld [vmem:[#allocation17_spill] sm:$0xff] }
 0x196   :  { %v3319_v16 = vld [vmem:[#allocation26_spill] sm:$0xff] }
 0x197   :  { %v756_v41 = vmul.f32 %v755_v31, %v751_v27  ;;  %v3309_v31 = vld [vmem:[#allocation15_spill] sm:$0xff] }
 0x199   :  { %v2646_v1 = vadd.f32 %v756_v41, %v2564_v11  ;;  %v3313_v41 = vld [vmem:[#allocation19_spill] sm:$0xff] }
 0x19b   :  { %v2097_v23 = vpop.eup %2096 }
 0x19c   :  { %v741_v54 = vmul.f32 %v2097_v23, %v736_v37  ;;  %v3315_v37 = vld [vmem:[#allocation22_spill] sm:$0xff]  ;;  %v3316_v23 = vld [vmem:[#allocation23_spill] sm:$0xff] }
 0x19d   :  { %1620 = vperm.xlu1 %2074, %v2000_v55   ;;  %v3322_v55 = vld [vmem:[#allocation29_spill] sm:$0xff] }
 0x19e   :  { %v747_v25 = vsub.f32 %v741_v54, %v2566_v38  ;;  %v3317_v54 = vld [vmem:[#allocation24_spill] sm:$0xff] }
 0x1a0   :  { %v753_v48 = vmul.f32 %v751_v27, %v747_v25  ;;  %v3310_v27 = vld [vmem:[#allocation16_spill] sm:$0xff]  ;;  %v3318_v25 = vld [vmem:[#allocation25_spill] sm:$0xff] }
 0x1a2   :  { %v2652_v32 = vadd.f32 %v753_v48, %v2566_v38  ;;  %v1983_v38 = vld [vmem:[%s3161_s0 + $0x8] sm:$0xf] }
 0x1a3   :  { %v3320_v48 = vld [vmem:[#allocation27_spill] sm:$0xff] }
 0x1a4   :  { %v760_v11 = vpack.c.bf16 %v2652_v32, %v2652_v32 }
 0x1a6   :  { %769 = vmatmul.bf16.vlgmr.msra.gmra.mxu0 %v760_v11  ;;  %782 = vmatmul.bf16.vlgmr.msra.gmra.mxu1 %v760_v11 }
 0x1a7   :  { %795 = vmatmul.bf16.vlgmr.msra.gmra.mxu2 %v760_v11  ;;  %808 = vmatmul.bf16.vlgmr.msra.gmra.mxu3 %v760_v11  ;;  %v3321_v11 = vld [vmem:[#allocation28_spill] sm:$0xff] }
 0x1a8   :  { %906 = vmatpush.bf16.msra.mxu0 %v2279_v4  ;;  %919 = vmatpush.bf16.msra.mxu1 %v2281_v8 }
 0x1a9   :  { %932 = vmatpush.bf16.msra.mxu2 %v2283_v9  ;;  %945 = vmatpush.bf16.msra.mxu3 %v2286_v13 }
 0x1ac   :  { %907 = vmatpush.bf16.msra.mxu0 %v2290_v17  ;;  %920 = vmatpush.bf16.msra.mxu1 %v2292_v18 }
 0x1ad   :  { %933 = vmatpush.bf16.msra.mxu2 %v2295_v22  ;;  %946 = vmatpush.bf16.msra.mxu3 %v2297_v26 }
 0x1b0   :  { %908 = vmatpush.bf16.msra.mxu0 %v2300_v30  ;;  %921 = vmatpush.bf16.msra.mxu1 %v2304_v34 }
 0x1b1   :  { %934 = vmatpush.bf16.msra.mxu2 %v2306_v35  ;;  %947 = vmatpush.bf16.msra.mxu3 %v2309_v39 }
 0x1b4   :  { %909 = vmatpush.bf16.msra.mxu0 %v2312_v45  ;;  %922 = vmatpush.bf16.msra.mxu1 %v2316_v46 }
 0x1b5   :  { %935 = vmatpush.bf16.msra.mxu2 %v2318_v47  ;;  %948 = vmatpush.bf16.msra.mxu3 %v2321_v51 }
 0x1b6   :  { %821 = vmatmul.bf16.vlgmr.msrb.gmra.mxu0 %v1983_v38  ;;  %834 = vmatmul.bf16.vlgmr.msrb.gmra.mxu1 %v1983_v38 }
 0x1b7   :  { %847 = vmatmul.bf16.vlgmr.msrb.gmra.mxu2 %v1983_v38  ;;  %860 = vmatmul.bf16.vlgmr.msrb.gmra.mxu3 %v1983_v38  ;;  %v3323_v38 = vld [vmem:[#allocation30_spill] sm:$0xff] }
 0x1b8   :  { %910 = vmatpush.bf16.msra.mxu0 %v2324_v57  ;;  %923 = vmatpush.bf16.msra.mxu1 %v2328_v58 }
 0x1b9   :  { %936 = vmatpush.bf16.msra.mxu2 %v2330_v59  ;;  %949 = vmatpush.bf16.msra.mxu3 %v2333_v63 }
 0x1bc   :  { %911 = vmatpush.bf16.msra.mxu0 %v2336_v6  ;;  %924 = vmatpush.bf16.msra.mxu1 %v2340_v7 }
 0x1bd   :  { %937 = vmatpush.bf16.msra.mxu2 %v2342_v10  ;;  %950 = vmatpush.bf16.msra.mxu3 %v2345_v15 }
 0x1c0   :  { %912 = vmatpush.bf16.msra.mxu0 %v2348_v24  ;;  %925 = vmatpush.bf16.msra.mxu1 %v2352_v28 }
 0x1c1   :  { %938 = vmatpush.bf16.msra.mxu2 %v2354_v29  ;;  %951 = vmatpush.bf16.msra.mxu3 %v2357_v36 }
 0x1c4   :  { %913 = vmatpush.bf16.msra.mxu0 %v2360_v44  ;;  %926 = vmatpush.bf16.msra.mxu1 %v2364_v52 }
 0x1c5   :  { %939 = vmatpush.bf16.msra.mxu2 %v2366_v53  ;;  %952 = vmatpush.bf16.msra.mxu3 %v2369_v56 }
 0x1c8   :  { %958 = vmatpush.bf16.msrb.mxu0 %v2371_v60  ;;  %971 = vmatpush.bf16.msrb.mxu1 %v2373_v61 }
 0x1c9   :  { %984 = vmatpush.bf16.msrb.mxu2 %v2375_v62  ;;  %997 = vmatpush.bf16.msrb.mxu3 %v2378_v3 }
 0x1cc   :  { %959 = vmatpush.bf16.msrb.mxu0 %v2384_v19  ;;  %972 = vmatpush.bf16.msrb.mxu1 %v2388_v20 }
 0x1cd   :  { %985 = vmatpush.bf16.msrb.mxu2 %v3305_v43  ;;  %998 = vmatpush.bf16.msrb.mxu3 %v3306_v42 }
 0x1d0   :  { %960 = vmatpush.bf16.msrb.mxu0 %v3307_v0  ;;  %973 = vmatpush.bf16.msrb.mxu1 %v3308_v5 }
 0x1d1   :  { %986 = vmatpush.bf16.msrb.mxu2 %v3309_v31  ;;  %999 = vmatpush.bf16.msrb.mxu3 %v3310_v27 }
 0x1d4   :  { %961 = vmatpush.bf16.msrb.mxu0 %v3311_v21  ;;  %974 = vmatpush.bf16.msrb.mxu1 %v3312_v12 }
 0x1d5   :  { %987 = vmatpush.bf16.msrb.mxu2 %v3313_v41  ;;  %1000 = vmatpush.bf16.msrb.mxu3 %v3314_v49  ;;  %v3325_v49 = vld [vmem:[#allocation32_spill] sm:$0xff] }
 0x1d8   :  { %962 = vmatpush.bf16.msrb.mxu0 %v3315_v37  ;;  %975 = vmatpush.bf16.msrb.mxu1 %v3316_v23  ;;  %v3326_v37 = vld [vmem:[#allocation33_spill] sm:$0xff]  ;;  %v3327_v23 = vld [vmem:[#allocation34_spill] sm:$0xff] }
 0x1d9   :  { %988 = vmatpush.bf16.msrb.mxu2 %v3317_v54  ;;  %1001 = vmatpush.bf16.msrb.mxu3 %v3318_v25  ;;  %v3328_v54 = vld [vmem:[#allocation35_spill] sm:$0xff]  ;;  %v3329_v25 = vld [vmem:[#allocation36_spill] sm:$0xff] }
 0x1dc   :  { %963 = vmatpush.bf16.msrb.mxu0 %v3319_v16  ;;  %976 = vmatpush.bf16.msrb.mxu1 %v3320_v48  ;;  %v3330_v16 = vld [vmem:[#allocation37_spill] sm:$0xff] }
 0x1dd   :  { %989 = vmatpush.bf16.msrb.mxu2 %v3321_v11  ;;  %1002 = vmatpush.bf16.msrb.mxu3 %v3322_v55 }
 0x1e0   :  { %964 = vmatpush.bf16.msrb.mxu0 %v3323_v38  ;;  %977 = vmatpush.bf16.msrb.mxu1 %v3324_v50 }
 0x1e1   :  { %990 = vmatpush.bf16.msrb.mxu2 %v3325_v49  ;;  %1003 = vmatpush.bf16.msrb.mxu3 %v3326_v37 }
 0x1e4   :  { %965 = vmatpush.bf16.msrb.mxu0 %v3327_v23  ;;  %978 = vmatpush.bf16.msrb.mxu1 %v3328_v54 }
 0x1e5   :  { %991 = vmatpush.bf16.msrb.mxu2 %v3329_v25  ;;  %1004 = vmatpush.bf16.msrb.mxu3 %v3330_v16 }
 0x223   :  { %v770_v48 = vpop.f32.mrf.mxu0  ;;  %v783_v11 = vpop.f32.mrf.mxu1 }
 0x22a   :  { %v796_v41 = vpop.f32.mrf.mxu2  ;;  %v809_v55 = vpop.f32.mrf.mxu3 }
 0x22b   :  { %v772_v12 = vpop.f32.mrf.mxu0  ;;  %v785_v38 = vpop.f32.mrf.mxu1 }
 0x232   :  { %v798_v21 = vpop.f32.mrf.mxu2  ;;  %v811_v50 = vpop.f32.mrf.mxu3 }
 0x233   :  { %v822_v27 = vpop.f32.mrf.mxu0  ;;  %v835_v49 = vpop.f32.mrf.mxu1 }
 0x234   :  { %v823_v31 = vadd.f32 %v822_v27, %v770_v48  ;;  %v836_v37 = vadd.f32 %v835_v49, %v783_v11 }
 0x236   :  { %v865_v23 = vadd.f32 %v823_v31, %v2552_v14  ;;  %v866_v54 = vadd.f32 %v836_v37, %v3301_v33 }
 0x238   :  { %v869_v5 = vmul.f32 0.5, %v865_v23  ;;  %v873_v25 = vmul.f32 0.5, %v866_v54 }
 0x23a   :  { %2098 = vtanh.f32 %v869_v5  ;;  %v848_v16 = vpop.f32.mrf.mxu2  ;;  %v861_v0 = vpop.f32.mrf.mxu3 }
 0x23b   :  { %2100 = vtanh.f32 %v873_v25  ;;  %v849_v42 = vadd.f32 %v848_v16, %v796_v41  ;;  %v862_v43 = vadd.f32 %v861_v0, %v809_v55  ;;  %v824_v12 = vpop.f32.mrf.mxu0  ;;  %v837_v38 = vpop.f32.mrf.mxu1 }
 0x23c   :  { %v896_v12 = vpop.permute.xlu1 %895 }
 0x23d   :  { %v867_v50 = vadd.f32 %v849_v42, %v2558_v2  ;;  %v868_v21 = vadd.f32 %v862_v43, %v3302_v40 }
 0x23f   :  { %2102 = vtanh.f32 %v867_v50  ;;  %v878_v27 = vmul.f32 0.5, %v868_v21 }
 0x240   :  { %v2099_v49 = vpop.eup %2098 }
 0x241   :  { %v2101_v31 = vpop.eup %2100  ;;  %v871_v48 = vmul.f32 0.5, %v2099_v49  ;;  %2104 = vtanh.f32 %v878_v27 }
 0x242   :  { %v875_v37 = vmul.f32 0.5, %v2101_v31  ;;  %v850_v23 = vpop.f32.mrf.mxu2  ;;  %v863_v5 = vpop.f32.mrf.mxu3 }
 0x243   :  { %v872_v54 = vadd.f32 0.5, %v871_v48  ;;  %v3332_v5 = vld [vmem:[#allocation12_spill] sm:$0xff] }
 0x244   :  { %v876_v11 = vadd.f32 0.5, %v875_v37 }
 0x245   :  { %v2103_v25 = vpop.eup %2102 }
 0x246   :  { %v882_v0 = vmul.f32 %v876_v11, %v2646_v1  ;;  %v883_v41 = vmul.f32 %v2103_v25, %v872_v54  ;;  %v3333_v54 = vld [vmem:[#allocation13_spill] sm:$0xff]  ;;  %v3334_v11 = vld [vmem:[#allocation14_spill] sm:$0xff]  ;;  %v3335_v25 = vld [vmem:[#allocation15_spill] sm:$0xff] }
 0x247   :  { %v2105_v16 = vpop.eup %2104 }
 0x248   :  { %v884_v55 = vadd.f32 %v883_v41, %v882_v0  ;;  %v880_v42 = vmul.f32 0.5, %v2105_v16  ;;  %v3336_v0 = vld [vmem:[#allocation16_spill] sm:$0xff]  ;;  %v3337_v41 = vld [vmem:[#allocation17_spill] sm:$0xff]  ;;  %v3338_v16 = vld [vmem:[#allocation18_spill] sm:$0xff] }
 0x24a   :  { %2106 = vtanh.f32 %v884_v55  ;;  %v900_v43 = vsub.f32 %v884_v55, %v2646_v1  ;;  %v881_v21 = vadd.f32 0.5, %v880_v42  ;;  %v3339_v55 = vld [vmem:[#allocation19_spill] sm:$0xff]  ;;  %v3341_v42 = vld [vmem:[#allocation22_spill] sm:$0xff] }
 0x24c   :  { %v901_v38 = vmul.f32 %v900_v43, %v896_v12  ;;  %v3340_v43 = vld [vmem:[#allocation20_spill] sm:$0xff] }
 0x24e   :  { %v2732_v50 = vadd.f32 %v901_v38, %v2646_v1  ;;  %v1986_v1 = vld [vmem:[%s3161_s0 + $0xc] sm:$0xf] }
 0x24f   :  { %v3343_v38 = vld [vmem:[#allocation24_spill] sm:$0xff] }
 0x250   :  { %v2107_v27 = vpop.eup %2106 }
 0x251   :  { %v886_v49 = vmul.f32 %v2107_v27, %v881_v21  ;;  %v3344_v21 = vld [vmem:[#allocation25_spill] sm:$0xff]  ;;  %v3345_v27 = vld [vmem:[#allocation26_spill] sm:$0xff] }
 0x253   :  { %v892_v31 = vsub.f32 %v886_v49, %v2652_v32  ;;  %v3346_v49 = vld [vmem:[#allocation27_spill] sm:$0xff] }
 0x255   :  { %v898_v48 = vmul.f32 %v896_v12, %v892_v31  ;;  %v3342_v12 = vld [vmem:[#allocation23_spill] sm:$0xff]  ;;  %v3347_v31 = vld [vmem:[#allocation28_spill] sm:$0xff] }
 0x257   :  { %v2736_v37 = vadd.f32 %v898_v48, %v2652_v32  ;;  %v3331_v32 = vld [vmem:[#allocation11_spill] sm:$0xff]  ;;  %v3348_v48 = vld [vmem:[#allocation29_spill] sm:$0xff] }
 0x259   :  { %v905_v23 = vpack.c.bf16 %v2736_v37, %v2736_v37 }
 0x25b   :  { %914 = vmatmul.bf16.vlgmr.msra.gmra.mxu0 %v905_v23  ;;  %927 = vmatmul.bf16.vlgmr.msra.gmra.mxu1 %v905_v23 }
 0x25c   :  { %940 = vmatmul.bf16.vlgmr.msra.gmra.mxu2 %v905_v23  ;;  %953 = vmatmul.bf16.vlgmr.msra.gmra.mxu3 %v905_v23  ;;  %v3349_v23 = vld [vmem:[#allocation30_spill] sm:$0xff] }
 0x25d   :  { %1051 = vmatpush.bf16.msra.mxu0 %v2279_v4  ;;  %1064 = vmatpush.bf16.msra.mxu1 %v2281_v8 }
 0x25e   :  { %1077 = vmatpush.bf16.msra.mxu2 %v2283_v9  ;;  %1090 = vmatpush.bf16.msra.mxu3 %v2286_v13 }
 0x261   :  { %1052 = vmatpush.bf16.msra.mxu0 %v2290_v17  ;;  %1065 = vmatpush.bf16.msra.mxu1 %v2292_v18 }
 0x262   :  { %1078 = vmatpush.bf16.msra.mxu2 %v2295_v22  ;;  %1091 = vmatpush.bf16.msra.mxu3 %v2297_v26 }
 0x265   :  { %1053 = vmatpush.bf16.msra.mxu0 %v2300_v30  ;;  %1066 = vmatpush.bf16.msra.mxu1 %v2304_v34 }
 0x266   :  { %1079 = vmatpush.bf16.msra.mxu2 %v2306_v35  ;;  %1092 = vmatpush.bf16.msra.mxu3 %v2309_v39 }
 0x269   :  { %1054 = vmatpush.bf16.msra.mxu0 %v2312_v45  ;;  %1067 = vmatpush.bf16.msra.mxu1 %v2316_v46 }
 0x26a   :  { %1080 = vmatpush.bf16.msra.mxu2 %v2318_v47  ;;  %1093 = vmatpush.bf16.msra.mxu3 %v2321_v51 }
 0x26b   :  { %966 = vmatmul.bf16.vlgmr.msrb.gmra.mxu0 %v1986_v1  ;;  %979 = vmatmul.bf16.vlgmr.msrb.gmra.mxu1 %v1986_v1 }
 0x26c   :  { %992 = vmatmul.bf16.vlgmr.msrb.gmra.mxu2 %v1986_v1  ;;  %1005 = vmatmul.bf16.vlgmr.msrb.gmra.mxu3 %v1986_v1  ;;  %v3350_v1 = vld [vmem:[#allocation31_spill] sm:$0xff] }
 0x26d   :  { %1055 = vmatpush.bf16.msra.mxu0 %v2324_v57  ;;  %1068 = vmatpush.bf16.msra.mxu1 %v2328_v58 }
 0x26e   :  { %1081 = vmatpush.bf16.msra.mxu2 %v2330_v59  ;;  %1094 = vmatpush.bf16.msra.mxu3 %v2333_v63 }
 0x271   :  { %1056 = vmatpush.bf16.msra.mxu0 %v2336_v6  ;;  %1069 = vmatpush.bf16.msra.mxu1 %v2340_v7 }
 0x272   :  { %1082 = vmatpush.bf16.msra.mxu2 %v2342_v10  ;;  %1095 = vmatpush.bf16.msra.mxu3 %v2345_v15 }
 0x275   :  { %1057 = vmatpush.bf16.msra.mxu0 %v2348_v24  ;;  %1070 = vmatpush.bf16.msra.mxu1 %v2352_v28 }
 0x276   :  { %1083 = vmatpush.bf16.msra.mxu2 %v2354_v29  ;;  %1096 = vmatpush.bf16.msra.mxu3 %v2357_v36 }
 0x279   :  { %1058 = vmatpush.bf16.msra.mxu0 %v2360_v44  ;;  %1071 = vmatpush.bf16.msra.mxu1 %v2364_v52 }
 0x27a   :  { %1084 = vmatpush.bf16.msra.mxu2 %v2366_v53  ;;  %1097 = vmatpush.bf16.msra.mxu3 %v2369_v56 }
 0x27d   :  { %1103 = vmatpush.bf16.msrb.mxu0 %v2371_v60  ;;  %1116 = vmatpush.bf16.msrb.mxu1 %v2373_v61 }
 0x27e   :  { %1129 = vmatpush.bf16.msrb.mxu2 %v2375_v62  ;;  %1142 = vmatpush.bf16.msrb.mxu3 %v2378_v3 }
 0x281   :  { %1104 = vmatpush.bf16.msrb.mxu0 %v2384_v19  ;;  %1117 = vmatpush.bf16.msrb.mxu1 %v2388_v20 }
 0x282   :  { %1130 = vmatpush.bf16.msrb.mxu2 %v3331_v32  ;;  %1143 = vmatpush.bf16.msrb.mxu3 %v3332_v5 }
 0x285   :  { %1105 = vmatpush.bf16.msrb.mxu0 %v3333_v54  ;;  %1118 = vmatpush.bf16.msrb.mxu1 %v3334_v11 }
 0x286   :  { %1131 = vmatpush.bf16.msrb.mxu2 %v3335_v25  ;;  %1144 = vmatpush.bf16.msrb.mxu3 %v3336_v0 }
 0x289   :  { %1106 = vmatpush.bf16.msrb.mxu0 %v3337_v41  ;;  %1119 = vmatpush.bf16.msrb.mxu1 %v3338_v16 }
 0x28a   :  { %1132 = vmatpush.bf16.msrb.mxu2 %v3339_v55  ;;  %1145 = vmatpush.bf16.msrb.mxu3 %v3340_v43  ;;  %v3351_v43 = vld [vmem:[#allocation32_spill] sm:$0xff] }
 0x28d   :  { %1107 = vmatpush.bf16.msrb.mxu0 %v3341_v42  ;;  %1120 = vmatpush.bf16.msrb.mxu1 %v3342_v12  ;;  %v3352_v42 = vld [vmem:[#allocation33_spill] sm:$0xff]  ;;  %v3353_v12 = vld [vmem:[#allocation34_spill] sm:$0xff] }
 0x28e   :  { %1133 = vmatpush.bf16.msrb.mxu2 %v3343_v38  ;;  %1146 = vmatpush.bf16.msrb.mxu3 %v3344_v21  ;;  %v3354_v38 = vld [vmem:[#allocation35_spill] sm:$0xff]  ;;  %v3355_v21 = vld [vmem:[#allocation36_spill] sm:$0xff] }
 0x291   :  { %1108 = vmatpush.bf16.msrb.mxu0 %v3345_v27  ;;  %1121 = vmatpush.bf16.msrb.mxu1 %v3346_v49  ;;  %v3356_v27 = vld [vmem:[#allocation37_spill] sm:$0xff] }
 0x292   :  { %1134 = vmatpush.bf16.msrb.mxu2 %v3347_v31  ;;  %1147 = vmatpush.bf16.msrb.mxu3 %v3348_v48 }
 0x295   :  { %1109 = vmatpush.bf16.msrb.mxu0 %v3349_v23  ;;  %1122 = vmatpush.bf16.msrb.mxu1 %v3350_v1 }
 0x296   :  { %1135 = vmatpush.bf16.msrb.mxu2 %v3351_v43  ;;  %1148 = vmatpush.bf16.msrb.mxu3 %v3352_v42 }
 0x299   :  { %1110 = vmatpush.bf16.msrb.mxu0 %v3353_v12  ;;  %1123 = vmatpush.bf16.msrb.mxu1 %v3354_v38 }
 0x29a   :  { %1136 = vmatpush.bf16.msrb.mxu2 %v3355_v21  ;;  %1149 = vmatpush.bf16.msrb.mxu3 %v3356_v27 }
 0x2d8   :  { %v915_v49 = vpop.f32.mrf.mxu0  ;;  %v928_v31 = vpop.f32.mrf.mxu1 }
 0x2df   :  { %v941_v55 = vpop.f32.mrf.mxu2  ;;  %v954_v48 = vpop.f32.mrf.mxu3 }
 0x2e0   :  { %v917_v16 = vpop.f32.mrf.mxu0  ;;  %v930_v23 = vpop.f32.mrf.mxu1 }
 0x2e7   :  { %v943_v41 = vpop.f32.mrf.mxu2  ;;  %v956_v1 = vpop.f32.mrf.mxu3 }
 0x2e8   :  { %v967_v0 = vpop.f32.mrf.mxu0  ;;  %v980_v43 = vpop.f32.mrf.mxu1 }
 0x2e9   :  { %v968_v25 = vadd.f32 %v967_v0, %v915_v49  ;;  %v981_v42 = vadd.f32 %v980_v43, %v928_v31 }
 0x2eb   :  { %v1010_v12 = vadd.f32 %v968_v25, %v2552_v14  ;;  %v1011_v38 = vadd.f32 %v981_v42, %v3301_v33 }
 0x2ed   :  { %v1014_v11 = vmul.f32 0.5, %v1010_v12  ;;  %v1018_v21 = vmul.f32 0.5, %v1011_v38 }
 0x2ef   :  { %2108 = vtanh.f32 %v1014_v11  ;;  %v993_v27 = vpop.f32.mrf.mxu2  ;;  %v1006_v54 = vpop.f32.mrf.mxu3 }
 0x2f0   :  { %2110 = vtanh.f32 %v1018_v21  ;;  %v994_v5 = vadd.f32 %v993_v27, %v941_v55  ;;  %v1007_v32 = vadd.f32 %v1006_v54, %v954_v48  ;;  %v969_v16 = vpop.f32.mrf.mxu0  ;;  %v982_v23 = vpop.f32.mrf.mxu1 }
 0x2f1   :  { %v2160_v23 = vld [vmem:[%s3162_s1] sm:$0xff] }
 0x2f2   :  { %v1012_v41 = vadd.f32 %v994_v5, %v2558_v2  ;;  %v1013_v1 = vadd.f32 %v1007_v32, %v3302_v40  ;;  %v1041_v5 = vpop.permute.xlu1 %1040  ;;  %vm1990_vm6 = vcmp.gt.s32.totalorder %v2160_v23, 4  ;;  %vm1993_vm7 = vcmp.gt.s32.totalorder %v2160_v23, 5  ;;  %v3366_v23 = vld [vmem:[#allocation19_spill] sm:$0xff] }
 0x2f4   :  { %2112 = vtanh.f32 %v1012_v41  ;;  %v1023_v0 = vmul.f32 0.5, %v1013_v1  ;;  %v3357_v1 = vmov 0.0  }
 0x2f5   :  { %v2109_v43 = vpop.eup %2108 }
 0x2f6   :  { %v2111_v25 = vpop.eup %2110  ;;  %v1016_v49 = vmul.f32 0.5, %v2109_v43  ;;  %2114 = vtanh.f32 %v1023_v0  ;;  %v1991_v0 = vsel %vm1990_vm6, 1.0, %v3357_v1 }
 0x2f7   :  { %v1020_v42 = vmul.f32 0.5, %v2111_v25  ;;  %v995_v12 = vpop.f32.mrf.mxu2  ;;  %v1008_v11 = vpop.f32.mrf.mxu3  ;;  %1185 = vperm.xlu2 %2075, %v1991_v0   ;;  %v3369_v0 = vld [vmem:[#allocation23_spill] sm:$0xff] }
 0x2f8   :  { %v1017_v38 = vadd.f32 0.5, %v1016_v49  ;;  %v1994_v11 = vsel %vm1993_vm7, 1.0, %v3357_v1  ;;  %v3368_v1 = vld [vmem:[#allocation22_spill] sm:$0xff] }
 0x2f9   :  { %v1021_v31 = vadd.f32 0.5, %v1020_v42 }
 0x2fa   :  { %v2113_v21 = vpop.eup %2112 }
 0x2fb   :  { %v1027_v54 = vmul.f32 %v1021_v31, %v2732_v50  ;;  %v1028_v55 = vmul.f32 %v2113_v21, %v1017_v38 }
 0x2fc   :  { %v2115_v27 = vpop.eup %2114 }
 0x2fd   :  { %v1029_v48 = vadd.f32 %v1028_v55, %v1027_v54  ;;  %v1025_v16 = vmul.f32 0.5, %v2115_v27  ;;  %v3359_v54 = vld [vmem:[#allocation12_spill] sm:$0xff]  ;;  %v3360_v55 = vld [vmem:[#allocation13_spill] sm:$0xff]  ;;  %v3361_v27 = vld [vmem:[#allocation14_spill] sm:$0xff] }
 0x2ff   :  { %2116 = vtanh.f32 %v1029_v48  ;;  %v1045_v32 = vsub.f32 %v1029_v48, %v2732_v50  ;;  %v1026_v25 = vadd.f32 0.5, %v1025_v16  ;;  %1330 = vperm.xlu2 %2075, %v1994_v11   ;;  %v3362_v48 = vld [vmem:[#allocation15_spill] sm:$0xff]  ;;  %v3365_v16 = vld [vmem:[#allocation18_spill] sm:$0xff]  ;;  %v3374_v11 = vld [vmem:[#allocation28_spill] sm:$0xff] }
 0x301   :  { %v1046_v41 = vmul.f32 %v1045_v32, %v1041_v5  ;;  %v3363_v32 = vld [vmem:[#allocation16_spill] sm:$0xff] }
 0x303   :  { %v2818_v43 = vadd.f32 %v1046_v41, %v2732_v50  ;;  %v1989_v50 = vld [vmem:[%s3161_s0 + $0x10] sm:$0xf] }
 0x304   :  { %v3367_v41 = vld [vmem:[#allocation20_spill] sm:$0xff] }
 0x305   :  { %v2117_v49 = vpop.eup %2116 }
 0x306   :  { %v1031_v42 = vmul.f32 %v2117_v49, %v1026_v25  ;;  %v3370_v25 = vld [vmem:[#allocation24_spill] sm:$0xff]  ;;  %v3371_v49 = vld [vmem:[#allocation25_spill] sm:$0xff] }
 0x308   :  { %v1037_v12 = vsub.f32 %v1031_v42, %v2736_v37  ;;  %v3372_v42 = vld [vmem:[#allocation26_spill] sm:$0xff] }
 0x30a   :  { %v1043_v38 = vmul.f32 %v1041_v5, %v1037_v12  ;;  %v3364_v5 = vld [vmem:[#allocation17_spill] sm:$0xff]  ;;  %v3373_v12 = vld [vmem:[#allocation27_spill] sm:$0xff] }
 0x30c   :  { %v2823_v31 = vadd.f32 %v1043_v38, %v2736_v37  ;;  %v3358_v37 = vld [vmem:[#allocation11_spill] sm:$0xff]  ;;  %v3375_v38 = vld [vmem:[#allocation29_spill] sm:$0xff] }
 0x30e   :  { %v1050_v21 = vpack.c.bf16 %v2823_v31, %v2823_v31 }
 0x310   :  { %1059 = vmatmul.bf16.vlgmr.msra.gmra.mxu0 %v1050_v21  ;;  %1072 = vmatmul.bf16.vlgmr.msra.gmra.mxu1 %v1050_v21 }
 0x311   :  { %1085 = vmatmul.bf16.vlgmr.msra.gmra.mxu2 %v1050_v21  ;;  %1098 = vmatmul.bf16.vlgmr.msra.gmra.mxu3 %v1050_v21  ;;  %v3376_v21 = vld [vmem:[#allocation30_spill] sm:$0xff] }
 0x312   :  { %1196 = vmatpush.bf16.msra.mxu0 %v2279_v4  ;;  %1209 = vmatpush.bf16.msra.mxu1 %v2281_v8 }
 0x313   :  { %1222 = vmatpush.bf16.msra.mxu2 %v2283_v9  ;;  %1235 = vmatpush.bf16.msra.mxu3 %v2286_v13 }
 0x316   :  { %1197 = vmatpush.bf16.msra.mxu0 %v2290_v17  ;;  %1210 = vmatpush.bf16.msra.mxu1 %v2292_v18 }
 0x317   :  { %1223 = vmatpush.bf16.msra.mxu2 %v2295_v22  ;;  %1236 = vmatpush.bf16.msra.mxu3 %v2297_v26 }
 0x31a   :  { %1198 = vmatpush.bf16.msra.mxu0 %v2300_v30  ;;  %1211 = vmatpush.bf16.msra.mxu1 %v2304_v34 }
 0x31b   :  { %1224 = vmatpush.bf16.msra.mxu2 %v2306_v35  ;;  %1237 = vmatpush.bf16.msra.mxu3 %v2309_v39 }
 0x31e   :  { %1199 = vmatpush.bf16.msra.mxu0 %v2312_v45  ;;  %1212 = vmatpush.bf16.msra.mxu1 %v2316_v46 }
 0x31f   :  { %1225 = vmatpush.bf16.msra.mxu2 %v2318_v47  ;;  %1238 = vmatpush.bf16.msra.mxu3 %v2321_v51 }
 0x320   :  { %1111 = vmatmul.bf16.vlgmr.msrb.gmra.mxu0 %v1989_v50  ;;  %1124 = vmatmul.bf16.vlgmr.msrb.gmra.mxu1 %v1989_v50 }
 0x321   :  { %1137 = vmatmul.bf16.vlgmr.msrb.gmra.mxu2 %v1989_v50  ;;  %1150 = vmatmul.bf16.vlgmr.msrb.gmra.mxu3 %v1989_v50  ;;  %v3377_v50 = vld [vmem:[#allocation31_spill] sm:$0xff] }
 0x322   :  { %1200 = vmatpush.bf16.msra.mxu0 %v2324_v57  ;;  %1213 = vmatpush.bf16.msra.mxu1 %v2328_v58 }
 0x323   :  { %1226 = vmatpush.bf16.msra.mxu2 %v2330_v59  ;;  %1239 = vmatpush.bf16.msra.mxu3 %v2333_v63 }
 0x326   :  { %1201 = vmatpush.bf16.msra.mxu0 %v2336_v6  ;;  %1214 = vmatpush.bf16.msra.mxu1 %v2340_v7 }
 0x327   :  { %1227 = vmatpush.bf16.msra.mxu2 %v2342_v10  ;;  %1240 = vmatpush.bf16.msra.mxu3 %v2345_v15 }
 0x32a   :  { %1202 = vmatpush.bf16.msra.mxu0 %v2348_v24  ;;  %1215 = vmatpush.bf16.msra.mxu1 %v2352_v28 }
 0x32b   :  { %1228 = vmatpush.bf16.msra.mxu2 %v2354_v29  ;;  %1241 = vmatpush.bf16.msra.mxu3 %v2357_v36 }
 0x32e   :  { %1203 = vmatpush.bf16.msra.mxu0 %v2360_v44  ;;  %1216 = vmatpush.bf16.msra.mxu1 %v2364_v52 }
 0x32f   :  { %1229 = vmatpush.bf16.msra.mxu2 %v2366_v53  ;;  %1242 = vmatpush.bf16.msra.mxu3 %v2369_v56 }
 0x332   :  { %1248 = vmatpush.bf16.msrb.mxu0 %v2371_v60  ;;  %1261 = vmatpush.bf16.msrb.mxu1 %v2373_v61 }
 0x333   :  { %1274 = vmatpush.bf16.msrb.mxu2 %v2375_v62  ;;  %1287 = vmatpush.bf16.msrb.mxu3 %v2378_v3 }
 0x336   :  { %1249 = vmatpush.bf16.msrb.mxu0 %v2384_v19  ;;  %1262 = vmatpush.bf16.msrb.mxu1 %v2388_v20 }
 0x337   :  { %1275 = vmatpush.bf16.msrb.mxu2 %v3358_v37  ;;  %1288 = vmatpush.bf16.msrb.mxu3 %v3359_v54 }
 0x33a   :  { %1250 = vmatpush.bf16.msrb.mxu0 %v3360_v55  ;;  %1263 = vmatpush.bf16.msrb.mxu1 %v3361_v27 }
 0x33b   :  { %1276 = vmatpush.bf16.msrb.mxu2 %v3362_v48  ;;  %1289 = vmatpush.bf16.msrb.mxu3 %v3363_v32 }
 0x33e   :  { %1251 = vmatpush.bf16.msrb.mxu0 %v3364_v5  ;;  %1264 = vmatpush.bf16.msrb.mxu1 %v3365_v16 }
 0x33f   :  { %1277 = vmatpush.bf16.msrb.mxu2 %v3366_v23  ;;  %1290 = vmatpush.bf16.msrb.mxu3 %v3367_v41  ;;  %v3378_v41 = vld [vmem:[#allocation32_spill] sm:$0xff] }
 0x342   :  { %1252 = vmatpush.bf16.msrb.mxu0 %v3368_v1  ;;  %1265 = vmatpush.bf16.msrb.mxu1 %v3369_v0  ;;  %v3379_v1 = vld [vmem:[#allocation33_spill] sm:$0xff]  ;;  %v3380_v0 = vld [vmem:[#allocation34_spill] sm:$0xff] }
 0x343   :  { %1278 = vmatpush.bf16.msrb.mxu2 %v3370_v25  ;;  %1291 = vmatpush.bf16.msrb.mxu3 %v3371_v49  ;;  %v3381_v25 = vld [vmem:[#allocation35_spill] sm:$0xff]  ;;  %v3382_v49 = vld [vmem:[#allocation36_spill] sm:$0xff] }
 0x346   :  { %1253 = vmatpush.bf16.msrb.mxu0 %v3372_v42  ;;  %1266 = vmatpush.bf16.msrb.mxu1 %v3373_v12  ;;  %v3383_v42 = vld [vmem:[#allocation37_spill] sm:$0xff] }
 0x347   :  { %1279 = vmatpush.bf16.msrb.mxu2 %v3374_v11  ;;  %1292 = vmatpush.bf16.msrb.mxu3 %v3375_v38 }
 0x34a   :  { %1254 = vmatpush.bf16.msrb.mxu0 %v3376_v21  ;;  %1267 = vmatpush.bf16.msrb.mxu1 %v3377_v50 }
 0x34b   :  { %1280 = vmatpush.bf16.msrb.mxu2 %v3378_v41  ;;  %1293 = vmatpush.bf16.msrb.mxu3 %v3379_v1 }
 0x34e   :  { %1255 = vmatpush.bf16.msrb.mxu0 %v3380_v0  ;;  %1268 = vmatpush.bf16.msrb.mxu1 %v3381_v25 }
 0x34f   :  { %1281 = vmatpush.bf16.msrb.mxu2 %v3382_v49  ;;  %1294 = vmatpush.bf16.msrb.mxu3 %v3383_v42 }
 0x38d   :  { %v1060_v12 = vpop.f32.mrf.mxu0  ;;  %v1073_v11 = vpop.f32.mrf.mxu1 }
 0x394   :  { %v1086_v23 = vpop.f32.mrf.mxu2  ;;  %v1099_v38 = vpop.f32.mrf.mxu3 }
 0x395   :  { %v1062_v16 = vpop.f32.mrf.mxu0  ;;  %v1075_v21 = vpop.f32.mrf.mxu1 }
 0x39c   :  { %v1088_v5 = vpop.f32.mrf.mxu2  ;;  %v1101_v50 = vpop.f32.mrf.mxu3 }
 0x39d   :  { %v1112_v32 = vpop.f32.mrf.mxu0  ;;  %v1125_v41 = vpop.f32.mrf.mxu1 }
 0x39e   :  { %v1113_v48 = vadd.f32 %v1112_v32, %v1060_v12  ;;  %v1126_v1 = vadd.f32 %v1125_v41, %v1073_v11 }
 0x3a0   :  { %v1155_v0 = vadd.f32 %v1113_v48, %v2552_v14  ;;  %v1156_v25 = vadd.f32 %v1126_v1, %v3301_v33 }
 0x3a2   :  { %v1159_v27 = vmul.f32 0.5, %v1155_v0  ;;  %v1163_v49 = vmul.f32 0.5, %v1156_v25 }
 0x3a4   :  { %2118 = vtanh.f32 %v1159_v27  ;;  %v1138_v42 = vpop.f32.mrf.mxu2  ;;  %v1151_v55 = vpop.f32.mrf.mxu3 }
 0x3a5   :  { %2120 = vtanh.f32 %v1163_v49  ;;  %v1139_v54 = vadd.f32 %v1138_v42, %v1086_v23  ;;  %v1152_v37 = vadd.f32 %v1151_v55, %v1099_v38  ;;  %v1114_v16 = vpop.f32.mrf.mxu0  ;;  %v1127_v21 = vpop.f32.mrf.mxu1 }
 0x3a7   :  { %v1157_v5 = vadd.f32 %v1139_v54, %v2558_v2  ;;  %v1158_v50 = vadd.f32 %v1152_v37, %v3302_v40  ;;  %v1186_v54 = vpop.permute.xlu2 %1185 }
 0x3a9   :  { %2122 = vtanh.f32 %v1157_v5  ;;  %v1168_v32 = vmul.f32 0.5, %v1158_v50 }
 0x3aa   :  { %v2119_v41 = vpop.eup %2118 }
 0x3ab   :  { %v2121_v48 = vpop.eup %2120  ;;  %v1161_v12 = vmul.f32 0.5, %v2119_v41  ;;  %2124 = vtanh.f32 %v1168_v32 }
 0x3ac   :  { %v1165_v1 = vmul.f32 0.5, %v2121_v48  ;;  %v1140_v0 = vpop.f32.mrf.mxu2  ;;  %v1153_v27 = vpop.f32.mrf.mxu3 }
 0x3ad   :  { %v1162_v25 = vadd.f32 0.5, %v1161_v12  ;;  %v3385_v27 = vld [vmem:[#allocation12_spill] sm:$0xff] }
 0x3ae   :  { %v1166_v11 = vadd.f32 0.5, %v1165_v1 }
 0x3af   :  { %v2123_v49 = vpop.eup %2122 }
 0x3b0   :  { %v1172_v55 = vmul.f32 %v1166_v11, %v2818_v43  ;;  %v1173_v23 = vmul.f32 %v2123_v49, %v1162_v25  ;;  %v3386_v25 = vld [vmem:[#allocation13_spill] sm:$0xff]  ;;  %v3387_v11 = vld [vmem:[#allocation14_spill] sm:$0xff]  ;;  %v3388_v49 = vld [vmem:[#allocation15_spill] sm:$0xff] }
 0x3b1   :  { %v2125_v42 = vpop.eup %2124 }
 0x3b2   :  { %v1174_v38 = vadd.f32 %v1173_v23, %v1172_v55  ;;  %v1170_v16 = vmul.f32 0.5, %v2125_v42  ;;  %v3389_v55 = vld [vmem:[#allocation16_spill] sm:$0xff]  ;;  %v3390_v23 = vld [vmem:[#allocation17_spill] sm:$0xff]  ;;  %v3391_v42 = vld [vmem:[#allocation18_spill] sm:$0xff] }
 0x3b4   :  { %2126 = vtanh.f32 %v1174_v38  ;;  %v1190_v37 = vsub.f32 %v1174_v38, %v2818_v43  ;;  %v1171_v50 = vadd.f32 0.5, %v1170_v16  ;;  %v3392_v38 = vld [vmem:[#allocation19_spill] sm:$0xff] }
 0x3b5   :  { %v3395_v16 = vld [vmem:[#allocation23_spill] sm:$0xff] }
 0x3b6   :  { %v1191_v21 = vmul.f32 %v1190_v37, %v1186_v54  ;;  %v3394_v37 = vld [vmem:[#allocation22_spill] sm:$0xff] }
 0x3b8   :  { %v2901_v5 = vadd.f32 %v1191_v21, %v2818_v43  ;;  %v1992_v43 = vld [vmem:[%s3161_s0 + $0x14] sm:$0xf]  ;;  %v3396_v21 = vld [vmem:[#allocation24_spill] sm:$0xff] }
 0x3ba   :  { %v2127_v32 = vpop.eup %2126 }
 0x3bb   :  { %v1176_v41 = vmul.f32 %v2127_v32, %v1171_v50  ;;  %v3397_v50 = vld [vmem:[#allocation25_spill] sm:$0xff]  ;;  %v3398_v32 = vld [vmem:[#allocation26_spill] sm:$0xff] }
 0x3bd   :  { %v1182_v48 = vsub.f32 %v1176_v41, %v2823_v31  ;;  %v3399_v41 = vld [vmem:[#allocation27_spill] sm:$0xff] }
 0x3bf   :  { %v1188_v12 = vmul.f32 %v1186_v54, %v1182_v48  ;;  %v3393_v54 = vld [vmem:[#allocation20_spill] sm:$0xff] }
 0x3c0   :  { %v3400_v48 = vld [vmem:[#allocation28_spill] sm:$0xff] }
 0x3c1   :  { %v2905_v1 = vadd.f32 %v1188_v12, %v2823_v31  ;;  %v3384_v31 = vld [vmem:[#allocation11_spill] sm:$0xff]  ;;  %v3401_v12 = vld [vmem:[#allocation29_spill] sm:$0xff] }
 0x3c3   :  { %v1195_v0 = vpack.c.bf16 %v2905_v1, %v2905_v1 }
 0x3c5   :  { %1204 = vmatmul.bf16.vlgmr.msra.gmra.mxu0 %v1195_v0  ;;  %1217 = vmatmul.bf16.vlgmr.msra.gmra.mxu1 %v1195_v0 }
 0x3c6   :  { %1230 = vmatmul.bf16.vlgmr.msra.gmra.mxu2 %v1195_v0  ;;  %1243 = vmatmul.bf16.vlgmr.msra.gmra.mxu3 %v1195_v0  ;;  %v3402_v0 = vld [vmem:[#allocation30_spill] sm:$0xff] }
 0x3c7   :  { %1341 = vmatpush.bf16.msra.mxu0 %v2279_v4  ;;  %1354 = vmatpush.bf16.msra.mxu1 %v2281_v8 }
 0x3c8   :  { %1367 = vmatpush.bf16.msra.mxu2 %v2283_v9  ;;  %1380 = vmatpush.bf16.msra.mxu3 %v2286_v13 }
 0x3cb   :  { %1342 = vmatpush.bf16.msra.mxu0 %v2290_v17  ;;  %1355 = vmatpush.bf16.msra.mxu1 %v2292_v18 }
 0x3cc   :  { %1368 = vmatpush.bf16.msra.mxu2 %v2295_v22  ;;  %1381 = vmatpush.bf16.msra.mxu3 %v2297_v26 }
 0x3cf   :  { %1343 = vmatpush.bf16.msra.mxu0 %v2300_v30  ;;  %1356 = vmatpush.bf16.msra.mxu1 %v2304_v34 }
 0x3d0   :  { %1369 = vmatpush.bf16.msra.mxu2 %v2306_v35  ;;  %1382 = vmatpush.bf16.msra.mxu3 %v2309_v39 }
 0x3d3   :  { %1344 = vmatpush.bf16.msra.mxu0 %v2312_v45  ;;  %1357 = vmatpush.bf16.msra.mxu1 %v2316_v46 }
 0x3d4   :  { %1370 = vmatpush.bf16.msra.mxu2 %v2318_v47  ;;  %1383 = vmatpush.bf16.msra.mxu3 %v2321_v51 }
 0x3d5   :  { %1256 = vmatmul.bf16.vlgmr.msrb.gmra.mxu0 %v1992_v43  ;;  %1269 = vmatmul.bf16.vlgmr.msrb.gmra.mxu1 %v1992_v43 }
 0x3d6   :  { %1282 = vmatmul.bf16.vlgmr.msrb.gmra.mxu2 %v1992_v43  ;;  %1295 = vmatmul.bf16.vlgmr.msrb.gmra.mxu3 %v1992_v43  ;;  %v3403_v43 = vld [vmem:[#allocation31_spill] sm:$0xff] }
 0x3d7   :  { %1345 = vmatpush.bf16.msra.mxu0 %v2324_v57  ;;  %1358 = vmatpush.bf16.msra.mxu1 %v2328_v58 }
 0x3d8   :  { %1371 = vmatpush.bf16.msra.mxu2 %v2330_v59  ;;  %1384 = vmatpush.bf16.msra.mxu3 %v2333_v63 }
 0x3db   :  { %1346 = vmatpush.bf16.msra.mxu0 %v2336_v6  ;;  %1359 = vmatpush.bf16.msra.mxu1 %v2340_v7 }
 0x3dc   :  { %1372 = vmatpush.bf16.msra.mxu2 %v2342_v10  ;;  %1385 = vmatpush.bf16.msra.mxu3 %v2345_v15 }
 0x3df   :  { %1347 = vmatpush.bf16.msra.mxu0 %v2348_v24  ;;  %1360 = vmatpush.bf16.msra.mxu1 %v2352_v28 }
 0x3e0   :  { %1373 = vmatpush.bf16.msra.mxu2 %v2354_v29  ;;  %1386 = vmatpush.bf16.msra.mxu3 %v2357_v36 }
 0x3e3   :  { %1348 = vmatpush.bf16.msra.mxu0 %v2360_v44  ;;  %1361 = vmatpush.bf16.msra.mxu1 %v2364_v52 }
 0x3e4   :  { %1374 = vmatpush.bf16.msra.mxu2 %v2366_v53  ;;  %1387 = vmatpush.bf16.msra.mxu3 %v2369_v56 }
 0x3e7   :  { %1393 = vmatpush.bf16.msrb.mxu0 %v2371_v60  ;;  %1406 = vmatpush.bf16.msrb.mxu1 %v2373_v61 }
 0x3e8   :  { %1419 = vmatpush.bf16.msrb.mxu2 %v2375_v62  ;;  %1432 = vmatpush.bf16.msrb.mxu3 %v2378_v3 }
 0x3eb   :  { %1394 = vmatpush.bf16.msrb.mxu0 %v2384_v19  ;;  %1407 = vmatpush.bf16.msrb.mxu1 %v2388_v20 }
 0x3ec   :  { %1420 = vmatpush.bf16.msrb.mxu2 %v3384_v31  ;;  %1433 = vmatpush.bf16.msrb.mxu3 %v3385_v27 }
 0x3ef   :  { %1395 = vmatpush.bf16.msrb.mxu0 %v3386_v25  ;;  %1408 = vmatpush.bf16.msrb.mxu1 %v3387_v11 }
 0x3f0   :  { %1421 = vmatpush.bf16.msrb.mxu2 %v3388_v49  ;;  %1434 = vmatpush.bf16.msrb.mxu3 %v3389_v55 }
 0x3f3   :  { %1396 = vmatpush.bf16.msrb.mxu0 %v3390_v23  ;;  %1409 = vmatpush.bf16.msrb.mxu1 %v3391_v42 }
 0x3f4   :  { %1422 = vmatpush.bf16.msrb.mxu2 %v3392_v38  ;;  %1435 = vmatpush.bf16.msrb.mxu3 %v3393_v54  ;;  %v3404_v54 = vld [vmem:[#allocation32_spill] sm:$0xff] }
 0x3f7   :  { %1397 = vmatpush.bf16.msrb.mxu0 %v3394_v37  ;;  %1410 = vmatpush.bf16.msrb.mxu1 %v3395_v16  ;;  %v3405_v37 = vld [vmem:[#allocation33_spill] sm:$0xff]  ;;  %v3406_v16 = vld [vmem:[#allocation34_spill] sm:$0xff] }
 0x3f8   :  { %1423 = vmatpush.bf16.msrb.mxu2 %v3396_v21  ;;  %1436 = vmatpush.bf16.msrb.mxu3 %v3397_v50  ;;  %v3407_v21 = vld [vmem:[#allocation35_spill] sm:$0xff]  ;;  %v3408_v50 = vld [vmem:[#allocation36_spill] sm:$0xff] }
 0x3fb   :  { %1398 = vmatpush.bf16.msrb.mxu0 %v3398_v32  ;;  %1411 = vmatpush.bf16.msrb.mxu1 %v3399_v41  ;;  %v3409_v32 = vld [vmem:[#allocation37_spill] sm:$0xff] }
 0x3fc   :  { %1424 = vmatpush.bf16.msrb.mxu2 %v3400_v48  ;;  %1437 = vmatpush.bf16.msrb.mxu3 %v3401_v12 }
 0x3ff   :  { %1399 = vmatpush.bf16.msrb.mxu0 %v3402_v0  ;;  %1412 = vmatpush.bf16.msrb.mxu1 %v3403_v43 }
 0x400   :  { %1425 = vmatpush.bf16.msrb.mxu2 %v3404_v54  ;;  %1438 = vmatpush.bf16.msrb.mxu3 %v3405_v37 }
 0x403   :  { %1400 = vmatpush.bf16.msrb.mxu0 %v3406_v16  ;;  %1413 = vmatpush.bf16.msrb.mxu1 %v3407_v21 }
 0x404   :  { %1426 = vmatpush.bf16.msrb.mxu2 %v3408_v50  ;;  %1439 = vmatpush.bf16.msrb.mxu3 %v3409_v32 }
 0x442   :  { %v1205_v41 = vpop.f32.mrf.mxu0  ;;  %v1218_v48 = vpop.f32.mrf.mxu1 }
 0x449   :  { %v1231_v38 = vpop.f32.mrf.mxu2  ;;  %v1244_v12 = vpop.f32.mrf.mxu3 }
 0x44a   :  { %v1207_v42 = vpop.f32.mrf.mxu0  ;;  %v1220_v0 = vpop.f32.mrf.mxu1 }
 0x451   :  { %v1233_v23 = vpop.f32.mrf.mxu2  ;;  %v1246_v43 = vpop.f32.mrf.mxu3 }
 0x452   :  { %v1257_v55 = vpop.f32.mrf.mxu0  ;;  %v1270_v54 = vpop.f32.mrf.mxu1 }
 0x453   :  { %v1258_v49 = vadd.f32 %v1257_v55, %v1205_v41  ;;  %v1271_v37 = vadd.f32 %v1270_v54, %v1218_v48 }
 0x455   :  { %v1300_v16 = vadd.f32 %v1258_v49, %v2552_v14  ;;  %v1301_v21 = vadd.f32 %v1271_v37, %v3301_v33 }
 0x457   :  { %v1304_v11 = vmul.f32 0.5, %v1300_v16  ;;  %v1308_v50 = vmul.f32 0.5, %v1301_v21 }
 0x459   :  { %2128 = vtanh.f32 %v1304_v11  ;;  %v1283_v32 = vpop.f32.mrf.mxu2  ;;  %v1296_v25 = vpop.f32.mrf.mxu3 }
 0x45a   :  { %2130 = vtanh.f32 %v1308_v50  ;;  %v1284_v27 = vadd.f32 %v1283_v32, %v1231_v38  ;;  %v1297_v31 = vadd.f32 %v1296_v25, %v1244_v12  ;;  %v1259_v42 = vpop.f32.mrf.mxu0  ;;  %v1272_v0 = vpop.f32.mrf.mxu1 }
 0x45c   :  { %v1302_v23 = vadd.f32 %v1284_v27, %v2558_v2  ;;  %v1303_v43 = vadd.f32 %v1297_v31, %v3302_v40  ;;  %v1331_v27 = vpop.permute.xlu2 %1330 }
 0x45e   :  { %2132 = vtanh.f32 %v1302_v23  ;;  %v1313_v55 = vmul.f32 0.5, %v1303_v43 }
 0x45f   :  { %v2129_v54 = vpop.eup %2128 }
 0x460   :  { %v2131_v49 = vpop.eup %2130  ;;  %v1306_v41 = vmul.f32 0.5, %v2129_v54  ;;  %2134 = vtanh.f32 %v1313_v55 }
 0x461   :  { %v1310_v37 = vmul.f32 0.5, %v2131_v49  ;;  %v1285_v16 = vpop.f32.mrf.mxu2  ;;  %v1298_v11 = vpop.f32.mrf.mxu3 }
 0x462   :  { %v1307_v21 = vadd.f32 0.5, %v1306_v41 }
 0x463   :  { %v1311_v48 = vadd.f32 0.5, %v1310_v37 }
 0x464   :  { %v2133_v50 = vpop.eup %2132 }
 0x465   :  { %v1317_v25 = vmul.f32 %v1311_v48, %v2901_v5  ;;  %v1318_v38 = vmul.f32 %v2133_v50, %v1307_v21 }
 0x466   :  { %v2135_v32 = vpop.eup %2134 }
 0x467   :  { %v1319_v12 = vadd.f32 %v1318_v38, %v1317_v25  ;;  %v1315_v42 = vmul.f32 0.5, %v2135_v32 }
 0x469   :  { %2136 = vtanh.f32 %v1319_v12  ;;  %v1335_v31 = vsub.f32 %v1319_v12, %v2901_v5  ;;  %v1316_v43 = vadd.f32 0.5, %v1315_v42 }
 0x46b   :  { %v1336_v0 = vmul.f32 %v1335_v31, %v1331_v27 }
 0x46d   :  { %v2983_v23 = vadd.f32 %v1336_v0, %v2901_v5 }
 0x46f   :  { %v2137_v55 = vpop.eup %2136 }
 0x470   :  { %v1321_v54 = vmul.f32 %v2137_v55, %v1316_v43 }
 0x472   :  { %v1327_v49 = vsub.f32 %v1321_v54, %v2905_v1 }
 0x474   :  { %v1333_v41 = vmul.f32 %v1331_v27, %v1327_v49 }
 0x476   :  { %v2987_v37 = vadd.f32 %v1333_v41, %v2905_v1 }
 0x478   :  { %v1340_v16 = vpack.c.bf16 %v2987_v37, %v2987_v37 }
 0x47a   :  { %1349 = vmatmul.bf16.vlgmr.msra.gmra.mxu0 %v1340_v16  ;;  %1362 = vmatmul.bf16.vlgmr.msra.gmra.mxu1 %v1340_v16 }
 0x47b   :  { %1375 = vmatmul.bf16.vlgmr.msra.gmra.mxu2 %v1340_v16  ;;  %1388 = vmatmul.bf16.vlgmr.msra.gmra.mxu3 %v1340_v16 }
 0x47c   :  { %1486 = vmatpush.bf16.msra.mxu0 %v2279_v4  ;;  %1499 = vmatpush.bf16.msra.mxu1 %v2281_v8  ;;  %v1995_v4 = vld [vmem:[%s3161_s0 + $0x18] sm:$0xf]  ;;  %v3410_v8 = vld [vmem:[#allocation11_spill] sm:$0xff] }
 0x47d   :  { %1512 = vmatpush.bf16.msra.mxu2 %v2283_v9  ;;  %1525 = vmatpush.bf16.msra.mxu3 %v2286_v13  ;;  %v3411_v9 = vld [vmem:[#allocation12_spill] sm:$0xff]  ;;  %v3412_v13 = vld [vmem:[#allocation13_spill] sm:$0xff] }
 0x480   :  { %1487 = vmatpush.bf16.msra.mxu0 %v2290_v17  ;;  %1500 = vmatpush.bf16.msra.mxu1 %v2292_v18  ;;  %v3413_v17 = vld [vmem:[#allocation14_spill] sm:$0xff]  ;;  %v3414_v18 = vld [vmem:[#allocation15_spill] sm:$0xff] }
 0x481   :  { %1513 = vmatpush.bf16.msra.mxu2 %v2295_v22  ;;  %1526 = vmatpush.bf16.msra.mxu3 %v2297_v26  ;;  %v3415_v22 = vld [vmem:[#allocation16_spill] sm:$0xff]  ;;  %v3416_v26 = vld [vmem:[#allocation17_spill] sm:$0xff] }
 0x484   :  { %1488 = vmatpush.bf16.msra.mxu0 %v2300_v30  ;;  %1501 = vmatpush.bf16.msra.mxu1 %v2304_v34  ;;  %v3417_v30 = vld [vmem:[#allocation18_spill] sm:$0xff]  ;;  %v3418_v34 = vld [vmem:[#allocation19_spill] sm:$0xff] }
 0x485   :  { %1514 = vmatpush.bf16.msra.mxu2 %v2306_v35  ;;  %1527 = vmatpush.bf16.msra.mxu3 %v2309_v39  ;;  %v3419_v35 = vld [vmem:[#allocation20_spill] sm:$0xff]  ;;  %v3420_v39 = vld [vmem:[#allocation22_spill] sm:$0xff] }
 0x488   :  { %1489 = vmatpush.bf16.msra.mxu0 %v2312_v45  ;;  %1502 = vmatpush.bf16.msra.mxu1 %v2316_v46  ;;  %v3421_v45 = vld [vmem:[#allocation23_spill] sm:$0xff]  ;;  %v3422_v46 = vld [vmem:[#allocation24_spill] sm:$0xff] }
 0x489   :  { %1515 = vmatpush.bf16.msra.mxu2 %v2318_v47  ;;  %1528 = vmatpush.bf16.msra.mxu3 %v2321_v51  ;;  %v3423_v47 = vld [vmem:[#allocation25_spill] sm:$0xff]  ;;  %v3424_v51 = vld [vmem:[#allocation26_spill] sm:$0xff] }
 0x48a   :  { %1401 = vmatmul.bf16.vlgmr.msrb.gmra.mxu0 %v1995_v4  ;;  %1414 = vmatmul.bf16.vlgmr.msrb.gmra.mxu1 %v1995_v4 }
 0x48b   :  { %1427 = vmatmul.bf16.vlgmr.msrb.gmra.mxu2 %v1995_v4  ;;  %1440 = vmatmul.bf16.vlgmr.msrb.gmra.mxu3 %v1995_v4 }
 0x48c   :  { %1490 = vmatpush.bf16.msra.mxu0 %v2324_v57  ;;  %1503 = vmatpush.bf16.msra.mxu1 %v2328_v58  ;;  %v3425_v57 = vld [vmem:[#allocation27_spill] sm:$0xff]  ;;  %v3426_v58 = vld [vmem:[#allocation28_spill] sm:$0xff] }
 0x48d   :  { %1516 = vmatpush.bf16.msra.mxu2 %v2330_v59  ;;  %1529 = vmatpush.bf16.msra.mxu3 %v2333_v63  ;;  %v3427_v59 = vld [vmem:[#allocation29_spill] sm:$0xff]  ;;  %v3428_v63 = vld [vmem:[#allocation30_spill] sm:$0xff] }
 0x490   :  { %1491 = vmatpush.bf16.msra.mxu0 %v2336_v6  ;;  %1504 = vmatpush.bf16.msra.mxu1 %v2340_v7  ;;  %v3429_v6 = vld [vmem:[#allocation31_spill] sm:$0xff]  ;;  %v3430_v7 = vld [vmem:[#allocation32_spill] sm:$0xff] }
 0x491   :  { %1517 = vmatpush.bf16.msra.mxu2 %v2342_v10  ;;  %1530 = vmatpush.bf16.msra.mxu3 %v2345_v15  ;;  %v3431_v10 = vld [vmem:[#allocation33_spill] sm:$0xff]  ;;  %v3432_v15 = vld [vmem:[#allocation34_spill] sm:$0xff] }
 0x494   :  { %1492 = vmatpush.bf16.msra.mxu0 %v2348_v24  ;;  %1505 = vmatpush.bf16.msra.mxu1 %v2352_v28  ;;  %v3433_v24 = vld [vmem:[#allocation35_spill] sm:$0xff]  ;;  %v3434_v28 = vld [vmem:[#allocation36_spill] sm:$0xff] }
 0x495   :  { %1518 = vmatpush.bf16.msra.mxu2 %v2354_v29  ;;  %1531 = vmatpush.bf16.msra.mxu3 %v2357_v36  ;;  %v3435_v29 = vld [vmem:[#allocation37_spill] sm:$0xff] }
 0x498   :  { %1493 = vmatpush.bf16.msra.mxu0 %v2360_v44  ;;  %1506 = vmatpush.bf16.msra.mxu1 %v2364_v52 }
 0x499   :  { %1519 = vmatpush.bf16.msra.mxu2 %v2366_v53  ;;  %1532 = vmatpush.bf16.msra.mxu3 %v2369_v56 }
 0x49c   :  { %1538 = vmatpush.bf16.msrb.mxu0 %v2371_v60  ;;  %1551 = vmatpush.bf16.msrb.mxu1 %v2373_v61 }
 0x49d   :  { %1564 = vmatpush.bf16.msrb.mxu2 %v2375_v62  ;;  %1577 = vmatpush.bf16.msrb.mxu3 %v2378_v3 }
 0x4a0   :  { %1539 = vmatpush.bf16.msrb.mxu0 %v2384_v19  ;;  %1552 = vmatpush.bf16.msrb.mxu1 %v2388_v20 }
 0x4a1   :  { %1565 = vmatpush.bf16.msrb.mxu2 %v3410_v8  ;;  %1578 = vmatpush.bf16.msrb.mxu3 %v3411_v9 }
 0x4a4   :  { %1540 = vmatpush.bf16.msrb.mxu0 %v3412_v13  ;;  %1553 = vmatpush.bf16.msrb.mxu1 %v3413_v17 }
 0x4a5   :  { %1566 = vmatpush.bf16.msrb.mxu2 %v3414_v18  ;;  %1579 = vmatpush.bf16.msrb.mxu3 %v3415_v22 }
 0x4a8   :  { %1541 = vmatpush.bf16.msrb.mxu0 %v3416_v26  ;;  %1554 = vmatpush.bf16.msrb.mxu1 %v3417_v30  ;;  %v1476_v30 = vpop.permute.xlu0 %1475 }
 0x4a9   :  { %1567 = vmatpush.bf16.msrb.mxu2 %v3418_v34  ;;  %1580 = vmatpush.bf16.msrb.mxu3 %v3419_v35 }
 0x4ac   :  { %1542 = vmatpush.bf16.msrb.mxu0 %v3420_v39  ;;  %1555 = vmatpush.bf16.msrb.mxu1 %v3421_v45 }
 0x4ad   :  { %1568 = vmatpush.bf16.msrb.mxu2 %v3422_v46  ;;  %1581 = vmatpush.bf16.msrb.mxu3 %v3423_v47 }
 0x4b0   :  { %1543 = vmatpush.bf16.msrb.mxu0 %v3424_v51  ;;  %1556 = vmatpush.bf16.msrb.mxu1 %v3425_v57 }
 0x4b1   :  { %1569 = vmatpush.bf16.msrb.mxu2 %v3426_v58  ;;  %1582 = vmatpush.bf16.msrb.mxu3 %v3427_v59 }
 0x4b4   :  { %1544 = vmatpush.bf16.msrb.mxu0 %v3428_v63  ;;  %1557 = vmatpush.bf16.msrb.mxu1 %v3429_v6  ;;  %v1647_v63 = vld [vmem:[%s3166_s5 + $0x70] sm:$0xff]  ;;  %v1646_v6 = vld [vmem:[%s3166_s5 + $0x68] sm:$0xff] }
 0x4b5   :  { %1570 = vmatpush.bf16.msrb.mxu2 %v3430_v7  ;;  %1583 = vmatpush.bf16.msrb.mxu3 %v3431_v10  ;;  %v1645_v7 = vld [vmem:[%s3166_s5 + $0x60] sm:$0xff]  ;;  %v1644_v10 = vld [vmem:[%s3166_s5 + $0x58] sm:$0xff] }
 0x4b8   :  { %1545 = vmatpush.bf16.msrb.mxu0 %v3432_v15  ;;  %1558 = vmatpush.bf16.msrb.mxu1 %v3433_v24 }
 0x4b9   :  { %1571 = vmatpush.bf16.msrb.mxu2 %v3434_v28  ;;  %1584 = vmatpush.bf16.msrb.mxu3 %v3435_v29  ;;  %v1643_v28 = vld [vmem:[%s3166_s5 + $0x50] sm:$0xff]  ;;  %v1642_v29 = vld [vmem:[%s3166_s5 + $0x48] sm:$0xff] }
 0x4f7   :  { %v1350_v36 = vpop.f32.mrf.mxu0  ;;  %v1363_v44 = vpop.f32.mrf.mxu1 }
 0x4fe   :  { %v1376_v52 = vpop.f32.mrf.mxu2  ;;  %v1389_v53 = vpop.f32.mrf.mxu3 }
 0x4ff   :  { %v1352_v56 = vpop.f32.mrf.mxu0  ;;  %v1365_v60 = vpop.f32.mrf.mxu1 }
 0x506   :  { %v1378_v61 = vpop.f32.mrf.mxu2  ;;  %v1391_v62 = vpop.f32.mrf.mxu3 }
 0x507   :  { %v1402_v3 = vpop.f32.mrf.mxu0  ;;  %v1415_v19 = vpop.f32.mrf.mxu1  ;;  %v1639_v61 = vld [vmem:[%s3166_s5 + $0x30] sm:$0xff]  ;;  %v1638_v62 = vld [vmem:[%s3166_s5 + $0x28] sm:$0xff] }
 0x508   :  { %v1403_v20 = vadd.f32 %v1402_v3, %v1350_v36  ;;  %v1416_v5 = vadd.f32 %v1415_v19, %v1363_v44  ;;  %v1641_v36 = vld [vmem:[%s3166_s5 + $0x40] sm:$0xff]  ;;  %v1640_v44 = vld [vmem:[%s3166_s5 + $0x38] sm:$0xff] }
 0x509   :  { %v1637_v3 = vld [vmem:[%s3166_s5 + $0x20] sm:$0xff]  ;;  %v1636_v19 = vld [vmem:[%s3166_s5 + $0x18] sm:$0xff] }
 0x50a   :  { %v1445_v1 = vadd.f32 %v1403_v20, %v2552_v14  ;;  %v1446_v11 = vadd.f32 %v1416_v5, %v3301_v33 }
 0x50c   :  { %v1449_v21 = vmul.f32 0.5, %v1445_v1  ;;  %v1453_v48 = vmul.f32 0.5, %v1446_v11 }
 0x50e   :  { %2138 = vtanh.f32 %v1449_v21  ;;  %v1428_v50 = vpop.f32.mrf.mxu2  ;;  %v1441_v25 = vpop.f32.mrf.mxu3  ;;  %v1635_v21 = vld [vmem:[%s3166_s5 + $0x10] sm:$0xff] }
 0x50f   :  { %2140 = vtanh.f32 %v1453_v48  ;;  %v1429_v38 = vadd.f32 %v1428_v50, %v1376_v52  ;;  %v1442_v32 = vadd.f32 %v1441_v25, %v1389_v53  ;;  %v1404_v12 = vpop.f32.mrf.mxu0  ;;  %v1417_v31 = vpop.f32.mrf.mxu1  ;;  %v1634_v25 = vld [vmem:[%s3166_s5 + $0x8] sm:$0xff] }
 0x511   :  { %v1447_v27 = vadd.f32 %v1429_v38, %v2558_v2  ;;  %v1448_v42 = vadd.f32 %v1442_v32, %v3302_v40  ;;  %v1633_v38 = vld [vmem:[%s3166_s5] sm:$0xff] }
 0x513   :  { %2142 = vtanh.f32 %v1447_v27  ;;  %v1458_v0 = vmul.f32 0.5, %v1448_v42  ;;  %v1681_v42 = vld [vmem:[%s3168_s7 + $0x38] sm:$0xff] }
 0x514   :  { %v2139_v43 = vpop.eup %2138 }
 0x515   :  { %v2141_v55 = vpop.eup %2140  ;;  %v1451_v54 = vmul.f32 0.5, %v2139_v43  ;;  %2144 = vtanh.f32 %v1458_v0  ;;  %v1680_v0 = vld [vmem:[%s3168_s7 + $0x30] sm:$0xff] }
 0x516   :  { %v1455_v49 = vmul.f32 0.5, %v2141_v55  ;;  %v1430_v41 = vpop.f32.mrf.mxu2  ;;  %v1443_v16 = vpop.f32.mrf.mxu3 }
 0x517   :  { %v1452_v4 = vadd.f32 0.5, %v1451_v54  ;;  %v1679_v41 = vld [vmem:[%s3168_s7 + $0x28] sm:$0xff] }
 0x518   :  { %v1456_v8 = vadd.f32 0.5, %v1455_v49 }
 0x519   :  { %v2143_v9 = vpop.eup %2142 }
 0x51a   :  { %v1462_v13 = vmul.f32 %v1456_v8, %v2983_v23  ;;  %v1463_v17 = vmul.f32 %v2143_v9, %v1452_v4  ;;  %v1678_v8 = vld [vmem:[%s3168_s7 + $0x20] sm:$0xff] }
 0x51b   :  { %v2145_v18 = vpop.eup %2144 }
 0x51c   :  { %v1464_v22 = vadd.f32 %v1463_v17, %v1462_v13  ;;  %v1460_v34 = vmul.f32 0.5, %v2145_v18  ;;  %v1677_v13 = vld [vmem:[%s3168_s7 + $0x18] sm:$0xff] }
 0x51e   :  { %2146 = vtanh.f32 %v1464_v22  ;;  %v1480_v26 = vsub.f32 %v1464_v22, %v2983_v23  ;;  %v1461_v45 = vadd.f32 0.5, %v1460_v34 }
 0x520   :  { %v1481_v35 = vmul.f32 %v1480_v26, %v1476_v30 }
 0x522   :  { %v3065_v39 = vadd.f32 %v1481_v35, %v2983_v23  ;;  %v1998_v23 = vld [vmem:[%s3161_s0 + $0x1c] sm:$0xf] }
 0x524   :  { %v2147_v46 = vpop.eup %2146 }
 0x525   :  { %v1466_v47 = vmul.f32 %v2147_v46, %v1461_v45 }
 0x527   :  { %v1472_v51 = vsub.f32 %v1466_v47, %v2987_v37 }
 0x529   :  { %v1478_v57 = vmul.f32 %v1476_v30, %v1472_v51 }
 0x52b   :  { %v3069_v58 = vadd.f32 %v1478_v57, %v2987_v37  ;;  %v1648_v37 = vld [vmem:[%s3166_s5 + $0x78] sm:$0xff] }
 0x52d   :  { %v1485_v59 = vpack.c.bf16 %v3069_v58, %v3069_v58 }
 0x52f   :  { %1494 = vmatmul.bf16.vlgmr.msra.gmra.mxu0 %v1485_v59  ;;  %1507 = vmatmul.bf16.vlgmr.msra.gmra.mxu1 %v1485_v59 }
 0x530   :  { %1520 = vmatmul.bf16.vlgmr.msra.gmra.mxu2 %v1485_v59  ;;  %1533 = vmatmul.bf16.vlgmr.msra.gmra.mxu3 %v1485_v59 }
 0x531   :  { %1653 = vmatpush.msra.mxu0 %v1648_v37  ;;  %1698 = vmatpush.msra.mxu1 %v1681_v42 }
 0x533   :  { %1654 = vmatpush.msra.mxu0 %v1647_v63  ;;  %1699 = vmatpush.msra.mxu1 %v1680_v0 }
 0x535   :  { %1655 = vmatpush.msra.mxu0 %v1646_v6  ;;  %1700 = vmatpush.msra.mxu1 %v1679_v41 }
 0x537   :  { %1656 = vmatpush.msra.mxu0 %v1645_v7  ;;  %1701 = vmatpush.msra.mxu1 %v1678_v8  ;;  %v1621_v7 = vpop.permute.xlu1 %1620 }
 0x539   :  { %1657 = vmatpush.msra.mxu0 %v1644_v10  ;;  %1702 = vmatpush.msra.mxu1 %v1677_v13 }
 0x53b   :  { %1658 = vmatpush.msra.mxu0 %v1643_v28  ;;  %v2076_v28 = vld [vmem:[%s3167_s6] ss:$0 sm:$0xff] }
 0x53d   :  { %1659 = vmatpush.msra.mxu0 %v1642_v29 }
 0x53f   :  { %1546 = vmatmul.bf16.vlgmr.msrb.gmra.mxu0 %v1998_v23  ;;  %1559 = vmatmul.bf16.vlgmr.msrb.gmra.mxu1 %v1998_v23 }
 0x540   :  { %1572 = vmatmul.bf16.vlgmr.msrb.gmra.mxu2 %v1998_v23  ;;  %1585 = vmatmul.bf16.vlgmr.msrb.gmra.mxu3 %v1998_v23 }
 0x541   :  { %1660 = vmatpush.msra.mxu0 %v1641_v36 }
 0x543   :  { %1661 = vmatpush.msra.mxu0 %v1640_v44 }
 0x545   :  { %1662 = vmatpush.msra.mxu0 %v1639_v61 }
 0x547   :  { %1663 = vmatpush.msra.mxu0 %v1638_v62 }
 0x549   :  { %1664 = vmatpush.msra.mxu0 %v1637_v3 }
 0x54b   :  { %1665 = vmatpush.msra.mxu0 %v1636_v19 }
 0x54d   :  { %1666 = vmatpush.msra.mxu0 %v1635_v21 }
 0x54f   :  { %1667 = vmatpush.msra.mxu0 %v1634_v25 }
 0x551   :  { %1668 = vmatpush.msra.mxu0 %v1633_v38 }
 0x5ac   :  { %v1495_v15 = vpop.f32.mrf.mxu0  ;;  %v1508_v24 = vpop.f32.mrf.mxu1 }
 0x5b3   :  { %v1521_v52 = vpop.f32.mrf.mxu2  ;;  %v1534_v53 = vpop.f32.mrf.mxu3 }
 0x5b4   :  { %v1497_v56 = vpop.f32.mrf.mxu0  ;;  %v1510_v60 = vpop.f32.mrf.mxu1 }
 0x5bb   :  { %v1523_v20 = vpop.f32.mrf.mxu2  ;;  %v1536_v5 = vpop.f32.mrf.mxu3 }
 0x5bc   :  { %v1547_v1 = vpop.f32.mrf.mxu0  ;;  %v1560_v11 = vpop.f32.mrf.mxu1 }
 0x5bd   :  { %v1548_v48 = vadd.f32 %v1547_v1, %v1495_v15  ;;  %v1561_v50 = vadd.f32 %v1560_v11, %v1508_v24  ;;  %v1675_v24 = vld [vmem:[%s3168_s7 + $0x8] sm:$0xff] }
 0x5bf   :  { %v1590_v32 = vadd.f32 %v1548_v48, %v2552_v14  ;;  %v1591_v12 = vadd.f32 %v1561_v50, %v3301_v33 }
 0x5c1   :  { %v1594_v31 = vmul.f32 0.5, %v1590_v32  ;;  %v1598_v27 = vmul.f32 0.5, %v1591_v12 }
 0x5c3   :  { %2148 = vtanh.f32 %v1594_v31  ;;  %v1573_v43 = vpop.f32.mrf.mxu2  ;;  %v1586_v55 = vpop.f32.mrf.mxu3 }
 0x5c4   :  { %2150 = vtanh.f32 %v1598_v27  ;;  %v1574_v14 = vadd.f32 %v1573_v43, %v1521_v52  ;;  %v1587_v54 = vadd.f32 %v1586_v55, %v1534_v53  ;;  %v1549_v33 = vpop.f32.mrf.mxu0  ;;  %v1562_v49 = vpop.f32.mrf.mxu1 }
 0x5c6   :  { %v1592_v16 = vadd.f32 %v1574_v14, %v2558_v2  ;;  %v1593_v4 = vadd.f32 %v1587_v54, %v3302_v40  ;;  %v1676_v2 = vld [vmem:[%s3168_s7 + $0x10] sm:$0xff] }
 0x5c7   :  { %1703 = vmatpush.msra.mxu1 %v1676_v2 }
 0x5c8   :  { %2152 = vtanh.f32 %v1592_v16  ;;  %v1603_v9 = vmul.f32 0.5, %v1593_v4 }
 0x5c9   :  { %v2149_v17 = vpop.eup %2148  ;;  %1704 = vmatpush.msra.mxu1 %v1675_v24 }
 0x5ca   :  { %v2151_v18 = vpop.eup %2150  ;;  %v1596_v22 = vmul.f32 0.5, %v2149_v17  ;;  %2154 = vtanh.f32 %v1603_v9 }
 0x5cb   :  { %v1600_v40 = vmul.f32 0.5, %v2151_v18  ;;  %v1575_v26 = vpop.f32.mrf.mxu2  ;;  %v1588_v30 = vpop.f32.mrf.mxu3 }
 0x5cc   :  { %v1597_v34 = vadd.f32 0.5, %v1596_v22 }
 0x5cd   :  { %v1601_v35 = vadd.f32 0.5, %v1600_v40 }
 0x5ce   :  { %v2153_v45 = vpop.eup %2152 }
 0x5cf   :  { %v1607_v46 = vmul.f32 %v1601_v35, %v3065_v39  ;;  %v1608_v47 = vmul.f32 %v2153_v45, %v1597_v34  ;;  %v1674_v39 = vld [vmem:[%s3168_s7] sm:$0xff] }
 0x5d0   :  { %v2155_v51 = vpop.eup %2154  ;;  %1705 = vmatpush.msra.mxu1 %v1674_v39 }
 0x5d1   :  { %v1609_v57 = vadd.f32 %v1608_v47, %v1607_v46  ;;  %v1605_v59 = vmul.f32 0.5, %v2155_v51 }
 0x5d3   :  { %2156 = vtanh.f32 %v1609_v57  ;;  %v1606_v23 = vadd.f32 0.5, %v1605_v59 }
 0x5d9   :  { %v2157_v37 = vpop.eup %2156 }
 0x5da   :  { %v1611_v63 = vmul.f32 %v2157_v37, %v1606_v23 }
 0x5dc   :  { %v1617_v6 = vsub.f32 %v1611_v63, %v3069_v58 }
 0x5de   :  { %v1623_v10 = vmul.f32 %v1621_v7, %v1617_v6 }
 0x5e0   :  { %v1624_v15 = vadd.f32 %v1623_v10, %v3069_v58  ;;  %v2077_v58 = vld [vmem:[#allocation4] ss:$0 sm:$0xff] }
 0x5e2   :  { %1669 = vmatmul.f32.vlgmr.msra.gmra.mxu0 %v1624_v15 }
 0x65f   :  { %v1670_v29 = vpop.f32.mrf.mxu0 }
 0x660   :  { %v1671_v36 = vadd.f32 %v2076_v28, %v1670_v29 }
 0x662   :  { %v1673_v44 = vmax.f32 %v1671_v36, 0.0 }
 0x664   :  { %2001 = vmatmul.msk.f32.vlgmr.msra.gmra.mxu1 %vm1686_vm8, %v1673_v44 }
 0x6e1   :  { %v1707_v52 = vpop.f32.mrf.mxu1 }
 0x6e2   :  { %v1708_v53 = vadd.f32 %v2077_v58, %v1707_v52 }
 0x6e4   :  { %v1710_v56 = vmul.f32 0.5, %v1708_v53 }
 0x6e6   :  { %2158 = vtanh.f32 %v1710_v56 }
 0x6ec   :  { %v2159_v60 = vpop.eup %2158 }
 0x6ed   :  { %v1712_v61 = vmul.f32 0.5, %v2159_v60 }
 0x6ef   :  { %v1713_v62 = vadd.f32 0.5, %v1712_v61 }
 0x6f1   :  { %1715 = vst.msk [vmem:[%s3170_s9] sm:$0xff] %vm1714_vm9, %v1713_v62 }
 0x6f2   :  { %1720 = vsyncpa [#allocation6], 1 }
 0x6f3   :  { %1721 = vsyncpa [#allocation8], 1 }

</bundles_post_ra>
